<compile_context>
chip_gen: v6e
topology: v6e:2x2x1
jax: 0.10.0
libtpu: 0.0.40
codegen_flags: <defaults>
</compile_context>

<pallas_src>
import math
import jax
import jax.numpy as jnp
from jax import lax
from jax.experimental import pallas as pl
from jax.experimental.pallas import tpu as pltpu

INPUT_SIZE = 8
HIDDEN_SIZE = 128
NUM_LAYERS = 2
OUTPUT_SIZE = 1


def _lstm_kernel(x_ref, wih0_ref, whh0_ref, b0_ref,
                 wih1_ref, whh1_ref, b1_ref,
                 fcw_ref, fcb_ref, h0_ref, c0_ref,
                 out_ref, hn_ref, cn_ref,
                 pre_sc, h0seq_sc):
    """Whole-sequence 2-layer LSTM + fused FC head, single kernel invocation."""
    T, Bp, H = h0seq_sc.shape
    G = 4 * H
    I = x_ref.shape[-1]

    def gates(pre):
        i = jax.nn.sigmoid(pre[:, 0 * H:1 * H])
        f = jax.nn.sigmoid(pre[:, 1 * H:2 * H])
        g = jnp.tanh(pre[:, 2 * H:3 * H])
        o = jax.nn.sigmoid(pre[:, 3 * H:4 * H])
        return i, f, g, o

    # ---------------- layer 0 ----------------
    # Hoisted input projection: ONE bf16 MXU matmul over the whole sequence,
    # off the recurrent critical path.  Bias added once (single broadcast).
    x2d = x_ref[...].astype(jnp.bfloat16).reshape(T * Bp, I)
    pre_sc[...] = (jnp.dot(x2d, wih0_ref[...],
                           preferred_element_type=jnp.float32)
                   + b0_ref[...]).reshape(T, Bp, G)

    whh0 = whh0_ref[...]                                     # bf16 [H,4H], 32 vregs

    def step0(t, carry):
        h, c = carry
        # Only the H=128 recurrent matmul is on the serial path.
        pre = pre_sc[t] + jnp.dot(h.astype(jnp.bfloat16), whh0,
                                  preferred_element_type=jnp.float32)
        i, f, g, o = gates(pre)
        c = f * c + i * g
        h = o * jnp.tanh(c)
        h0seq_sc[t] = h                                      # feeds layer-1 projection
        return (h, c)

    hf0, cf0 = lax.fori_loop(0, T, step0, (h0_ref[0], c0_ref[0]), unroll=True)
    hn_ref[0] = hf0
    cn_ref[0] = cf0

    # TODO(synk): nn.LSTM inter-layer dropout (p=0.2) is train-mode only; this
    # kernel implements eval/inference semantics (no dropout).

    # ---------------- layer 1 ----------------
    # Hoisted layer-1 input projection over the full layer-0 hidden sequence
    # (M=T*Bp=64 fills the MXU far better than per-step M=8).  The pre_sc
    # scratch is reused; layer-0 has fully consumed it by this point.
    h0seq2d = h0seq_sc[...].reshape(T * Bp, H).astype(jnp.bfloat16)
    pre_sc[...] = (jnp.dot(h0seq2d, wih1_ref[...],
                           preferred_element_type=jnp.float32)
                   + b1_ref[...]).reshape(T, Bp, G)

    whh1 = whh1_ref[...]                                     # bf16 [H,4H]
    fcw = jnp.broadcast_to(fcw_ref[...], (Bp, H))            # hoisted broadcasts
    fcb = jnp.broadcast_to(fcb_ref[...], (Bp, out_ref.shape[-1]))

    def step1(t, carry):
        h, c = carry
        pre = pre_sc[t] + jnp.dot(h.astype(jnp.bfloat16), whh1,
                                  preferred_element_type=jnp.float32)
        i, f, g, o = gates(pre)
        c = f * c + i * g
        h = o * jnp.tanh(c)
        # Fused FC head: VPU multiply + XLU lane reduce (idle slots while the
        # next step's recurrent matmul runs) -> no epilogue pass, no h-seq scratch.
        out_ref[t] = jnp.sum(h * fcw, axis=-1, keepdims=True) + fcb
        return (h, c)

    hf1, cf1 = lax.fori_loop(0, T, step1, (h0_ref[1], c0_ref[1]), unroll=True)
    hn_ref[1] = hf1
    cn_ref[1] = cf1


def init_params(key):
    """Deterministic parameter init, PyTorch-style U(-1/sqrt(H), 1/sqrt(H))."""
    H, I = HIDDEN_SIZE, INPUT_SIZE
    k = 1.0 / math.sqrt(H)
    keys = jax.random.split(key, 10)

    def u(kk, shape):
        return jax.random.uniform(kk, shape, jnp.float32, -k, k)

    return dict(
        w_ih_l0=u(keys[0], (4 * H, I)),
        w_hh_l0=u(keys[1], (4 * H, H)),
        b_ih_l0=u(keys[2], (4 * H,)),
        b_hh_l0=u(keys[3], (4 * H,)),
        w_ih_l1=u(keys[4], (4 * H, H)),
        w_hh_l1=u(keys[5], (4 * H, H)),
        b_ih_l1=u(keys[6], (4 * H,)),
        b_hh_l1=u(keys[7], (4 * H,)),
        fc_w=u(keys[8], (OUTPUT_SIZE, H)),
        fc_b=u(keys[9], (OUTPUT_SIZE,)),
    )


def lstm_congestion_forward(params, x, hidden=None):
    """Mirrors LSTMCongestionPredictor.forward: x is batch-first [B, T, F]."""
    B, T, F = x.shape
    I, H = INPUT_SIZE, HIDDEN_SIZE

    # Feature-dim truncation / zero-padding glue (as in the PyTorch forward).
    if F > I:
        x = x[..., :I]
    elif F < I:
        x = jnp.concatenate([x, jnp.zeros((B, T, I - F), x.dtype)], axis=-1)

    # Pad batch to a full f32 sublane group so every vector op / store is dense.
    # TODO(synk): if Bp ever grows >= 16, add a 'parallel' grid axis over batch
    # tiles so v7x's second TensorCore shares the (batch-parallel) recurrence.
    Bp = max(8, ((B + 7) // 8) * 8)
    x = x.astype(jnp.float32)
    if Bp > B:
        x = jnp.pad(x, ((0, Bp - B), (0, 0), (0, 0)))

    if hidden is None:
        h0 = jnp.zeros((NUM_LAYERS, Bp, H), jnp.float32)
        c0 = jnp.zeros((NUM_LAYERS, Bp, H), jnp.float32)
    else:
        h0, c0 = hidden
        h0 = jnp.pad(h0.astype(jnp.float32), ((0, 0), (0, Bp - B), (0, 0)))
        c0 = jnp.pad(c0.astype(jnp.float32), ((0, 0), (0, Bp - B), (0, 0)))

    x_tm = jnp.transpose(x, (1, 0, 2))                              # [T, Bp, I]

    # LSTM weights pre-transposed to [in_dim, 4H] and cast to bf16 (MXU-native
    # operands); biases / FC parameters stay f32.
    wih0 = params['w_ih_l0'].T.astype(jnp.bfloat16)                 # [I, 4H]
    whh0 = params['w_hh_l0'].T.astype(jnp.bfloat16)                 # [H, 4H]
    b0 = (params['b_ih_l0'] + params['b_hh_l0'])[None, :]           # [1, 4H]
    wih1 = params['w_ih_l1'].T.astype(jnp.bfloat16)                 # [H, 4H]
    whh1 = params['w_hh_l1'].T.astype(jnp.bfloat16)                 # [H, 4H]
    b1 = (params['b_ih_l1'] + params['b_hh_l1'])[None, :]           # [1, 4H]
    fcw = params['fc_w']                                            # [1, H] lane-dense
    fcb = params['fc_b'][None, :]                                   # [1, 1]

    vmem = pl.BlockSpec(memory_space=pltpu.MemorySpace.VMEM)

    out_tm, hn, cn = pl.pallas_call(
        _lstm_kernel,
        out_shape=(
            jax.ShapeDtypeStruct((T, Bp, OUTPUT_SIZE), jnp.float32),
            jax.ShapeDtypeStruct((NUM_LAYERS, Bp, H), jnp.float32),
            jax.ShapeDtypeStruct((NUM_LAYERS, Bp, H), jnp.float32),
        ),
        in_specs=[vmem] * 11,
        out_specs=(vmem, vmem, vmem),
        scratch_shapes=[
            pltpu.VMEM((T, Bp, 4 * H), jnp.float32),   # gate pre-acts (reused per layer)
            pltpu.VMEM((T, Bp, H), jnp.float32),       # layer-0 hidden sequence
        ],
        # h0 -> hn, c0 -> cn: reuse the state buffers instead of fresh outputs.
        input_output_aliases={9: 1, 10: 2},
    )(x_tm, wih0, whh0, b0, wih1, whh1, b1, fcw, fcb, h0, c0)

    outputs = jnp.transpose(out_tm, (1, 0, 2))[:B]                  # [B, T, 1]
    return outputs, (hn[:, :B], cn[:, :B])


def lstm_congestion_ref(params, x):
    """Pure-JAX f32 reference (eval-mode nn.LSTM + Linear), batch-first x."""
    B, T, _ = x.shape
    H = HIDDEN_SIZE

    def cell(xt, h, c, wih, whh, b):
        pre = xt @ wih.T + h @ whh.T + b
        i = jax.nn.sigmoid(pre[:, :H])
        f = jax.nn.sigmoid(pre[:, H:2 * H])
        g = jnp.tanh(pre[:, 2 * H:3 * H])
        o = jax.nn.sigmoid(pre[:, 3 * H:])
        c = f * c + i * g
        h = o * jnp.tanh(c)
        return h, c

    z = jnp.zeros((B, H), jnp.float32)

    def step(carry, xt):
        h0, c0, h1, c1 = carry
        h0, c0 = cell(xt, h0, c0, params['w_ih_l0'], params['w_hh_l0'],
                      params['b_ih_l0'] + params['b_hh_l0'])
        h1, c1 = cell(h0, h1, c1, params['w_ih_l1'], params['w_hh_l1'],
                      params['b_ih_l1'] + params['b_hh_l1'])
        return (h0, c0, h1, c1), h1

    (h0, c0, h1, c1), hs = lax.scan(step, (z, z, z, z), jnp.transpose(x, (1, 0, 2)))
    out = hs @ params['fc_w'].T + params['fc_b']                    # [T, B, 1]
    return (jnp.transpose(out, (1, 0, 2)),
            (jnp.stack([h0, h1]), jnp.stack([c0, c1])))


if __name__ == "__main__":
    key = jax.random.PRNGKey(0)
    k_params, k_x = jax.random.split(key)

    params = init_params(k_params)
    B, T, F = 2, 8, 8                       # batch=2, seq=8, features=8
    x = jax.random.normal(k_x, (B, T, F), jnp.float32)

    (outputs, (hn, cn)) = lstm_congestion_forward(params, x)
    jax.block_until_ready((outputs, hn, cn))

    ref_out, (ref_hn, ref_cn) = lstm_congestion_ref(params, x.astype(jnp.float32))
    assert outputs.shape == (B, T, OUTPUT_SIZE)
    assert hn.shape == (NUM_LAYERS, B, HIDDEN_SIZE)
    assert cn.shape == (NUM_LAYERS, B, HIDDEN_SIZE)
    # bf16 MXU operands (f32 accumulate / f32 gate math) vs. all-f32 reference.
    assert jnp.allclose(outputs, ref_out, atol=3e-2, rtol=3e-2)
    assert jnp.allclose(hn, ref_hn, atol=3e-2, rtol=3e-2)
    assert jnp.allclose(cn, ref_cn, atol=3e-2, rtol=3e-2)

    print("KERNEL_OK")
</pallas_src>

<mosaic_0001>
module attributes {stable_mosaic.version = 11 : i64} {
  func.func @_lstm_kernel(%arg0: memref<8x8x8xf32, #tpu.memory_space<vmem>>, %arg1: memref<8x512xbf16, #tpu.memory_space<vmem>>, %arg2: memref<128x512xbf16, #tpu.memory_space<vmem>>, %arg3: memref<1x512xf32, #tpu.memory_space<vmem>>, %arg4: memref<128x512xbf16, #tpu.memory_space<vmem>>, %arg5: memref<128x512xbf16, #tpu.memory_space<vmem>>, %arg6: memref<1x512xf32, #tpu.memory_space<vmem>>, %arg7: memref<1x128xf32, #tpu.memory_space<vmem>>, %arg8: memref<1x1xf32, #tpu.memory_space<vmem>>, %arg9: memref<2x8x128xf32, #tpu.memory_space<vmem>>, %arg10: memref<2x8x128xf32, #tpu.memory_space<vmem>>, %arg11: memref<8x8x1xf32, #tpu.memory_space<vmem>>, %arg12: memref<2x8x128xf32, #tpu.memory_space<vmem>>, %arg13: memref<2x8x128xf32, #tpu.memory_space<vmem>>, %arg14: memref<8x8x512xf32, #tpu.memory_space<vmem>>, %arg15: memref<8x8x128xf32, #tpu.memory_space<vmem>>) attributes {dimension_semantics = [], scalar_prefetch = 0 : i64, scratch_operands = 2 : i64, tpu.core_type = #tpu.core_type<tc>} {
    %c0 = arith.constant 0 : index
    %c0_0 = arith.constant 0 : index
    %c0_1 = arith.constant 0 : index
    %0 = vector.load %arg0[%c0, %c0_0, %c0_1] : memref<8x8x8xf32, #tpu.memory_space<vmem>>, vector<8x8x8xf32>
    %1 = arith.truncf %0 : vector<8x8x8xf32> to vector<8x8x8xbf16>
    %2 = vector.shape_cast %1 : vector<8x8x8xbf16> to vector<64x8xbf16>
    %c0_2 = arith.constant 0 : index
    %c0_3 = arith.constant 0 : index
    %3 = vector.load %arg1[%c0_2, %c0_3] : memref<8x512xbf16, #tpu.memory_space<vmem>>, vector<8x512xbf16>
    %cst = arith.constant dense<0.000000e+00> : vector<64x512xf32>
    %4 = tpu.matmul %2, %3, %cst {dimension_numbers = #tpu.dot_dimension_numbers<[1], [0], [0], [1], [0, 0, 1, 1], [], []>} : vector<64x8xbf16>, vector<8x512xbf16>, vector<64x512xf32> -> vector<64x512xf32>
    %c0_4 = arith.constant 0 : index
    %c0_5 = arith.constant 0 : index
    %5 = vector.load %arg3[%c0_4, %c0_5] : memref<1x512xf32, #tpu.memory_space<vmem>>, vector<1x512xf32>
    %6 = vector.broadcast %5 : vector<1x512xf32> to vector<64x512xf32>
    %7 = arith.addf %4, %6 : vector<64x512xf32>
    %8 = vector.shape_cast %7 : vector<64x512xf32> to vector<8x8x512xf32>
    %c0_6 = arith.constant 0 : index
    %c0_7 = arith.constant 0 : index
    %c0_8 = arith.constant 0 : index
    %9 = vector.load %arg14[%c0_6, %c0_7, %c0_8] : memref<8x8x512xf32, #tpu.memory_space<vmem>>, vector<8x8x512xf32>
    tpu.vector_store %arg14[%c0_6, %c0_7, %c0_8], %8 {strides = array<i32>} : memref<8x8x512xf32, #tpu.memory_space<vmem>>, vector<8x8x512xf32>,
    %c0_9 = arith.constant 0 : index
    %c0_10 = arith.constant 0 : index
    %10 = vector.load %arg2[%c0_9, %c0_10] : memref<128x512xbf16, #tpu.memory_space<vmem>>, vector<128x512xbf16>
    %c0_11 = arith.constant 0 : index
    %c0_12 = arith.constant 0 : index
    %c0_13 = arith.constant 0 : index
    %11 = vector.load %arg9[%c0_11, %c0_12, %c0_13] : memref<2x8x128xf32, #tpu.memory_space<vmem>>, vector<1x8x128xf32>
    %12 = vector.shape_cast %11 : vector<1x8x128xf32> to vector<8x128xf32>
    %c0_14 = arith.constant 0 : index
    %c0_15 = arith.constant 0 : index
    %c0_16 = arith.constant 0 : index
    %13 = vector.load %arg10[%c0_14, %c0_15, %c0_16] : memref<2x8x128xf32, #tpu.memory_space<vmem>>, vector<1x8x128xf32>
    %14 = vector.shape_cast %13 : vector<1x8x128xf32> to vector<8x128xf32>
    %c0_i32 = arith.constant 0 : i32
    %15 = arith.index_cast %c0_i32 : i32 to index
    %c0_17 = arith.constant 0 : index
    %c0_18 = arith.constant 0 : index
    %16 = vector.load %arg14[%15, %c0_17, %c0_18] : memref<8x8x512xf32, #tpu.memory_space<vmem>>, vector<1x8x512xf32>
    %17 = vector.shape_cast %16 : vector<1x8x512xf32> to vector<8x512xf32>
    %18 = arith.truncf %12 : vector<8x128xf32> to vector<8x128xbf16>
    %cst_19 = arith.constant dense<0.000000e+00> : vector<8x512xf32>
    %19 = tpu.matmul %18, %10, %cst_19 {dimension_numbers = #tpu.dot_dimension_numbers<[1], [0], [0], [1], [0, 0, 1, 1], [], []>} : vector<8x128xbf16>, vector<128x512xbf16>, vector<8x512xf32> -> vector<8x512xf32>
    %20 = arith.addf %17, %19 : vector<8x512xf32>
    %21 = vector.extract_strided_slice %20 {offsets = [0, 0], sizes = [8, 128], strides = [1, 1]} : vector<8x512xf32> to vector<8x128xf32>
    %22 = arith.negf %21 : vector<8x128xf32>
    %23 = math.exp %22 : vector<8x128xf32>
    %cst_20 = arith.constant 1.000000e+00 : f32
    %24 = vector.broadcast %cst_20 : f32 to vector<8x128xf32>
    %25 = arith.addf %24, %23 : vector<8x128xf32>
    %26 = arith.divf %24, %25 : vector<8x128xf32>
    %27 = vector.extract_strided_slice %20 {offsets = [0, 128], sizes = [8, 128], strides = [1, 1]} : vector<8x512xf32> to vector<8x128xf32>
    %28 = arith.negf %27 : vector<8x128xf32>
    %29 = math.exp %28 : vector<8x128xf32>
    %cst_21 = arith.constant 1.000000e+00 : f32
    %30 = vector.broadcast %cst_21 : f32 to vector<8x128xf32>
    %31 = arith.addf %30, %29 : vector<8x128xf32>
    %32 = arith.divf %30, %31 : vector<8x128xf32>
    %33 = vector.extract_strided_slice %20 {offsets = [0, 256], sizes = [8, 128], strides = [1, 1]} : vector<8x512xf32> to vector<8x128xf32>
    %34 = math.tanh %33 : vector<8x128xf32>
    %35 = vector.extract_strided_slice %20 {offsets = [0, 384], sizes = [8, 128], strides = [1, 1]} : vector<8x512xf32> to vector<8x128xf32>
    %36 = arith.negf %35 : vector<8x128xf32>
    %37 = math.exp %36 : vector<8x128xf32>
    %cst_22 = arith.constant 1.000000e+00 : f32
    %38 = vector.broadcast %cst_22 : f32 to vector<8x128xf32>
    %39 = arith.addf %38, %37 : vector<8x128xf32>
    %40 = arith.divf %38, %39 : vector<8x128xf32>
    %41 = arith.mulf %32, %14 : vector<8x128xf32>
    %42 = arith.mulf %26, %34 : vector<8x128xf32>
    %43 = arith.addf %41, %42 : vector<8x128xf32>
    %44 = math.tanh %43 : vector<8x128xf32>
    %45 = arith.mulf %40, %44 : vector<8x128xf32>
    %46 = arith.index_cast %c0_i32 : i32 to index
    %c0_23 = arith.constant 0 : index
    %c0_24 = arith.constant 0 : index
    %47 = vector.load %arg15[%46, %c0_23, %c0_24] : memref<8x8x128xf32, #tpu.memory_space<vmem>>, vector<1x8x128xf32>
    %48 = vector.shape_cast %47 : vector<1x8x128xf32> to vector<8x128xf32>
    %49 = vector.shape_cast %45 : vector<8x128xf32> to vector<1x8x128xf32>
    tpu.vector_store %arg15[%46, %c0_23, %c0_24], %49 {strides = array<i32>} : memref<8x8x128xf32, #tpu.memory_space<vmem>>, vector<1x8x128xf32>,
    %c1_i32 = arith.constant 1 : i32
    %50 = arith.index_cast %c1_i32 : i32 to index
    %c0_25 = arith.constant 0 : index
    %c0_26 = arith.constant 0 : index
    %51 = vector.load %arg14[%50, %c0_25, %c0_26] : memref<8x8x512xf32, #tpu.memory_space<vmem>>, vector<1x8x512xf32>
    %52 = vector.shape_cast %51 : vector<1x8x512xf32> to vector<8x512xf32>
    %53 = arith.truncf %45 : vector<8x128xf32> to vector<8x128xbf16>
    %cst_27 = arith.constant dense<0.000000e+00> : vector<8x512xf32>
    %54 = tpu.matmul %53, %10, %cst_27 {dimension_numbers = #tpu.dot_dimension_numbers<[1], [0], [0], [1], [0, 0, 1, 1], [], []>} : vector<8x128xbf16>, vector<128x512xbf16>, vector<8x512xf32> -> vector<8x512xf32>
    %55 = arith.addf %52, %54 : vector<8x512xf32>
    %56 = vector.extract_strided_slice %55 {offsets = [0, 0], sizes = [8, 128], strides = [1, 1]} : vector<8x512xf32> to vector<8x128xf32>
    %57 = arith.negf %56 : vector<8x128xf32>
    %58 = math.exp %57 : vector<8x128xf32>
    %cst_28 = arith.constant 1.000000e+00 : f32
    %59 = vector.broadcast %cst_28 : f32 to vector<8x128xf32>
    %60 = arith.addf %59, %58 : vector<8x128xf32>
    %61 = arith.divf %59, %60 : vector<8x128xf32>
    %62 = vector.extract_strided_slice %55 {offsets = [0, 128], sizes = [8, 128], strides = [1, 1]} : vector<8x512xf32> to vector<8x128xf32>
    %63 = arith.negf %62 : vector<8x128xf32>
    %64 = math.exp %63 : vector<8x128xf32>
    %cst_29 = arith.constant 1.000000e+00 : f32
    %65 = vector.broadcast %cst_29 : f32 to vector<8x128xf32>
    %66 = arith.addf %65, %64 : vector<8x128xf32>
    %67 = arith.divf %65, %66 : vector<8x128xf32>
    %68 = vector.extract_strided_slice %55 {offsets = [0, 256], sizes = [8, 128], strides = [1, 1]} : vector<8x512xf32> to vector<8x128xf32>
    %69 = math.tanh %68 : vector<8x128xf32>
    %70 = vector.extract_strided_slice %55 {offsets = [0, 384], sizes = [8, 128], strides = [1, 1]} : vector<8x512xf32> to vector<8x128xf32>
    %71 = arith.negf %70 : vector<8x128xf32>
    %72 = math.exp %71 : vector<8x128xf32>
    %cst_30 = arith.constant 1.000000e+00 : f32
    %73 = vector.broadcast %cst_30 : f32 to vector<8x128xf32>
    %74 = arith.addf %73, %72 : vector<8x128xf32>
    %75 = arith.divf %73, %74 : vector<8x128xf32>
    %76 = arith.mulf %67, %43 : vector<8x128xf32>
    %77 = arith.mulf %61, %69 : vector<8x128xf32>
    %78 = arith.addf %76, %77 : vector<8x128xf32>
    %79 = math.tanh %78 : vector<8x128xf32>
    %80 = arith.mulf %75, %79 : vector<8x128xf32>
    %81 = arith.index_cast %c1_i32 : i32 to index
    %c0_31 = arith.constant 0 : index
    %c0_32 = arith.constant 0 : index
    %82 = vector.load %arg15[%81, %c0_31, %c0_32] : memref<8x8x128xf32, #tpu.memory_space<vmem>>, vector<1x8x128xf32>
    %83 = vector.shape_cast %82 : vector<1x8x128xf32> to vector<8x128xf32>
    %84 = vector.shape_cast %80 : vector<8x128xf32> to vector<1x8x128xf32>
    tpu.vector_store %arg15[%81, %c0_31, %c0_32], %84 {strides = array<i32>} : memref<8x8x128xf32, #tpu.memory_space<vmem>>, vector<1x8x128xf32>,
    %c2_i32 = arith.constant 2 : i32
    %85 = arith.index_cast %c2_i32 : i32 to index
    %c0_33 = arith.constant 0 : index
    %c0_34 = arith.constant 0 : index
    %86 = vector.load %arg14[%85, %c0_33, %c0_34] : memref<8x8x512xf32, #tpu.memory_space<vmem>>, vector<1x8x512xf32>
    %87 = vector.shape_cast %86 : vector<1x8x512xf32> to vector<8x512xf32>
    %88 = arith.truncf %80 : vector<8x128xf32> to vector<8x128xbf16>
    %cst_35 = arith.constant dense<0.000000e+00> : vector<8x512xf32>
    %89 = tpu.matmul %88, %10, %cst_35 {dimension_numbers = #tpu.dot_dimension_numbers<[1], [0], [0], [1], [0, 0, 1, 1], [], []>} : vector<8x128xbf16>, vector<128x512xbf16>, vector<8x512xf32> -> vector<8x512xf32>
    %90 = arith.addf %87, %89 : vector<8x512xf32>
    %91 = vector.extract_strided_slice %90 {offsets = [0, 0], sizes = [8, 128], strides = [1, 1]} : vector<8x512xf32> to vector<8x128xf32>
    %92 = arith.negf %91 : vector<8x128xf32>
    %93 = math.exp %92 : vector<8x128xf32>
    %cst_36 = arith.constant 1.000000e+00 : f32
    %94 = vector.broadcast %cst_36 : f32 to vector<8x128xf32>
    %95 = arith.addf %94, %93 : vector<8x128xf32>
    %96 = arith.divf %94, %95 : vector<8x128xf32>
    %97 = vector.extract_strided_slice %90 {offsets = [0, 128], sizes = [8, 128], strides = [1, 1]} : vector<8x512xf32> to vector<8x128xf32>
    %98 = arith.negf %97 : vector<8x128xf32>
    %99 = math.exp %98 : vector<8x128xf32>
    %cst_37 = arith.constant 1.000000e+00 : f32
    %100 = vector.broadcast %cst_37 : f32 to vector<8x128xf32>
    %101 = arith.addf %100, %99 : vector<8x128xf32>
    %102 = arith.divf %100, %101 : vector<8x128xf32>
    %103 = vector.extract_strided_slice %90 {offsets = [0, 256], sizes = [8, 128], strides = [1, 1]} : vector<8x512xf32> to vector<8x128xf32>
    %104 = math.tanh %103 : vector<8x128xf32>
    %105 = vector.extract_strided_slice %90 {offsets = [0, 384], sizes = [8, 128], strides = [1, 1]} : vector<8x512xf32> to vector<8x128xf32>
    %106 = arith.negf %105 : vector<8x128xf32>
    %107 = math.exp %106 : vector<8x128xf32>
    %cst_38 = arith.constant 1.000000e+00 : f32
    %108 = vector.broadcast %cst_38 : f32 to vector<8x128xf32>
    %109 = arith.addf %108, %107 : vector<8x128xf32>
    %110 = arith.divf %108, %109 : vector<8x128xf32>
    %111 = arith.mulf %102, %78 : vector<8x128xf32>
    %112 = arith.mulf %96, %104 : vector<8x128xf32>
    %113 = arith.addf %111, %112 : vector<8x128xf32>
    %114 = math.tanh %113 : vector<8x128xf32>
    %115 = arith.mulf %110, %114 : vector<8x128xf32>
    %116 = arith.index_cast %c2_i32 : i32 to index
    %c0_39 = arith.constant 0 : index
    %c0_40 = arith.constant 0 : index
    %117 = vector.load %arg15[%116, %c0_39, %c0_40] : memref<8x8x128xf32, #tpu.memory_space<vmem>>, vector<1x8x128xf32>
    %118 = vector.shape_cast %117 : vector<1x8x128xf32> to vector<8x128xf32>
    %119 = vector.shape_cast %115 : vector<8x128xf32> to vector<1x8x128xf32>
    tpu.vector_store %arg15[%116, %c0_39, %c0_40], %119 {strides = array<i32>} : memref<8x8x128xf32, #tpu.memory_space<vmem>>, vector<1x8x128xf32>,
    %c3_i32 = arith.constant 3 : i32
    %120 = arith.index_cast %c3_i32 : i32 to index
    %c0_41 = arith.constant 0 : index
    %c0_42 = arith.constant 0 : index
    %121 = vector.load %arg14[%120, %c0_41, %c0_42] : memref<8x8x512xf32, #tpu.memory_space<vmem>>, vector<1x8x512xf32>
    %122 = vector.shape_cast %121 : vector<1x8x512xf32> to vector<8x512xf32>
    %123 = arith.truncf %115 : vector<8x128xf32> to vector<8x128xbf16>
    %cst_43 = arith.constant dense<0.000000e+00> : vector<8x512xf32>
    %124 = tpu.matmul %123, %10, %cst_43 {dimension_numbers = #tpu.dot_dimension_numbers<[1], [0], [0], [1], [0, 0, 1, 1], [], []>} : vector<8x128xbf16>, vector<128x512xbf16>, vector<8x512xf32> -> vector<8x512xf32>
    %125 = arith.addf %122, %124 : vector<8x512xf32>
    %126 = vector.extract_strided_slice %125 {offsets = [0, 0], sizes = [8, 128], strides = [1, 1]} : vector<8x512xf32> to vector<8x128xf32>
    %127 = arith.negf %126 : vector<8x128xf32>
    %128 = math.exp %127 : vector<8x128xf32>
    %cst_44 = arith.constant 1.000000e+00 : f32
    %129 = vector.broadcast %cst_44 : f32 to vector<8x128xf32>
    %130 = arith.addf %129, %128 : vector<8x128xf32>
    %131 = arith.divf %129, %130 : vector<8x128xf32>
    %132 = vector.extract_strided_slice %125 {offsets = [0, 128], sizes = [8, 128], strides = [1, 1]} : vector<8x512xf32> to vector<8x128xf32>
    %133 = arith.negf %132 : vector<8x128xf32>
    %134 = math.exp %133 : vector<8x128xf32>
    %cst_45 = arith.constant 1.000000e+00 : f32
    %135 = vector.broadcast %cst_45 : f32 to vector<8x128xf32>
    %136 = arith.addf %135, %134 : vector<8x128xf32>
    %137 = arith.divf %135, %136 : vector<8x128xf32>
    %138 = vector.extract_strided_slice %125 {offsets = [0, 256], sizes = [8, 128], strides = [1, 1]} : vector<8x512xf32> to vector<8x128xf32>
    %139 = math.tanh %138 : vector<8x128xf32>
    %140 = vector.extract_strided_slice %125 {offsets = [0, 384], sizes = [8, 128], strides = [1, 1]} : vector<8x512xf32> to vector<8x128xf32>
    %141 = arith.negf %140 : vector<8x128xf32>
    %142 = math.exp %141 : vector<8x128xf32>
    %cst_46 = arith.constant 1.000000e+00 : f32
    %143 = vector.broadcast %cst_46 : f32 to vector<8x128xf32>
    %144 = arith.addf %143, %142 : vector<8x128xf32>
    %145 = arith.divf %143, %144 : vector<8x128xf32>
    %146 = arith.mulf %137, %113 : vector<8x128xf32>
    %147 = arith.mulf %131, %139 : vector<8x128xf32>
    %148 = arith.addf %146, %147 : vector<8x128xf32>
    %149 = math.tanh %148 : vector<8x128xf32>
    %150 = arith.mulf %145, %149 : vector<8x128xf32>
    %151 = arith.index_cast %c3_i32 : i32 to index
    %c0_47 = arith.constant 0 : index
    %c0_48 = arith.constant 0 : index
    %152 = vector.load %arg15[%151, %c0_47, %c0_48] : memref<8x8x128xf32, #tpu.memory_space<vmem>>, vector<1x8x128xf32>
    %153 = vector.shape_cast %152 : vector<1x8x128xf32> to vector<8x128xf32>
    %154 = vector.shape_cast %150 : vector<8x128xf32> to vector<1x8x128xf32>
    tpu.vector_store %arg15[%151, %c0_47, %c0_48], %154 {strides = array<i32>} : memref<8x8x128xf32, #tpu.memory_space<vmem>>, vector<1x8x128xf32>,
    %c4_i32 = arith.constant 4 : i32
    %155 = arith.index_cast %c4_i32 : i32 to index
    %c0_49 = arith.constant 0 : index
    %c0_50 = arith.constant 0 : index
    %156 = vector.load %arg14[%155, %c0_49, %c0_50] : memref<8x8x512xf32, #tpu.memory_space<vmem>>, vector<1x8x512xf32>
    %157 = vector.shape_cast %156 : vector<1x8x512xf32> to vector<8x512xf32>
    %158 = arith.truncf %150 : vector<8x128xf32> to vector<8x128xbf16>
    %cst_51 = arith.constant dense<0.000000e+00> : vector<8x512xf32>
    %159 = tpu.matmul %158, %10, %cst_51 {dimension_numbers = #tpu.dot_dimension_numbers<[1], [0], [0], [1], [0, 0, 1, 1], [], []>} : vector<8x128xbf16>, vector<128x512xbf16>, vector<8x512xf32> -> vector<8x512xf32>
    %160 = arith.addf %157, %159 : vector<8x512xf32>
    %161 = vector.extract_strided_slice %160 {offsets = [0, 0], sizes = [8, 128], strides = [1, 1]} : vector<8x512xf32> to vector<8x128xf32>
    %162 = arith.negf %161 : vector<8x128xf32>
    %163 = math.exp %162 : vector<8x128xf32>
    %cst_52 = arith.constant 1.000000e+00 : f32
    %164 = vector.broadcast %cst_52 : f32 to vector<8x128xf32>
    %165 = arith.addf %164, %163 : vector<8x128xf32>
    %166 = arith.divf %164, %165 : vector<8x128xf32>
    %167 = vector.extract_strided_slice %160 {offsets = [0, 128], sizes = [8, 128], strides = [1, 1]} : vector<8x512xf32> to vector<8x128xf32>
    %168 = arith.negf %167 : vector<8x128xf32>
    %169 = math.exp %168 : vector<8x128xf32>
    %cst_53 = arith.constant 1.000000e+00 : f32
    %170 = vector.broadcast %cst_53 : f32 to vector<8x128xf32>
    %171 = arith.addf %170, %169 : vector<8x128xf32>
    %172 = arith.divf %170, %171 : vector<8x128xf32>
    %173 = vector.extract_strided_slice %160 {offsets = [0, 256], sizes = [8, 128], strides = [1, 1]} : vector<8x512xf32> to vector<8x128xf32>
    %174 = math.tanh %173 : vector<8x128xf32>
    %175 = vector.extract_strided_slice %160 {offsets = [0, 384], sizes = [8, 128], strides = [1, 1]} : vector<8x512xf32> to vector<8x128xf32>
    %176 = arith.negf %175 : vector<8x128xf32>
    %177 = math.exp %176 : vector<8x128xf32>
    %cst_54 = arith.constant 1.000000e+00 : f32
    %178 = vector.broadcast %cst_54 : f32 to vector<8x128xf32>
    %179 = arith.addf %178, %177 : vector<8x128xf32>
    %180 = arith.divf %178, %179 : vector<8x128xf32>
    %181 = arith.mulf %172, %148 : vector<8x128xf32>
    %182 = arith.mulf %166, %174 : vector<8x128xf32>
    %183 = arith.addf %181, %182 : vector<8x128xf32>
    %184 = math.tanh %183 : vector<8x128xf32>
    %185 = arith.mulf %180, %184 : vector<8x128xf32>
    %186 = arith.index_cast %c4_i32 : i32 to index
    %c0_55 = arith.constant 0 : index
    %c0_56 = arith.constant 0 : index
    %187 = vector.load %arg15[%186, %c0_55, %c0_56] : memref<8x8x128xf32, #tpu.memory_space<vmem>>, vector<1x8x128xf32>
    %188 = vector.shape_cast %187 : vector<1x8x128xf32> to vector<8x128xf32>
    %189 = vector.shape_cast %185 : vector<8x128xf32> to vector<1x8x128xf32>
    tpu.vector_store %arg15[%186, %c0_55, %c0_56], %189 {strides = array<i32>} : memref<8x8x128xf32, #tpu.memory_space<vmem>>, vector<1x8x128xf32>,
    %c5_i32 = arith.constant 5 : i32
    %190 = arith.index_cast %c5_i32 : i32 to index
    %c0_57 = arith.constant 0 : index
    %c0_58 = arith.constant 0 : index
    %191 = vector.load %arg14[%190, %c0_57, %c0_58] : memref<8x8x512xf32, #tpu.memory_space<vmem>>, vector<1x8x512xf32>
    %192 = vector.shape_cast %191 : vector<1x8x512xf32> to vector<8x512xf32>
    %193 = arith.truncf %185 : vector<8x128xf32> to vector<8x128xbf16>
    %cst_59 = arith.constant dense<0.000000e+00> : vector<8x512xf32>
    %194 = tpu.matmul %193, %10, %cst_59 {dimension_numbers = #tpu.dot_dimension_numbers<[1], [0], [0], [1], [0, 0, 1, 1], [], []>} : vector<8x128xbf16>, vector<128x512xbf16>, vector<8x512xf32> -> vector<8x512xf32>
    %195 = arith.addf %192, %194 : vector<8x512xf32>
    %196 = vector.extract_strided_slice %195 {offsets = [0, 0], sizes = [8, 128], strides = [1, 1]} : vector<8x512xf32> to vector<8x128xf32>
    %197 = arith.negf %196 : vector<8x128xf32>
    %198 = math.exp %197 : vector<8x128xf32>
    %cst_60 = arith.constant 1.000000e+00 : f32
    %199 = vector.broadcast %cst_60 : f32 to vector<8x128xf32>
    %200 = arith.addf %199, %198 : vector<8x128xf32>
    %201 = arith.divf %199, %200 : vector<8x128xf32>
    %202 = vector.extract_strided_slice %195 {offsets = [0, 128], sizes = [8, 128], strides = [1, 1]} : vector<8x512xf32> to vector<8x128xf32>
    %203 = arith.negf %202 : vector<8x128xf32>
    %204 = math.exp %203 : vector<8x128xf32>
    %cst_61 = arith.constant 1.000000e+00 : f32
    %205 = vector.broadcast %cst_61 : f32 to vector<8x128xf32>
    %206 = arith.addf %205, %204 : vector<8x128xf32>
    %207 = arith.divf %205, %206 : vector<8x128xf32>
    %208 = vector.extract_strided_slice %195 {offsets = [0, 256], sizes = [8, 128], strides = [1, 1]} : vector<8x512xf32> to vector<8x128xf32>
    %209 = math.tanh %208 : vector<8x128xf32>
    %210 = vector.extract_strided_slice %195 {offsets = [0, 384], sizes = [8, 128], strides = [1, 1]} : vector<8x512xf32> to vector<8x128xf32>
    %211 = arith.negf %210 : vector<8x128xf32>
    %212 = math.exp %211 : vector<8x128xf32>
    %cst_62 = arith.constant 1.000000e+00 : f32
    %213 = vector.broadcast %cst_62 : f32 to vector<8x128xf32>
    %214 = arith.addf %213, %212 : vector<8x128xf32>
    %215 = arith.divf %213, %214 : vector<8x128xf32>
    %216 = arith.mulf %207, %183 : vector<8x128xf32>
    %217 = arith.mulf %201, %209 : vector<8x128xf32>
    %218 = arith.addf %216, %217 : vector<8x128xf32>
    %219 = math.tanh %218 : vector<8x128xf32>
    %220 = arith.mulf %215, %219 : vector<8x128xf32>
    %221 = arith.index_cast %c5_i32 : i32 to index
    %c0_63 = arith.constant 0 : index
    %c0_64 = arith.constant 0 : index
    %222 = vector.load %arg15[%221, %c0_63, %c0_64] : memref<8x8x128xf32, #tpu.memory_space<vmem>>, vector<1x8x128xf32>
    %223 = vector.shape_cast %222 : vector<1x8x128xf32> to vector<8x128xf32>
    %224 = vector.shape_cast %220 : vector<8x128xf32> to vector<1x8x128xf32>
    tpu.vector_store %arg15[%221, %c0_63, %c0_64], %224 {strides = array<i32>} : memref<8x8x128xf32, #tpu.memory_space<vmem>>, vector<1x8x128xf32>,
    %c6_i32 = arith.constant 6 : i32
    %225 = arith.index_cast %c6_i32 : i32 to index
    %c0_65 = arith.constant 0 : index
    %c0_66 = arith.constant 0 : index
    %226 = vector.load %arg14[%225, %c0_65, %c0_66] : memref<8x8x512xf32, #tpu.memory_space<vmem>>, vector<1x8x512xf32>
    %227 = vector.shape_cast %226 : vector<1x8x512xf32> to vector<8x512xf32>
    %228 = arith.truncf %220 : vector<8x128xf32> to vector<8x128xbf16>
    %cst_67 = arith.constant dense<0.000000e+00> : vector<8x512xf32>
    %229 = tpu.matmul %228, %10, %cst_67 {dimension_numbers = #tpu.dot_dimension_numbers<[1], [0], [0], [1], [0, 0, 1, 1], [], []>} : vector<8x128xbf16>, vector<128x512xbf16>, vector<8x512xf32> -> vector<8x512xf32>
    %230 = arith.addf %227, %229 : vector<8x512xf32>
    %231 = vector.extract_strided_slice %230 {offsets = [0, 0], sizes = [8, 128], strides = [1, 1]} : vector<8x512xf32> to vector<8x128xf32>
    %232 = arith.negf %231 : vector<8x128xf32>
    %233 = math.exp %232 : vector<8x128xf32>
    %cst_68 = arith.constant 1.000000e+00 : f32
    %234 = vector.broadcast %cst_68 : f32 to vector<8x128xf32>
    %235 = arith.addf %234, %233 : vector<8x128xf32>
    %236 = arith.divf %234, %235 : vector<8x128xf32>
    %237 = vector.extract_strided_slice %230 {offsets = [0, 128], sizes = [8, 128], strides = [1, 1]} : vector<8x512xf32> to vector<8x128xf32>
    %238 = arith.negf %237 : vector<8x128xf32>
    %239 = math.exp %238 : vector<8x128xf32>
    %cst_69 = arith.constant 1.000000e+00 : f32
    %240 = vector.broadcast %cst_69 : f32 to vector<8x128xf32>
    %241 = arith.addf %240, %239 : vector<8x128xf32>
    %242 = arith.divf %240, %241 : vector<8x128xf32>
    %243 = vector.extract_strided_slice %230 {offsets = [0, 256], sizes = [8, 128], strides = [1, 1]} : vector<8x512xf32> to vector<8x128xf32>
    %244 = math.tanh %243 : vector<8x128xf32>
    %245 = vector.extract_strided_slice %230 {offsets = [0, 384], sizes = [8, 128], strides = [1, 1]} : vector<8x512xf32> to vector<8x128xf32>
    %246 = arith.negf %245 : vector<8x128xf32>
    %247 = math.exp %246 : vector<8x128xf32>
    %cst_70 = arith.constant 1.000000e+00 : f32
    %248 = vector.broadcast %cst_70 : f32 to vector<8x128xf32>
    %249 = arith.addf %248, %247 : vector<8x128xf32>
    %250 = arith.divf %248, %249 : vector<8x128xf32>
    %251 = arith.mulf %242, %218 : vector<8x128xf32>
    %252 = arith.mulf %236, %244 : vector<8x128xf32>
    %253 = arith.addf %251, %252 : vector<8x128xf32>
    %254 = math.tanh %253 : vector<8x128xf32>
    %255 = arith.mulf %250, %254 : vector<8x128xf32>
    %256 = arith.index_cast %c6_i32 : i32 to index
    %c0_71 = arith.constant 0 : index
    %c0_72 = arith.constant 0 : index
    %257 = vector.load %arg15[%256, %c0_71, %c0_72] : memref<8x8x128xf32, #tpu.memory_space<vmem>>, vector<1x8x128xf32>
    %258 = vector.shape_cast %257 : vector<1x8x128xf32> to vector<8x128xf32>
    %259 = vector.shape_cast %255 : vector<8x128xf32> to vector<1x8x128xf32>
    tpu.vector_store %arg15[%256, %c0_71, %c0_72], %259 {strides = array<i32>} : memref<8x8x128xf32, #tpu.memory_space<vmem>>, vector<1x8x128xf32>,
    %c7_i32 = arith.constant 7 : i32
    %260 = arith.index_cast %c7_i32 : i32 to index
    %c0_73 = arith.constant 0 : index
    %c0_74 = arith.constant 0 : index
    %261 = vector.load %arg14[%260, %c0_73, %c0_74] : memref<8x8x512xf32, #tpu.memory_space<vmem>>, vector<1x8x512xf32>
    %262 = vector.shape_cast %261 : vector<1x8x512xf32> to vector<8x512xf32>
    %263 = arith.truncf %255 : vector<8x128xf32> to vector<8x128xbf16>
    %cst_75 = arith.constant dense<0.000000e+00> : vector<8x512xf32>
    %264 = tpu.matmul %263, %10, %cst_75 {dimension_numbers = #tpu.dot_dimension_numbers<[1], [0], [0], [1], [0, 0, 1, 1], [], []>} : vector<8x128xbf16>, vector<128x512xbf16>, vector<8x512xf32> -> vector<8x512xf32>
    %265 = arith.addf %262, %264 : vector<8x512xf32>
    %266 = vector.extract_strided_slice %265 {offsets = [0, 0], sizes = [8, 128], strides = [1, 1]} : vector<8x512xf32> to vector<8x128xf32>
    %267 = arith.negf %266 : vector<8x128xf32>
    %268 = math.exp %267 : vector<8x128xf32>
    %cst_76 = arith.constant 1.000000e+00 : f32
    %269 = vector.broadcast %cst_76 : f32 to vector<8x128xf32>
    %270 = arith.addf %269, %268 : vector<8x128xf32>
    %271 = arith.divf %269, %270 : vector<8x128xf32>
    %272 = vector.extract_strided_slice %265 {offsets = [0, 128], sizes = [8, 128], strides = [1, 1]} : vector<8x512xf32> to vector<8x128xf32>
    %273 = arith.negf %272 : vector<8x128xf32>
    %274 = math.exp %273 : vector<8x128xf32>
    %cst_77 = arith.constant 1.000000e+00 : f32
    %275 = vector.broadcast %cst_77 : f32 to vector<8x128xf32>
    %276 = arith.addf %275, %274 : vector<8x128xf32>
    %277 = arith.divf %275, %276 : vector<8x128xf32>
    %278 = vector.extract_strided_slice %265 {offsets = [0, 256], sizes = [8, 128], strides = [1, 1]} : vector<8x512xf32> to vector<8x128xf32>
    %279 = math.tanh %278 : vector<8x128xf32>
    %280 = vector.extract_strided_slice %265 {offsets = [0, 384], sizes = [8, 128], strides = [1, 1]} : vector<8x512xf32> to vector<8x128xf32>
    %281 = arith.negf %280 : vector<8x128xf32>
    %282 = math.exp %281 : vector<8x128xf32>
    %cst_78 = arith.constant 1.000000e+00 : f32
    %283 = vector.broadcast %cst_78 : f32 to vector<8x128xf32>
    %284 = arith.addf %283, %282 : vector<8x128xf32>
    %285 = arith.divf %283, %284 : vector<8x128xf32>
    %286 = arith.mulf %277, %253 : vector<8x128xf32>
    %287 = arith.mulf %271, %279 : vector<8x128xf32>
    %288 = arith.addf %286, %287 : vector<8x128xf32>
    %289 = math.tanh %288 : vector<8x128xf32>
    %290 = arith.mulf %285, %289 : vector<8x128xf32>
    %291 = arith.index_cast %c7_i32 : i32 to index
    %c0_79 = arith.constant 0 : index
    %c0_80 = arith.constant 0 : index
    %292 = vector.load %arg15[%291, %c0_79, %c0_80] : memref<8x8x128xf32, #tpu.memory_space<vmem>>, vector<1x8x128xf32>
    %293 = vector.shape_cast %292 : vector<1x8x128xf32> to vector<8x128xf32>
    %294 = vector.shape_cast %290 : vector<8x128xf32> to vector<1x8x128xf32>
    tpu.vector_store %arg15[%291, %c0_79, %c0_80], %294 {strides = array<i32>} : memref<8x8x128xf32, #tpu.memory_space<vmem>>, vector<1x8x128xf32>,
    %c8_i32 = arith.constant 8 : i32
    %c0_81 = arith.constant 0 : index
    %c0_82 = arith.constant 0 : index
    %c0_83 = arith.constant 0 : index
    %295 = vector.load %arg12[%c0_81, %c0_82, %c0_83] : memref<2x8x128xf32, #tpu.memory_space<vmem>>, vector<1x8x128xf32>
    %296 = vector.shape_cast %295 : vector<1x8x128xf32> to vector<8x128xf32>
    %297 = vector.shape_cast %290 : vector<8x128xf32> to vector<1x8x128xf32>
    tpu.vector_store %arg12[%c0_81, %c0_82, %c0_83], %297 {strides = array<i32>} : memref<2x8x128xf32, #tpu.memory_space<vmem>>, vector<1x8x128xf32>,
    %c0_84 = arith.constant 0 : index
    %c0_85 = arith.constant 0 : index
    %c0_86 = arith.constant 0 : index
    %298 = vector.load %arg13[%c0_84, %c0_85, %c0_86] : memref<2x8x128xf32, #tpu.memory_space<vmem>>, vector<1x8x128xf32>
    %299 = vector.shape_cast %298 : vector<1x8x128xf32> to vector<8x128xf32>
    %300 = vector.shape_cast %288 : vector<8x128xf32> to vector<1x8x128xf32>
    tpu.vector_store %arg13[%c0_84, %c0_85, %c0_86], %300 {strides = array<i32>} : memref<2x8x128xf32, #tpu.memory_space<vmem>>, vector<1x8x128xf32>,
    %c0_87 = arith.constant 0 : index
    %c0_88 = arith.constant 0 : index
    %c0_89 = arith.constant 0 : index
    %301 = vector.load %arg15[%c0_87, %c0_88, %c0_89] : memref<8x8x128xf32, #tpu.memory_space<vmem>>, vector<8x8x128xf32>
    %302 = vector.shape_cast %301 : vector<8x8x128xf32> to vector<64x128xf32>
    %303 = arith.truncf %302 : vector<64x128xf32> to vector<64x128xbf16>
    %c0_90 = arith.constant 0 : index
    %c0_91 = arith.constant 0 : index
    %304 = vector.load %arg4[%c0_90, %c0_91] : memref<128x512xbf16, #tpu.memory_space<vmem>>, vector<128x512xbf16>
    %cst_92 = arith.constant dense<0.000000e+00> : vector<64x512xf32>
    %305 = tpu.matmul %303, %304, %cst_92 {dimension_numbers = #tpu.dot_dimension_numbers<[1], [0], [0], [1], [0, 0, 1, 1], [], []>} : vector<64x128xbf16>, vector<128x512xbf16>, vector<64x512xf32> -> vector<64x512xf32>
    %c0_93 = arith.constant 0 : index
    %c0_94 = arith.constant 0 : index
    %306 = vector.load %arg6[%c0_93, %c0_94] : memref<1x512xf32, #tpu.memory_space<vmem>>, vector<1x512xf32>
    %307 = vector.broadcast %306 : vector<1x512xf32> to vector<64x512xf32>
    %308 = arith.addf %305, %307 : vector<64x512xf32>
    %309 = vector.shape_cast %308 : vector<64x512xf32> to vector<8x8x512xf32>
    %c0_95 = arith.constant 0 : index
    %c0_96 = arith.constant 0 : index
    %c0_97 = arith.constant 0 : index
    %310 = vector.load %arg14[%c0_95, %c0_96, %c0_97] : memref<8x8x512xf32, #tpu.memory_space<vmem>>, vector<8x8x512xf32>
    tpu.vector_store %arg14[%c0_95, %c0_96, %c0_97], %309 {strides = array<i32>} : memref<8x8x512xf32, #tpu.memory_space<vmem>>, vector<8x8x512xf32>,
    %c0_98 = arith.constant 0 : index
    %c0_99 = arith.constant 0 : index
    %311 = vector.load %arg5[%c0_98, %c0_99] : memref<128x512xbf16, #tpu.memory_space<vmem>>, vector<128x512xbf16>
    %c0_100 = arith.constant 0 : index
    %c0_101 = arith.constant 0 : index
    %312 = vector.load %arg7[%c0_100, %c0_101] : memref<1x128xf32, #tpu.memory_space<vmem>>, vector<1x128xf32>
    %313 = vector.shape_cast %312 : vector<1x128xf32> to vector<1x128xf32>
    %314 = vector.broadcast %313 : vector<1x128xf32> to vector<8x128xf32>
    %c0_102 = arith.constant 0 : index
    %c0_103 = arith.constant 0 : index
    %315 = vector.load %arg8[%c0_102, %c0_103] : memref<1x1xf32, #tpu.memory_space<vmem>>, vector<1x1xf32>
    %316 = vector.shape_cast %315 : vector<1x1xf32> to vector<1x1xf32>
    %317 = vector.broadcast %316 : vector<1x1xf32> to vector<8x1xf32>
    %c1 = arith.constant 1 : index
    %c0_104 = arith.constant 0 : index
    %c0_105 = arith.constant 0 : index
    %318 = vector.load %arg9[%c1, %c0_104, %c0_105] : memref<2x8x128xf32, #tpu.memory_space<vmem>>, vector<1x8x128xf32>
    %319 = vector.shape_cast %318 : vector<1x8x128xf32> to vector<8x128xf32>
    %c1_106 = arith.constant 1 : index
    %c0_107 = arith.constant 0 : index
    %c0_108 = arith.constant 0 : index
    %320 = vector.load %arg10[%c1_106, %c0_107, %c0_108] : memref<2x8x128xf32, #tpu.memory_space<vmem>>, vector<1x8x128xf32>
    %321 = vector.shape_cast %320 : vector<1x8x128xf32> to vector<8x128xf32>
    %c0_i32_109 = arith.constant 0 : i32
    %322 = arith.index_cast %c0_i32_109 : i32 to index
    %c0_110 = arith.constant 0 : index
    %c0_111 = arith.constant 0 : index
    %323 = vector.load %arg14[%322, %c0_110, %c0_111] : memref<8x8x512xf32, #tpu.memory_space<vmem>>, vector<1x8x512xf32>
    %324 = vector.shape_cast %323 : vector<1x8x512xf32> to vector<8x512xf32>
    %325 = arith.truncf %319 : vector<8x128xf32> to vector<8x128xbf16>
    %cst_112 = arith.constant dense<0.000000e+00> : vector<8x512xf32>
    %326 = tpu.matmul %325, %311, %cst_112 {dimension_numbers = #tpu.dot_dimension_numbers<[1], [0], [0], [1], [0, 0, 1, 1], [], []>} : vector<8x128xbf16>, vector<128x512xbf16>, vector<8x512xf32> -> vector<8x512xf32>
    %327 = arith.addf %324, %326 : vector<8x512xf32>
    %328 = vector.extract_strided_slice %327 {offsets = [0, 0], sizes = [8, 128], strides = [1, 1]} : vector<8x512xf32> to vector<8x128xf32>
    %329 = arith.negf %328 : vector<8x128xf32>
    %330 = math.exp %329 : vector<8x128xf32>
    %cst_113 = arith.constant 1.000000e+00 : f32
    %331 = vector.broadcast %cst_113 : f32 to vector<8x128xf32>
    %332 = arith.addf %331, %330 : vector<8x128xf32>
    %333 = arith.divf %331, %332 : vector<8x128xf32>
    %334 = vector.extract_strided_slice %327 {offsets = [0, 128], sizes = [8, 128], strides = [1, 1]} : vector<8x512xf32> to vector<8x128xf32>
    %335 = arith.negf %334 : vector<8x128xf32>
    %336 = math.exp %335 : vector<8x128xf32>
    %cst_114 = arith.constant 1.000000e+00 : f32
    %337 = vector.broadcast %cst_114 : f32 to vector<8x128xf32>
    %338 = arith.addf %337, %336 : vector<8x128xf32>
    %339 = arith.divf %337, %338 : vector<8x128xf32>
    %340 = vector.extract_strided_slice %327 {offsets = [0, 256], sizes = [8, 128], strides = [1, 1]} : vector<8x512xf32> to vector<8x128xf32>
    %341 = math.tanh %340 : vector<8x128xf32>
    %342 = vector.extract_strided_slice %327 {offsets = [0, 384], sizes = [8, 128], strides = [1, 1]} : vector<8x512xf32> to vector<8x128xf32>
    %343 = arith.negf %342 : vector<8x128xf32>
    %344 = math.exp %343 : vector<8x128xf32>
    %cst_115 = arith.constant 1.000000e+00 : f32
    %345 = vector.broadcast %cst_115 : f32 to vector<8x128xf32>
    %346 = arith.addf %345, %344 : vector<8x128xf32>
    %347 = arith.divf %345, %346 : vector<8x128xf32>
    %348 = arith.mulf %339, %321 : vector<8x128xf32>
    %349 = arith.mulf %333, %341 : vector<8x128xf32>
    %350 = arith.addf %348, %349 : vector<8x128xf32>
    %351 = math.tanh %350 : vector<8x128xf32>
    %352 = arith.mulf %347, %351 : vector<8x128xf32>
    %353 = arith.mulf %352, %314 : vector<8x128xf32>
    %cst_116 = arith.constant dense<0.000000e+00> : vector<8xf32>
    %354 = vector.multi_reduction <add>, %353, %cst_116 [1] : vector<8x128xf32> to vector<8xf32>
    %355 = vector.shape_cast %354 : vector<8xf32> to vector<8x1xf32>
    %356 = arith.addf %355, %317 : vector<8x1xf32>
    %357 = arith.index_cast %c0_i32_109 : i32 to index
    %c0_117 = arith.constant 0 : index
    %c0_118 = arith.constant 0 : index
    %358 = vector.load %arg11[%357, %c0_117, %c0_118] : memref<8x8x1xf32, #tpu.memory_space<vmem>>, vector<1x8x1xf32>
    %359 = vector.shape_cast %358 : vector<1x8x1xf32> to vector<8x1xf32>
    %360 = vector.shape_cast %356 : vector<8x1xf32> to vector<1x8x1xf32>
    tpu.vector_store %arg11[%357, %c0_117, %c0_118], %360 {strides = array<i32>} : memref<8x8x1xf32, #tpu.memory_space<vmem>>, vector<1x8x1xf32>,
    %c1_i32_119 = arith.constant 1 : i32
    %361 = arith.index_cast %c1_i32_119 : i32 to index
    %c0_120 = arith.constant 0 : index
    %c0_121 = arith.constant 0 : index
    %362 = vector.load %arg14[%361, %c0_120, %c0_121] : memref<8x8x512xf32, #tpu.memory_space<vmem>>, vector<1x8x512xf32>
    %363 = vector.shape_cast %362 : vector<1x8x512xf32> to vector<8x512xf32>
    %364 = arith.truncf %352 : vector<8x128xf32> to vector<8x128xbf16>
    %cst_122 = arith.constant dense<0.000000e+00> : vector<8x512xf32>
    %365 = tpu.matmul %364, %311, %cst_122 {dimension_numbers = #tpu.dot_dimension_numbers<[1], [0], [0], [1], [0, 0, 1, 1], [], []>} : vector<8x128xbf16>, vector<128x512xbf16>, vector<8x512xf32> -> vector<8x512xf32>
    %366 = arith.addf %363, %365 : vector<8x512xf32>
    %367 = vector.extract_strided_slice %366 {offsets = [0, 0], sizes = [8, 128], strides = [1, 1]} : vector<8x512xf32> to vector<8x128xf32>
    %368 = arith.negf %367 : vector<8x128xf32>
    %369 = math.exp %368 : vector<8x128xf32>
    %cst_123 = arith.constant 1.000000e+00 : f32
    %370 = vector.broadcast %cst_123 : f32 to vector<8x128xf32>
    %371 = arith.addf %370, %369 : vector<8x128xf32>
    %372 = arith.divf %370, %371 : vector<8x128xf32>
    %373 = vector.extract_strided_slice %366 {offsets = [0, 128], sizes = [8, 128], strides = [1, 1]} : vector<8x512xf32> to vector<8x128xf32>
    %374 = arith.negf %373 : vector<8x128xf32>
    %375 = math.exp %374 : vector<8x128xf32>
    %cst_124 = arith.constant 1.000000e+00 : f32
    %376 = vector.broadcast %cst_124 : f32 to vector<8x128xf32>
    %377 = arith.addf %376, %375 : vector<8x128xf32>
    %378 = arith.divf %376, %377 : vector<8x128xf32>
    %379 = vector.extract_strided_slice %366 {offsets = [0, 256], sizes = [8, 128], strides = [1, 1]} : vector<8x512xf32> to vector<8x128xf32>
    %380 = math.tanh %379 : vector<8x128xf32>
    %381 = vector.extract_strided_slice %366 {offsets = [0, 384], sizes = [8, 128], strides = [1, 1]} : vector<8x512xf32> to vector<8x128xf32>
    %382 = arith.negf %381 : vector<8x128xf32>
    %383 = math.exp %382 : vector<8x128xf32>
    %cst_125 = arith.constant 1.000000e+00 : f32
    %384 = vector.broadcast %cst_125 : f32 to vector<8x128xf32>
    %385 = arith.addf %384, %383 : vector<8x128xf32>
    %386 = arith.divf %384, %385 : vector<8x128xf32>
    %387 = arith.mulf %378, %350 : vector<8x128xf32>
    %388 = arith.mulf %372, %380 : vector<8x128xf32>
    %389 = arith.addf %387, %388 : vector<8x128xf32>
    %390 = math.tanh %389 : vector<8x128xf32>
    %391 = arith.mulf %386, %390 : vector<8x128xf32>
    %392 = arith.mulf %391, %314 : vector<8x128xf32>
    %cst_126 = arith.constant dense<0.000000e+00> : vector<8xf32>
    %393 = vector.multi_reduction <add>, %392, %cst_126 [1] : vector<8x128xf32> to vector<8xf32>
    %394 = vector.shape_cast %393 : vector<8xf32> to vector<8x1xf32>
    %395 = arith.addf %394, %317 : vector<8x1xf32>
    %396 = arith.index_cast %c1_i32_119 : i32 to index
    %c0_127 = arith.constant 0 : index
    %c0_128 = arith.constant 0 : index
    %397 = vector.load %arg11[%396, %c0_127, %c0_128] : memref<8x8x1xf32, #tpu.memory_space<vmem>>, vector<1x8x1xf32>
    %398 = vector.shape_cast %397 : vector<1x8x1xf32> to vector<8x1xf32>
    %399 = vector.shape_cast %395 : vector<8x1xf32> to vector<1x8x1xf32>
    tpu.vector_store %arg11[%396, %c0_127, %c0_128], %399 {strides = array<i32>} : memref<8x8x1xf32, #tpu.memory_space<vmem>>, vector<1x8x1xf32>,
    %c2_i32_129 = arith.constant 2 : i32
    %400 = arith.index_cast %c2_i32_129 : i32 to index
    %c0_130 = arith.constant 0 : index
    %c0_131 = arith.constant 0 : index
    %401 = vector.load %arg14[%400, %c0_130, %c0_131] : memref<8x8x512xf32, #tpu.memory_space<vmem>>, vector<1x8x512xf32>
    %402 = vector.shape_cast %401 : vector<1x8x512xf32> to vector<8x512xf32>
    %403 = arith.truncf %391 : vector<8x128xf32> to vector<8x128xbf16>
    %cst_132 = arith.constant dense<0.000000e+00> : vector<8x512xf32>
    %404 = tpu.matmul %403, %311, %cst_132 {dimension_numbers = #tpu.dot_dimension_numbers<[1], [0], [0], [1], [0, 0, 1, 1], [], []>} : vector<8x128xbf16>, vector<128x512xbf16>, vector<8x512xf32> -> vector<8x512xf32>
    %405 = arith.addf %402, %404 : vector<8x512xf32>
    %406 = vector.extract_strided_slice %405 {offsets = [0, 0], sizes = [8, 128], strides = [1, 1]} : vector<8x512xf32> to vector<8x128xf32>
    %407 = arith.negf %406 : vector<8x128xf32>
    %408 = math.exp %407 : vector<8x128xf32>
    %cst_133 = arith.constant 1.000000e+00 : f32
    %409 = vector.broadcast %cst_133 : f32 to vector<8x128xf32>
    %410 = arith.addf %409, %408 : vector<8x128xf32>
    %411 = arith.divf %409, %410 : vector<8x128xf32>
    %412 = vector.extract_strided_slice %405 {offsets = [0, 128], sizes = [8, 128], strides = [1, 1]} : vector<8x512xf32> to vector<8x128xf32>
    %413 = arith.negf %412 : vector<8x128xf32>
    %414 = math.exp %413 : vector<8x128xf32>
    %cst_134 = arith.constant 1.000000e+00 : f32
    %415 = vector.broadcast %cst_134 : f32 to vector<8x128xf32>
    %416 = arith.addf %415, %414 : vector<8x128xf32>
    %417 = arith.divf %415, %416 : vector<8x128xf32>
    %418 = vector.extract_strided_slice %405 {offsets = [0, 256], sizes = [8, 128], strides = [1, 1]} : vector<8x512xf32> to vector<8x128xf32>
    %419 = math.tanh %418 : vector<8x128xf32>
    %420 = vector.extract_strided_slice %405 {offsets = [0, 384], sizes = [8, 128], strides = [1, 1]} : vector<8x512xf32> to vector<8x128xf32>
    %421 = arith.negf %420 : vector<8x128xf32>
    %422 = math.exp %421 : vector<8x128xf32>
    %cst_135 = arith.constant 1.000000e+00 : f32
    %423 = vector.broadcast %cst_135 : f32 to vector<8x128xf32>
    %424 = arith.addf %423, %422 : vector<8x128xf32>
    %425 = arith.divf %423, %424 : vector<8x128xf32>
    %426 = arith.mulf %417, %389 : vector<8x128xf32>
    %427 = arith.mulf %411, %419 : vector<8x128xf32>
    %428 = arith.addf %426, %427 : vector<8x128xf32>
    %429 = math.tanh %428 : vector<8x128xf32>
    %430 = arith.mulf %425, %429 : vector<8x128xf32>
    %431 = arith.mulf %430, %314 : vector<8x128xf32>
    %cst_136 = arith.constant dense<0.000000e+00> : vector<8xf32>
    %432 = vector.multi_reduction <add>, %431, %cst_136 [1] : vector<8x128xf32> to vector<8xf32>
    %433 = vector.shape_cast %432 : vector<8xf32> to vector<8x1xf32>
    %434 = arith.addf %433, %317 : vector<8x1xf32>
    %435 = arith.index_cast %c2_i32_129 : i32 to index
    %c0_137 = arith.constant 0 : index
    %c0_138 = arith.constant 0 : index
    %436 = vector.load %arg11[%435, %c0_137, %c0_138] : memref<8x8x1xf32, #tpu.memory_space<vmem>>, vector<1x8x1xf32>
    %437 = vector.shape_cast %436 : vector<1x8x1xf32> to vector<8x1xf32>
    %438 = vector.shape_cast %434 : vector<8x1xf32> to vector<1x8x1xf32>
    tpu.vector_store %arg11[%435, %c0_137, %c0_138], %438 {strides = array<i32>} : memref<8x8x1xf32, #tpu.memory_space<vmem>>, vector<1x8x1xf32>,
    %c3_i32_139 = arith.constant 3 : i32
    %439 = arith.index_cast %c3_i32_139 : i32 to index
    %c0_140 = arith.constant 0 : index
    %c0_141 = arith.constant 0 : index
    %440 = vector.load %arg14[%439, %c0_140, %c0_141] : memref<8x8x512xf32, #tpu.memory_space<vmem>>, vector<1x8x512xf32>
    %441 = vector.shape_cast %440 : vector<1x8x512xf32> to vector<8x512xf32>
    %442 = arith.truncf %430 : vector<8x128xf32> to vector<8x128xbf16>
    %cst_142 = arith.constant dense<0.000000e+00> : vector<8x512xf32>
    %443 = tpu.matmul %442, %311, %cst_142 {dimension_numbers = #tpu.dot_dimension_numbers<[1], [0], [0], [1], [0, 0, 1, 1], [], []>} : vector<8x128xbf16>, vector<128x512xbf16>, vector<8x512xf32> -> vector<8x512xf32>
    %444 = arith.addf %441, %443 : vector<8x512xf32>
    %445 = vector.extract_strided_slice %444 {offsets = [0, 0], sizes = [8, 128], strides = [1, 1]} : vector<8x512xf32> to vector<8x128xf32>
    %446 = arith.negf %445 : vector<8x128xf32>
    %447 = math.exp %446 : vector<8x128xf32>
    %cst_143 = arith.constant 1.000000e+00 : f32
    %448 = vector.broadcast %cst_143 : f32 to vector<8x128xf32>
    %449 = arith.addf %448, %447 : vector<8x128xf32>
    %450 = arith.divf %448, %449 : vector<8x128xf32>
    %451 = vector.extract_strided_slice %444 {offsets = [0, 128], sizes = [8, 128], strides = [1, 1]} : vector<8x512xf32> to vector<8x128xf32>
    %452 = arith.negf %451 : vector<8x128xf32>
    %453 = math.exp %452 : vector<8x128xf32>
    %cst_144 = arith.constant 1.000000e+00 : f32
    %454 = vector.broadcast %cst_144 : f32 to vector<8x128xf32>
    %455 = arith.addf %454, %453 : vector<8x128xf32>
    %456 = arith.divf %454, %455 : vector<8x128xf32>
    %457 = vector.extract_strided_slice %444 {offsets = [0, 256], sizes = [8, 128], strides = [1, 1]} : vector<8x512xf32> to vector<8x128xf32>
    %458 = math.tanh %457 : vector<8x128xf32>
    %459 = vector.extract_strided_slice %444 {offsets = [0, 384], sizes = [8, 128], strides = [1, 1]} : vector<8x512xf32> to vector<8x128xf32>
    %460 = arith.negf %459 : vector<8x128xf32>
    %461 = math.exp %460 : vector<8x128xf32>
    %cst_145 = arith.constant 1.000000e+00 : f32
    %462 = vector.broadcast %cst_145 : f32 to vector<8x128xf32>
    %463 = arith.addf %462, %461 : vector<8x128xf32>
    %464 = arith.divf %462, %463 : vector<8x128xf32>
    %465 = arith.mulf %456, %428 : vector<8x128xf32>
    %466 = arith.mulf %450, %458 : vector<8x128xf32>
    %467 = arith.addf %465, %466 : vector<8x128xf32>
    %468 = math.tanh %467 : vector<8x128xf32>
    %469 = arith.mulf %464, %468 : vector<8x128xf32>
    %470 = arith.mulf %469, %314 : vector<8x128xf32>
    %cst_146 = arith.constant dense<0.000000e+00> : vector<8xf32>
    %471 = vector.multi_reduction <add>, %470, %cst_146 [1] : vector<8x128xf32> to vector<8xf32>
    %472 = vector.shape_cast %471 : vector<8xf32> to vector<8x1xf32>
    %473 = arith.addf %472, %317 : vector<8x1xf32>
    %474 = arith.index_cast %c3_i32_139 : i32 to index
    %c0_147 = arith.constant 0 : index
    %c0_148 = arith.constant 0 : index
    %475 = vector.load %arg11[%474, %c0_147, %c0_148] : memref<8x8x1xf32, #tpu.memory_space<vmem>>, vector<1x8x1xf32>
    %476 = vector.shape_cast %475 : vector<1x8x1xf32> to vector<8x1xf32>
    %477 = vector.shape_cast %473 : vector<8x1xf32> to vector<1x8x1xf32>
    tpu.vector_store %arg11[%474, %c0_147, %c0_148], %477 {strides = array<i32>} : memref<8x8x1xf32, #tpu.memory_space<vmem>>, vector<1x8x1xf32>,
    %c4_i32_149 = arith.constant 4 : i32
    %478 = arith.index_cast %c4_i32_149 : i32 to index
    %c0_150 = arith.constant 0 : index
    %c0_151 = arith.constant 0 : index
    %479 = vector.load %arg14[%478, %c0_150, %c0_151] : memref<8x8x512xf32, #tpu.memory_space<vmem>>, vector<1x8x512xf32>
    %480 = vector.shape_cast %479 : vector<1x8x512xf32> to vector<8x512xf32>
    %481 = arith.truncf %469 : vector<8x128xf32> to vector<8x128xbf16>
    %cst_152 = arith.constant dense<0.000000e+00> : vector<8x512xf32>
    %482 = tpu.matmul %481, %311, %cst_152 {dimension_numbers = #tpu.dot_dimension_numbers<[1], [0], [0], [1], [0, 0, 1, 1], [], []>} : vector<8x128xbf16>, vector<128x512xbf16>, vector<8x512xf32> -> vector<8x512xf32>
    %483 = arith.addf %480, %482 : vector<8x512xf32>
    %484 = vector.extract_strided_slice %483 {offsets = [0, 0], sizes = [8, 128], strides = [1, 1]} : vector<8x512xf32> to vector<8x128xf32>
    %485 = arith.negf %484 : vector<8x128xf32>
    %486 = math.exp %485 : vector<8x128xf32>
    %cst_153 = arith.constant 1.000000e+00 : f32
    %487 = vector.broadcast %cst_153 : f32 to vector<8x128xf32>
    %488 = arith.addf %487, %486 : vector<8x128xf32>
    %489 = arith.divf %487, %488 : vector<8x128xf32>
    %490 = vector.extract_strided_slice %483 {offsets = [0, 128], sizes = [8, 128], strides = [1, 1]} : vector<8x512xf32> to vector<8x128xf32>
    %491 = arith.negf %490 : vector<8x128xf32>
    %492 = math.exp %491 : vector<8x128xf32>
    %cst_154 = arith.constant 1.000000e+00 : f32
    %493 = vector.broadcast %cst_154 : f32 to vector<8x128xf32>
    %494 = arith.addf %493, %492 : vector<8x128xf32>
    %495 = arith.divf %493, %494 : vector<8x128xf32>
    %496 = vector.extract_strided_slice %483 {offsets = [0, 256], sizes = [8, 128], strides = [1, 1]} : vector<8x512xf32> to vector<8x128xf32>
    %497 = math.tanh %496 : vector<8x128xf32>
    %498 = vector.extract_strided_slice %483 {offsets = [0, 384], sizes = [8, 128], strides = [1, 1]} : vector<8x512xf32> to vector<8x128xf32>
    %499 = arith.negf %498 : vector<8x128xf32>
    %500 = math.exp %499 : vector<8x128xf32>
    %cst_155 = arith.constant 1.000000e+00 : f32
    %501 = vector.broadcast %cst_155 : f32 to vector<8x128xf32>
    %502 = arith.addf %501, %500 : vector<8x128xf32>
    %503 = arith.divf %501, %502 : vector<8x128xf32>
    %504 = arith.mulf %495, %467 : vector<8x128xf32>
    %505 = arith.mulf %489, %497 : vector<8x128xf32>
    %506 = arith.addf %504, %505 : vector<8x128xf32>
    %507 = math.tanh %506 : vector<8x128xf32>
    %508 = arith.mulf %503, %507 : vector<8x128xf32>
    %509 = arith.mulf %508, %314 : vector<8x128xf32>
    %cst_156 = arith.constant dense<0.000000e+00> : vector<8xf32>
    %510 = vector.multi_reduction <add>, %509, %cst_156 [1] : vector<8x128xf32> to vector<8xf32>
    %511 = vector.shape_cast %510 : vector<8xf32> to vector<8x1xf32>
    %512 = arith.addf %511, %317 : vector<8x1xf32>
    %513 = arith.index_cast %c4_i32_149 : i32 to index
    %c0_157 = arith.constant 0 : index
    %c0_158 = arith.constant 0 : index
    %514 = vector.load %arg11[%513, %c0_157, %c0_158] : memref<8x8x1xf32, #tpu.memory_space<vmem>>, vector<1x8x1xf32>
    %515 = vector.shape_cast %514 : vector<1x8x1xf32> to vector<8x1xf32>
    %516 = vector.shape_cast %512 : vector<8x1xf32> to vector<1x8x1xf32>
    tpu.vector_store %arg11[%513, %c0_157, %c0_158], %516 {strides = array<i32>} : memref<8x8x1xf32, #tpu.memory_space<vmem>>, vector<1x8x1xf32>,
    %c5_i32_159 = arith.constant 5 : i32
    %517 = arith.index_cast %c5_i32_159 : i32 to index
    %c0_160 = arith.constant 0 : index
    %c0_161 = arith.constant 0 : index
    %518 = vector.load %arg14[%517, %c0_160, %c0_161] : memref<8x8x512xf32, #tpu.memory_space<vmem>>, vector<1x8x512xf32>
    %519 = vector.shape_cast %518 : vector<1x8x512xf32> to vector<8x512xf32>
    %520 = arith.truncf %508 : vector<8x128xf32> to vector<8x128xbf16>
    %cst_162 = arith.constant dense<0.000000e+00> : vector<8x512xf32>
    %521 = tpu.matmul %520, %311, %cst_162 {dimension_numbers = #tpu.dot_dimension_numbers<[1], [0], [0], [1], [0, 0, 1, 1], [], []>} : vector<8x128xbf16>, vector<128x512xbf16>, vector<8x512xf32> -> vector<8x512xf32>
    %522 = arith.addf %519, %521 : vector<8x512xf32>
    %523 = vector.extract_strided_slice %522 {offsets = [0, 0], sizes = [8, 128], strides = [1, 1]} : vector<8x512xf32> to vector<8x128xf32>
    %524 = arith.negf %523 : vector<8x128xf32>
    %525 = math.exp %524 : vector<8x128xf32>
    %cst_163 = arith.constant 1.000000e+00 : f32
    %526 = vector.broadcast %cst_163 : f32 to vector<8x128xf32>
    %527 = arith.addf %526, %525 : vector<8x128xf32>
    %528 = arith.divf %526, %527 : vector<8x128xf32>
    %529 = vector.extract_strided_slice %522 {offsets = [0, 128], sizes = [8, 128], strides = [1, 1]} : vector<8x512xf32> to vector<8x128xf32>
    %530 = arith.negf %529 : vector<8x128xf32>
    %531 = math.exp %530 : vector<8x128xf32>
    %cst_164 = arith.constant 1.000000e+00 : f32
    %532 = vector.broadcast %cst_164 : f32 to vector<8x128xf32>
    %533 = arith.addf %532, %531 : vector<8x128xf32>
    %534 = arith.divf %532, %533 : vector<8x128xf32>
    %535 = vector.extract_strided_slice %522 {offsets = [0, 256], sizes = [8, 128], strides = [1, 1]} : vector<8x512xf32> to vector<8x128xf32>
    %536 = math.tanh %535 : vector<8x128xf32>
    %537 = vector.extract_strided_slice %522 {offsets = [0, 384], sizes = [8, 128], strides = [1, 1]} : vector<8x512xf32> to vector<8x128xf32>
    %538 = arith.negf %537 : vector<8x128xf32>
    %539 = math.exp %538 : vector<8x128xf32>
    %cst_165 = arith.constant 1.000000e+00 : f32
    %540 = vector.broadcast %cst_165 : f32 to vector<8x128xf32>
    %541 = arith.addf %540, %539 : vector<8x128xf32>
    %542 = arith.divf %540, %541 : vector<8x128xf32>
    %543 = arith.mulf %534, %506 : vector<8x128xf32>
    %544 = arith.mulf %528, %536 : vector<8x128xf32>
    %545 = arith.addf %543, %544 : vector<8x128xf32>
    %546 = math.tanh %545 : vector<8x128xf32>
    %547 = arith.mulf %542, %546 : vector<8x128xf32>
    %548 = arith.mulf %547, %314 : vector<8x128xf32>
    %cst_166 = arith.constant dense<0.000000e+00> : vector<8xf32>
    %549 = vector.multi_reduction <add>, %548, %cst_166 [1] : vector<8x128xf32> to vector<8xf32>
    %550 = vector.shape_cast %549 : vector<8xf32> to vector<8x1xf32>
    %551 = arith.addf %550, %317 : vector<8x1xf32>
    %552 = arith.index_cast %c5_i32_159 : i32 to index
    %c0_167 = arith.constant 0 : index
    %c0_168 = arith.constant 0 : index
    %553 = vector.load %arg11[%552, %c0_167, %c0_168] : memref<8x8x1xf32, #tpu.memory_space<vmem>>, vector<1x8x1xf32>
    %554 = vector.shape_cast %553 : vector<1x8x1xf32> to vector<8x1xf32>
    %555 = vector.shape_cast %551 : vector<8x1xf32> to vector<1x8x1xf32>
    tpu.vector_store %arg11[%552, %c0_167, %c0_168], %555 {strides = array<i32>} : memref<8x8x1xf32, #tpu.memory_space<vmem>>, vector<1x8x1xf32>,
    %c6_i32_169 = arith.constant 6 : i32
    %556 = arith.index_cast %c6_i32_169 : i32 to index
    %c0_170 = arith.constant 0 : index
    %c0_171 = arith.constant 0 : index
    %557 = vector.load %arg14[%556, %c0_170, %c0_171] : memref<8x8x512xf32, #tpu.memory_space<vmem>>, vector<1x8x512xf32>
    %558 = vector.shape_cast %557 : vector<1x8x512xf32> to vector<8x512xf32>
    %559 = arith.truncf %547 : vector<8x128xf32> to vector<8x128xbf16>
    %cst_172 = arith.constant dense<0.000000e+00> : vector<8x512xf32>
    %560 = tpu.matmul %559, %311, %cst_172 {dimension_numbers = #tpu.dot_dimension_numbers<[1], [0], [0], [1], [0, 0, 1, 1], [], []>} : vector<8x128xbf16>, vector<128x512xbf16>, vector<8x512xf32> -> vector<8x512xf32>
    %561 = arith.addf %558, %560 : vector<8x512xf32>
    %562 = vector.extract_strided_slice %561 {offsets = [0, 0], sizes = [8, 128], strides = [1, 1]} : vector<8x512xf32> to vector<8x128xf32>
    %563 = arith.negf %562 : vector<8x128xf32>
    %564 = math.exp %563 : vector<8x128xf32>
    %cst_173 = arith.constant 1.000000e+00 : f32
    %565 = vector.broadcast %cst_173 : f32 to vector<8x128xf32>
    %566 = arith.addf %565, %564 : vector<8x128xf32>
    %567 = arith.divf %565, %566 : vector<8x128xf32>
    %568 = vector.extract_strided_slice %561 {offsets = [0, 128], sizes = [8, 128], strides = [1, 1]} : vector<8x512xf32> to vector<8x128xf32>
    %569 = arith.negf %568 : vector<8x128xf32>
    %570 = math.exp %569 : vector<8x128xf32>
    %cst_174 = arith.constant 1.000000e+00 : f32
    %571 = vector.broadcast %cst_174 : f32 to vector<8x128xf32>
    %572 = arith.addf %571, %570 : vector<8x128xf32>
    %573 = arith.divf %571, %572 : vector<8x128xf32>
    %574 = vector.extract_strided_slice %561 {offsets = [0, 256], sizes = [8, 128], strides = [1, 1]} : vector<8x512xf32> to vector<8x128xf32>
    %575 = math.tanh %574 : vector<8x128xf32>
    %576 = vector.extract_strided_slice %561 {offsets = [0, 384], sizes = [8, 128], strides = [1, 1]} : vector<8x512xf32> to vector<8x128xf32>
    %577 = arith.negf %576 : vector<8x128xf32>
    %578 = math.exp %577 : vector<8x128xf32>
    %cst_175 = arith.constant 1.000000e+00 : f32
    %579 = vector.broadcast %cst_175 : f32 to vector<8x128xf32>
    %580 = arith.addf %579, %578 : vector<8x128xf32>
    %581 = arith.divf %579, %580 : vector<8x128xf32>
    %582 = arith.mulf %573, %545 : vector<8x128xf32>
    %583 = arith.mulf %567, %575 : vector<8x128xf32>
    %584 = arith.addf %582, %583 : vector<8x128xf32>
    %585 = math.tanh %584 : vector<8x128xf32>
    %586 = arith.mulf %581, %585 : vector<8x128xf32>
    %587 = arith.mulf %586, %314 : vector<8x128xf32>
    %cst_176 = arith.constant dense<0.000000e+00> : vector<8xf32>
    %588 = vector.multi_reduction <add>, %587, %cst_176 [1] : vector<8x128xf32> to vector<8xf32>
    %589 = vector.shape_cast %588 : vector<8xf32> to vector<8x1xf32>
    %590 = arith.addf %589, %317 : vector<8x1xf32>
    %591 = arith.index_cast %c6_i32_169 : i32 to index
    %c0_177 = arith.constant 0 : index
    %c0_178 = arith.constant 0 : index
    %592 = vector.load %arg11[%591, %c0_177, %c0_178] : memref<8x8x1xf32, #tpu.memory_space<vmem>>, vector<1x8x1xf32>
    %593 = vector.shape_cast %592 : vector<1x8x1xf32> to vector<8x1xf32>
    %594 = vector.shape_cast %590 : vector<8x1xf32> to vector<1x8x1xf32>
    tpu.vector_store %arg11[%591, %c0_177, %c0_178], %594 {strides = array<i32>} : memref<8x8x1xf32, #tpu.memory_space<vmem>>, vector<1x8x1xf32>,
    %c7_i32_179 = arith.constant 7 : i32
    %595 = arith.index_cast %c7_i32_179 : i32 to index
    %c0_180 = arith.constant 0 : index
    %c0_181 = arith.constant 0 : index
    %596 = vector.load %arg14[%595, %c0_180, %c0_181] : memref<8x8x512xf32, #tpu.memory_space<vmem>>, vector<1x8x512xf32>
    %597 = vector.shape_cast %596 : vector<1x8x512xf32> to vector<8x512xf32>
    %598 = arith.truncf %586 : vector<8x128xf32> to vector<8x128xbf16>
    %cst_182 = arith.constant dense<0.000000e+00> : vector<8x512xf32>
    %599 = tpu.matmul %598, %311, %cst_182 {dimension_numbers = #tpu.dot_dimension_numbers<[1], [0], [0], [1], [0, 0, 1, 1], [], []>} : vector<8x128xbf16>, vector<128x512xbf16>, vector<8x512xf32> -> vector<8x512xf32>
    %600 = arith.addf %597, %599 : vector<8x512xf32>
    %601 = vector.extract_strided_slice %600 {offsets = [0, 0], sizes = [8, 128], strides = [1, 1]} : vector<8x512xf32> to vector<8x128xf32>
    %602 = arith.negf %601 : vector<8x128xf32>
    %603 = math.exp %602 : vector<8x128xf32>
    %cst_183 = arith.constant 1.000000e+00 : f32
    %604 = vector.broadcast %cst_183 : f32 to vector<8x128xf32>
    %605 = arith.addf %604, %603 : vector<8x128xf32>
    %606 = arith.divf %604, %605 : vector<8x128xf32>
    %607 = vector.extract_strided_slice %600 {offsets = [0, 128], sizes = [8, 128], strides = [1, 1]} : vector<8x512xf32> to vector<8x128xf32>
    %608 = arith.negf %607 : vector<8x128xf32>
    %609 = math.exp %608 : vector<8x128xf32>
    %cst_184 = arith.constant 1.000000e+00 : f32
    %610 = vector.broadcast %cst_184 : f32 to vector<8x128xf32>
    %611 = arith.addf %610, %609 : vector<8x128xf32>
    %612 = arith.divf %610, %611 : vector<8x128xf32>
    %613 = vector.extract_strided_slice %600 {offsets = [0, 256], sizes = [8, 128], strides = [1, 1]} : vector<8x512xf32> to vector<8x128xf32>
    %614 = math.tanh %613 : vector<8x128xf32>
    %615 = vector.extract_strided_slice %600 {offsets = [0, 384], sizes = [8, 128], strides = [1, 1]} : vector<8x512xf32> to vector<8x128xf32>
    %616 = arith.negf %615 : vector<8x128xf32>
    %617 = math.exp %616 : vector<8x128xf32>
    %cst_185 = arith.constant 1.000000e+00 : f32
    %618 = vector.broadcast %cst_185 : f32 to vector<8x128xf32>
    %619 = arith.addf %618, %617 : vector<8x128xf32>
    %620 = arith.divf %618, %619 : vector<8x128xf32>
    %621 = arith.mulf %612, %584 : vector<8x128xf32>
    %622 = arith.mulf %606, %614 : vector<8x128xf32>
    %623 = arith.addf %621, %622 : vector<8x128xf32>
    %624 = math.tanh %623 : vector<8x128xf32>
    %625 = arith.mulf %620, %624 : vector<8x128xf32>
    %626 = arith.mulf %625, %314 : vector<8x128xf32>
    %cst_186 = arith.constant dense<0.000000e+00> : vector<8xf32>
    %627 = vector.multi_reduction <add>, %626, %cst_186 [1] : vector<8x128xf32> to vector<8xf32>
    %628 = vector.shape_cast %627 : vector<8xf32> to vector<8x1xf32>
    %629 = arith.addf %628, %317 : vector<8x1xf32>
    %630 = arith.index_cast %c7_i32_179 : i32 to index
    %c0_187 = arith.constant 0 : index
    %c0_188 = arith.constant 0 : index
    %631 = vector.load %arg11[%630, %c0_187, %c0_188] : memref<8x8x1xf32, #tpu.memory_space<vmem>>, vector<1x8x1xf32>
    %632 = vector.shape_cast %631 : vector<1x8x1xf32> to vector<8x1xf32>
    %633 = vector.shape_cast %629 : vector<8x1xf32> to vector<1x8x1xf32>
    tpu.vector_store %arg11[%630, %c0_187, %c0_188], %633 {strides = array<i32>} : memref<8x8x1xf32, #tpu.memory_space<vmem>>, vector<1x8x1xf32>,
    %c8_i32_189 = arith.constant 8 : i32
    %c1_190 = arith.constant 1 : index
    %c0_191 = arith.constant 0 : index
    %c0_192 = arith.constant 0 : index
    %634 = vector.load %arg12[%c1_190, %c0_191, %c0_192] : memref<2x8x128xf32, #tpu.memory_space<vmem>>, vector<1x8x128xf32>
    %635 = vector.shape_cast %634 : vector<1x8x128xf32> to vector<8x128xf32>
    %636 = vector.shape_cast %625 : vector<8x128xf32> to vector<1x8x128xf32>
    tpu.vector_store %arg12[%c1_190, %c0_191, %c0_192], %636 {strides = array<i32>} : memref<2x8x128xf32, #tpu.memory_space<vmem>>, vector<1x8x128xf32>,
    %c1_193 = arith.constant 1 : index
    %c0_194 = arith.constant 0 : index
    %c0_195 = arith.constant 0 : index
    %637 = vector.load %arg13[%c1_193, %c0_194, %c0_195] : memref<2x8x128xf32, #tpu.memory_space<vmem>>, vector<1x8x128xf32>
    %638 = vector.shape_cast %637 : vector<1x8x128xf32> to vector<8x128xf32>
    %639 = vector.shape_cast %623 : vector<8x128xf32> to vector<1x8x128xf32>
    tpu.vector_store %arg13[%c1_193, %c0_194, %c0_195], %639 {strides = array<i32>} : memref<2x8x128xf32, #tpu.memory_space<vmem>>, vector<1x8x128xf32>,
    return
  }
}

</mosaic_0001>

<bundles_post_ra>
// kernel: tpu_custom_call.1
= control target key start
LH: loop header
LB: loop body
LE: loop exit
PB: predicated region body
PF: predicated region fallthrough
CT: control target
= control target key end

     0   :  { %s5224_s0 = inlined_call_operand.hbm [shape: f32[8,8,8], index: 0, kind: input, shape index: {}]   ;;  %s5225_s1 = inlined_call_operand.vmem [shape: bf16[8,512], index: 1, kind: input, shape index: {}]   ;;  %s5226_s2 = inlined_call_operand.hbm [shape: bf16[128,512], index: 2, kind: input, shape index: {}]   ;;  %s5227_s3 = inlined_call_operand.vmem [shape: f32[1,512], index: 3, kind: input, shape index: {}]   ;;  %s5228_s4 = inlined_call_operand.hbm [shape: bf16[128,512], index: 4, kind: input, shape index: {}]   ;;  %s5229_s5 = inlined_call_operand.hbm [shape: bf16[128,512], index: 5, kind: input, shape index: {}]   ;;  %s5230_s6 = inlined_call_operand.vmem [shape: f32[1,512], index: 6, kind: input, shape index: {}]   ;;  %s5231_s7 = inlined_call_operand.vmem [shape: f32[1,128], index: 7, kind: input, shape index: {}]   ;;  %s5232_s8 = inlined_call_operand.<no memory space> [shape: f32[1,1], index: 8, kind: input, shape index: {}]   ;;  %s5233_s9 = inlined_call_operand.vmem [shape: f32[2,8,128], index: 9, kind: input, shape index: {}, may-alias: {9,12}]   ;;  %s5234_s10 = inlined_call_operand.vmem [shape: f32[2,8,128], index: 10, kind: input, shape index: {}, may-alias: {10,13}]   ;;  %s5235_s11 = inlined_call_operand.vmem [shape: f32[8,8,1], index: 11, kind: output, shape index: {0}]   ;;  %s5236_s12 = inlined_call_operand.vmem [shape: f32[2,8,128], index: 12, kind: output, shape index: {1}, may-alias: {9,12}]   ;;  %s5237_s13 = inlined_call_operand.vmem [shape: f32[2,8,128], index: 13, kind: output, shape index: {2}, may-alias: {10,13}]  }
   0x1   :  { %v19_v0 = vstv %s5232_s8 }
   0x2   :  { %20 = vst [vmem:[#allocation4] sm:$0x1] %v19_v0 }
   0x3   :  { %21 = vsyncpa [#allocation6], 0 }
   0x4   :  { %22 = vsyncpa [#allocation8], 0 }
   0x5   :  { %23 = vsyncpa [#allocation11], 0  ;;  %s3856_s27 = smov [#allocation7]  }
   0x6   :  { %s43_s28 = sshll.u32 %s3856_s27, 4  ;;  %s44_s28 = int_to_ptr.vmem [resolvable:$true] %s43_s28 }
   0x7   :  { %s3778_s29 = scalar_lea.vmem %s44_s28, 4096  ;;  %p3783_p1 = scmp.lt.s32.totalorder %s44_s28, %s44_s28 }
   0x8   :  { %p3779_p0 = scmp.ne.s32.totalorder %s44_s28, %s3778_s29  ;;  %p3784_p2 = scmp.lt.s32.totalorder %s3778_s29, %s3778_s29 }
   0xa   :  { %p3785_p3 = por %p3784_p2, %p3783_p1 }
   0xc   :  { %p3786_p4 = pnand %p3785_p3, %p3779_p0 }
   0xe   :  { %3789 = shalt.err (!%p3786_p4)
}
   0xf   :  { %s3857_s30 = smov 256   ;;  %s3858_s14 = smov 16  }
  0x10   :  { %49 = dma.hbm_to_vmem [thread:$0]  %s5226_s2, 4096, %s44_s28, [#allocation8], %s3857_s30, %s3857_s30, %s3858_s14  }
  0x11   :  { %s3859_s16 = smov [#allocation5]  }
  0x12   :  { %s29_s17 = sshll.u32 %s3859_s16, 4  ;;  %s30_s17 = int_to_ptr.vmem [resolvable:$true] %s29_s17 }
  0x13   :  { %s3798_s18 = scalar_lea.vmem %s30_s17, 1024  ;;  %p3803_p6 = scmp.lt.s32.totalorder %s30_s17, %s30_s17 }
  0x14   :  { %p3799_p5 = scmp.ne.s32.totalorder %s30_s17, %s3798_s18  ;;  %p3804_p7 = scmp.lt.s32.totalorder %s3798_s18, %s3798_s18 }
  0x16   :  { %p3805_p8 = por %p3804_p7, %p3803_p6 }
  0x18   :  { %p3806_p9 = pnand %p3805_p8, %p3799_p5 }
  0x1a   :  { %3809 = shalt.err (!%p3806_p9)
}
  0x1b   :  { %s3860_s19 = smov 128   ;;  %s3861_s20 = smov 8  }
  0x1c   :  { %35 = dma.hbm_to_vmem [thread:$0]  %s5224_s0, 1024, %s30_s17, [#allocation6], %s3860_s19, %s3860_s19, %s3861_s20  }
  0x1d   :  { %s3862_s23 = smov [#allocation9]   ;;  %s3863_s25 = smov [#allocation10]  }
  0x1e   :  { %s57_s24 = sshll.u32 %s3862_s23, 4  ;;  %s69_s2 = sshll.u32 %s3863_s25, 4  ;;  %s58_s24 = int_to_ptr.vmem [resolvable:$true] %s57_s24  ;;  %s70_s2 = int_to_ptr.vmem [resolvable:$true] %s69_s2 }
  0x1f   :  { %s3818_s26 = scalar_lea.vmem %s58_s24, 4096  ;;  %p3823_p11 = scmp.lt.s32.totalorder %s58_s24, %s58_s24 }
  0x20   :  { %p3819_p10 = scmp.ne.s32.totalorder %s58_s24, %s3818_s26  ;;  %p3824_p12 = scmp.lt.s32.totalorder %s3818_s26, %s3818_s26 }
  0x22   :  { %p3825_p13 = por %p3824_p12, %p3823_p11 }
  0x24   :  { %p3826_p0 = pnand %p3825_p13, %p3819_p10 }
  0x26   :  { %3829 = shalt.err (!%p3826_p0)
}
  0x27   :  { %63 = dma.hbm_to_vmem [thread:$0]  %s5228_s4, 4096, %s58_s24, [#allocation8], %s3857_s30, %s3857_s30, %s3858_s14  }
  0x28   :  { %s3838_s0 = scalar_lea.vmem %s70_s2, 4096  ;;  %p3843_p2 = scmp.lt.s32.totalorder %s70_s2, %s70_s2 }
  0x29   :  { %p3839_p1 = scmp.ne.s32.totalorder %s70_s2, %s3838_s0  ;;  %p3844_p3 = scmp.lt.s32.totalorder %s3838_s0, %s3838_s0 }
  0x2b   :  { %p3845_p4 = por %p3844_p3, %p3843_p2 }
  0x2d   :  { %p3846_p5 = pnand %p3845_p4, %p3839_p1 }
  0x2f   :  { %3849 = shalt.err (!%p3846_p5)
}
  0x30   :  { %75 = dma.hbm_to_vmem [thread:$0]  %s5229_s5, 4096, %s70_s2, [#allocation11], %s3857_s30, %s3857_s30, %s3858_s14  }
  0x31   :  { %3850 = dma.done.wait [#allocation6], 1024  }
  0x32   :  { %3851 = vsyncadd [#allocation6], 4294966272 }
  0x33   :  { %3852 = dma.done.wait [#allocation8], 8192  }
  0x34   :  { %3853 = vsyncadd [#allocation8], 4294959104 }
  0x35   :  { %3854 = dma.done.wait [#allocation11], 4096  }
  0x36   :  { %3855 = vsyncadd [#allocation11], 4294963200  ;;  %v5242_v1 = vmov 0   ;;  %v115_v2 = vld [vmem:[%s5225_s1] sm:$0xff]  ;;  %vm182_vm0 = vcmask 1043456   ;;  %v116_v3 = vld [vmem:[%s5225_s1 + $0x8] sm:$0xff]  ;;  %v119_v56 = vlaneseq }
  0x37   :  { %227 = vmatprep.mubr.bf16.mxu0 %v5242_v1  ;;  %300 = vmatprep.mubr.bf16.mxu1 %v5242_v1  ;;  %v99_v4 = vld [vmem:[#allocation5] sm:$0xff]  ;;  %v3117_v5 = vcombine.high %v115_v2, %v115_v2  ;;  %v3119_v6 = vcombine.high %v116_v3, %v116_v3  ;;  %v3116_v7 = vcombine.low %v115_v2, %v115_v2  ;;  %v100_v9 = vld [vmem:[#allocation5 + $0x8] sm:$0xff]  ;;  %vm169_vm1 = vcmask 64512   ;;  %v101_v21 = vld [vmem:[#allocation5 + $0x10] sm:$0xff] }
  0x38   :  { %v3118_v8 = vcombine.low %v116_v3, %v116_v3  ;;  %v3967_v10 = vld [vmem:[#allocation7 + $0xe4] ss:$16 sps:$4 sm:$0xff]   ;;  %v3287_v13 = vpack.c.bf16 %v100_v9, %v99_v4  ;;  %v3969_v14 = vld [vmem:[#allocation7 + $0xec] ss:$16 sps:$4 sm:$0xff]   ;;  %v3971_v15 = vld [vmem:[#allocation7 + $0xe0] ss:$16 sps:$4 sm:$0xff]  }
  0x39   :  { %3120 = vmatprep.subr.msk.bf16.mxu0 %vm182_vm0, %v3117_v5  ;;  %3125 = vmatprep.subr.msk.bf16.mxu1 %vm182_vm0, %v3119_v6  ;;  %v184_v11 = vsel %vm182_vm0, %v3116_v7, 0  ;;  %v3973_v16 = vld [vmem:[#allocation7 + $0xe8] ss:$16 sps:$4 sm:$0xff]   ;;  %v3977_v17 = vld [vmem:[#allocation7 + $0xc4] ss:$16 sps:$4 sm:$0xff]   ;;  %v4118_v57 = vshrl.u32 %v119_v56, 7 }
  0x3a   :  { %v190_v12 = vsel %vm182_vm0, %v3118_v8, 0  ;;  %210 = vmatpush1.bf16.msra.mxu0 %v184_v11  ;;  %v3979_v18 = vld [vmem:[#allocation7 + $0xcc] ss:$16 sps:$4 sm:$0xff]   ;;  %v3981_v19 = vld [vmem:[#allocation7 + $0xc0] ss:$16 sps:$4 sm:$0xff]   ;;  %vm2244_vm2 = vcmask 7168  }
  0x3b   :  { %283 = vmatpush1.bf16.msra.mxu1 %v190_v12  ;;  %572 = vmatprep.subr.bf16.mxu0 %v3967_v10  ;;  %v3985_v20 = vld [vmem:[#allocation7 + $0xc8] ss:$16 sps:$4 sm:$0xff]   ;;  %v3991_v23 = vld [vmem:[#allocation7 + $0xa4] ss:$16 sps:$4 sm:$0xff]   ;;  %v3993_v24 = vld [vmem:[#allocation7 + $0xac] ss:$16 sps:$4 sm:$0xff]  }
  0x3c   :  { %613 = vmatprep.subr.bf16.mxu1 %v3969_v14  ;;  %v102_v22 = vld [vmem:[#allocation5 + $0x18] sm:$0xff]  ;;  %v3999_v26 = vld [vmem:[#allocation7 + $0xa0] ss:$16 sps:$4 sm:$0xff]   ;;  %v4005_v28 = vld [vmem:[#allocation7 + $0x84] ss:$16 sps:$4 sm:$0xff]   ;;  %5246 = vst [vmem:[#allocation15_spill] sm:$0xff] %v4118_v57 }
  0x3d   :  { %3121 = vmatmul.mubr.msk.bf16.vlgmr.msra.gmra.mxu0 %vm169_vm1, %v3287_v13  ;;  %v3288_v25 = vpack.c.bf16 %v102_v22, %v101_v21  ;;  %v4001_v27 = vld [vmem:[#allocation7 + $0xa8] ss:$16 sps:$4 sm:$0xff]   ;;  %v4007_v29 = vld [vmem:[#allocation7 + $0x8c] ss:$16 sps:$4 sm:$0xff]   ;;  %v4009_v30 = vld [vmem:[#allocation7 + $0x80] ss:$16 sps:$4 sm:$0xff]  }
  0x3e   :  { %3126 = vmatmul.mubr.msk.bf16.vlgmr.msra.gmra.mxu1 %vm169_vm1, %v3287_v13  ;;  %573 = vmatpush1.bf16.msra.mxu0 %v3971_v15  ;;  %v4011_v31 = vld [vmem:[#allocation7 + $0x88] ss:$16 sps:$4 sm:$0xff]   ;;  %v103_v32 = vld [vmem:[#allocation5 + $0x20] sm:$0xff]  ;;  %v4021_v35 = vld [vmem:[#allocation7 + $0x6c] ss:$16 sps:$4 sm:$0xff]   ;;  %v5238_v58 = vsub.s32 2, %v4118_v57 }
  0x3f   :  { %614 = vmatpush1.bf16.msra.mxu1 %v3973_v16  ;;  %574 = vmatprep.subr.bf16.mxu0 %v3977_v17  ;;  %v104_v33 = vld [vmem:[#allocation5 + $0x28] sm:$0xff]  ;;  %v4017_v34 = vld [vmem:[#allocation7 + $0x64] ss:$16 sps:$4 sm:$0xff]   ;;  %v4025_v37 = vld [vmem:[#allocation7 + $0x60] ss:$16 sps:$4 sm:$0xff]   ;;  %v5241_v59 = vsub.s32 0, %v4118_v57 }
  0x40   :  { %615 = vmatprep.subr.bf16.mxu1 %v3979_v18  ;;  %237 = vmatprep.mubr.bf16.mxu0 %v5242_v1  ;;  %v3289_v36 = vpack.c.bf16 %v104_v33, %v103_v32  ;;  %v4029_v38 = vld [vmem:[#allocation7 + $0x68] ss:$16 sps:$4 sm:$0xff]   ;;  %v4033_v39 = vld [vmem:[#allocation7 + $0x44] ss:$16 sps:$4 sm:$0xff]   ;;  %v4035_v40 = vld [vmem:[#allocation7 + $0x4c] ss:$16 sps:$4 sm:$0xff]  }
  0x41   :  { %310 = vmatprep.mubr.bf16.mxu1 %v5242_v1  ;;  %v4039_v41 = vld [vmem:[#allocation7 + $0x40] ss:$16 sps:$4 sm:$0xff]   ;;  %v4043_v42 = vld [vmem:[#allocation7 + $0x48] ss:$16 sps:$4 sm:$0xff]   ;;  %v4047_v45 = vld [vmem:[#allocation7 + $0x24] ss:$16 sps:$4 sm:$0xff]  }
  0x42   :  { %575 = vmatpush1.bf16.msra.mxu0 %v3981_v19  ;;  %v105_v43 = vld [vmem:[#allocation5 + $0x30] sm:$0xff]  ;;  %v106_v44 = vld [vmem:[#allocation5 + $0x38] sm:$0xff]  ;;  %v5239_v60 = vsub.s32 3, %v4118_v57  ;;  %v5240_v2 = vsub.s32 1, %v4118_v57 }
  0x43   :  { %616 = vmatpush1.bf16.msra.mxu1 %v3985_v20  ;;  %576 = vmatprep.subr.bf16.mxu0 %v3991_v23  ;;  %v4049_v46 = vld [vmem:[#allocation7 + $0x2c] ss:$16 sps:$4 sm:$0xff]   ;;  %v4053_v47 = vld [vmem:[#allocation7 + $0x20] ss:$16 sps:$4 sm:$0xff]   ;;  %v4055_v48 = vld [vmem:[#allocation7 + $0x28] ss:$16 sps:$4 sm:$0xff]   ;;  %v3290_v49 = vpack.c.bf16 %v106_v44, %v105_v43 }
  0x44   :  { %617 = vmatprep.subr.bf16.mxu1 %v3993_v24  ;;  %v4057_v50 = vld [vmem:[#allocation7 + $0x4] ss:$16 sps:$4 sm:$0xff]   ;;  %v4059_v51 = vld [vmem:[#allocation7 + $0xc] ss:$16 sps:$4 sm:$0xff]   ;;  %v4065_v52 = vld [vmem:[#allocation7] ss:$16 sps:$4 sm:$0xff]  }
  0x45   :  { %3122 = vmatmul.mubr.msk.bf16.gmra.mxu0 %vm169_vm1, %v3288_v25  ;;  %v4067_v53 = vld [vmem:[#allocation7 + $0x8] ss:$16 sps:$4 sm:$0xff]   ;;  %v405_v54 = vld [vmem:[%s5233_s9] sm:$0xff] }
  0x46   :  { %3127 = vmatmul.mubr.msk.bf16.gmra.mxu1 %vm169_vm1, %v3288_v25  ;;  %577 = vmatpush1.bf16.msra.mxu0 %v3999_v26  ;;  %v411_v55 = vpack.c.bf16 %v405_v54, %v405_v54  ;;  %v117_v61 = vld [vmem:[%s5227_s3] sm:$0xf] }
  0x47   :  { %618 = vmatpush1.bf16.msra.mxu1 %v4001_v27  ;;  %578 = vmatprep.subr.bf16.mxu0 %v4005_v28  ;;  %v4132_v0 = vrot.slane %v117_v61, %v5238_v58  ;;  %v122_v5 = vrot.slane %v117_v61, %v5241_v59  ;;  %v4143_v6 = vrot.slane %v117_v61, %v5239_v60 }
  0x48   :  { %619 = vmatprep.subr.bf16.mxu1 %v4007_v29  ;;  %247 = vmatprep.mubr.bf16.mxu0 %v5242_v1  ;;  %v126_v9 = vrot.slane %v117_v61, %v5240_v2 }
  0x49   :  { %320 = vmatprep.mubr.bf16.mxu1 %v5242_v1 }
  0x4a   :  { %579 = vmatpush1.bf16.msra.mxu0 %v4009_v30 }
  0x4b   :  { %620 = vmatpush1.bf16.msra.mxu1 %v4011_v31  ;;  %580 = vmatprep.subr.bf16.mxu0 %v4017_v34 }
  0x4c   :  { %621 = vmatprep.subr.bf16.mxu1 %v4021_v35 }
  0x4d   :  { %3123 = vmatmul.mubr.msk.bf16.gmra.mxu0 %vm169_vm1, %v3289_v36 }
  0x4e   :  { %3128 = vmatmul.mubr.msk.bf16.gmra.mxu1 %vm169_vm1, %v3289_v36  ;;  %581 = vmatpush1.bf16.msra.mxu0 %v4025_v37 }
  0x4f   :  { %622 = vmatpush1.bf16.msra.mxu1 %v4029_v38  ;;  %582 = vmatprep.subr.bf16.mxu0 %v4033_v39 }
  0x50   :  { %623 = vmatprep.subr.bf16.mxu1 %v4035_v40  ;;  %257 = vmatprep.mubr.bf16.mxu0 %v5242_v1 }
  0x51   :  { %330 = vmatprep.mubr.bf16.mxu1 %v5242_v1 }
  0x52   :  { %583 = vmatpush1.bf16.msra.mxu0 %v4039_v41 }
  0x53   :  { %624 = vmatpush1.bf16.msra.mxu1 %v4043_v42  ;;  %584 = vmatprep.subr.bf16.mxu0 %v4047_v45 }
  0x54   :  { %625 = vmatprep.subr.bf16.mxu1 %v4049_v46 }
  0x55   :  { %3124 = vmatmul.mubr.msk.bf16.gmra.mxu0 %vm169_vm1, %v3290_v49 }
  0x56   :  { %3129 = vmatmul.mubr.msk.bf16.gmra.mxu1 %vm169_vm1, %v3290_v49  ;;  %585 = vmatpush1.bf16.msra.mxu0 %v4053_v47 }
  0x57   :  { %626 = vmatpush1.bf16.msra.mxu1 %v4055_v48  ;;  %586 = vmatprep.subr.bf16.mxu0 %v4057_v50 }
  0x58   :  { %627 = vmatprep.subr.bf16.mxu1 %v4059_v51  ;;  %604 = vmatprep.mubr.bf16.mxu0 %v5242_v1 }
  0x59   :  { %645 = vmatprep.mubr.bf16.mxu1 %v5242_v1 }
  0x5a   :  { %587 = vmatpush1.bf16.msra.mxu0 %v4065_v52 }
  0x5b   :  { %628 = vmatpush1.bf16.msra.mxu1 %v4067_v53  ;;  %689 = vmatprep.subr.bf16.mxu0 %v3967_v10 }
  0x5c   :  { %730 = vmatprep.subr.bf16.mxu1 %v3969_v14 }
  0x5d   :  { %605 = vmatmul.mubr.bf16.vlgmr.msra.gmra.mxu0 %v411_v55 }
  0x5e   :  { %646 = vmatmul.mubr.bf16.vlgmr.msra.gmra.mxu1 %v411_v55  ;;  %690 = vmatpush1.bf16.msra.mxu0 %v3971_v15 }
  0x5f   :  { %731 = vmatpush1.bf16.msra.mxu1 %v3973_v16  ;;  %691 = vmatprep.subr.bf16.mxu0 %v3977_v17 }
  0x60   :  { %732 = vmatprep.subr.bf16.mxu1 %v3979_v18  ;;  %721 = vmatprep.mubr.bf16.mxu0 %v5242_v1 }
  0x61   :  { %762 = vmatprep.mubr.bf16.mxu1 %v5242_v1 }
  0x62   :  { %692 = vmatpush1.bf16.msra.mxu0 %v3981_v19 }
  0x63   :  { %733 = vmatpush1.bf16.msra.mxu1 %v3985_v20  ;;  %693 = vmatprep.subr.bf16.mxu0 %v3991_v23 }
  0x64   :  { %734 = vmatprep.subr.bf16.mxu1 %v3993_v24 }
  0x66   :  { %694 = vmatpush1.bf16.msra.mxu0 %v3999_v26 }
  0x67   :  { %735 = vmatpush1.bf16.msra.mxu1 %v4001_v27  ;;  %695 = vmatprep.subr.bf16.mxu0 %v4005_v28 }
  0x68   :  { %736 = vmatprep.subr.bf16.mxu1 %v4007_v29 }
  0x6a   :  { %696 = vmatpush1.bf16.msra.mxu0 %v4009_v30 }
  0x6b   :  { %737 = vmatpush1.bf16.msra.mxu1 %v4011_v31  ;;  %697 = vmatprep.subr.bf16.mxu0 %v4017_v34 }
  0x6c   :  { %738 = vmatprep.subr.bf16.mxu1 %v4021_v35 }
  0x6e   :  { %698 = vmatpush1.bf16.msra.mxu0 %v4025_v37 }
  0x6f   :  { %739 = vmatpush1.bf16.msra.mxu1 %v4029_v38  ;;  %699 = vmatprep.subr.bf16.mxu0 %v4033_v39 }
  0x70   :  { %740 = vmatprep.subr.bf16.mxu1 %v4035_v40 }
  0x72   :  { %700 = vmatpush1.bf16.msra.mxu0 %v4039_v41 }
  0x73   :  { %741 = vmatpush1.bf16.msra.mxu1 %v4043_v42  ;;  %701 = vmatprep.subr.bf16.mxu0 %v4047_v45 }
  0x74   :  { %742 = vmatprep.subr.bf16.mxu1 %v4049_v46 }
  0x76   :  { %702 = vmatpush1.bf16.msra.mxu0 %v4053_v47 }
  0x77   :  { %743 = vmatpush1.bf16.msra.mxu1 %v4055_v48  ;;  %703 = vmatprep.subr.bf16.mxu0 %v4057_v50 }
  0x78   :  { %744 = vmatprep.subr.bf16.mxu1 %v4059_v51 }
  0x7a   :  { %704 = vmatpush1.bf16.msra.mxu0 %v4065_v52 }
  0x7b   :  { %745 = vmatpush1.bf16.msra.mxu1 %v4067_v53  ;;  %807 = vmatprep.subr.bf16.mxu0 %v3967_v10 }
  0x7c   :  { %848 = vmatprep.subr.bf16.mxu1 %v3969_v14 }
  0xfd   :  { %v4126_v62 = vpop.f32.mrf.mxu0 }
  0xfe   :  { %v4128_v63 = vpop.f32.mrf.mxu1 }
  0xff   :  { %v4135_v3 = vpop.f32.mrf.mxu0 }
 0x100   :  { %v4137_v4 = vpop.f32.mrf.mxu1 }
 0x101   :  { %v233_v7 = vpop.f32.mrf.mxu0 }
 0x102   :  { %v306_v8 = vpop.f32.mrf.mxu1  ;;  %v4147_v11 = vadd.f32 %v233_v7, %v122_v5 }
 0x103   :  { %v4150_v12 = vadd.f32 %v306_v8, %v4132_v0  ;;  %v235_v13 = vpop.f32.mrf.mxu0 }
 0x104   :  { %v308_v21 = vpop.f32.mrf.mxu1  ;;  %v4152_v22 = vadd.f32 %v235_v13, %v126_v9 }
 0x105   :  { %v4155_v25 = vadd.f32 %v308_v21, %v4143_v6  ;;  %v239_v32 = vpop.f32.mrf.mxu0 }
 0x106   :  { %v312_v33 = vpop.f32.mrf.mxu1  ;;  %v4157_v36 = vadd.f32 %v239_v32, %v122_v5 }
 0x107   :  { %v4160_v43 = vadd.f32 %v312_v33, %v4132_v0  ;;  %v241_v44 = vpop.f32.mrf.mxu0 }
 0x108   :  { %v314_v49 = vpop.f32.mrf.mxu1  ;;  %v4162_v54 = vadd.f32 %v241_v44, %v126_v9 }
 0x109   :  { %5247 = vst [vmem:[#allocation16_spill] sm:$0xff] %v4160_v43  ;;  %v4165_v55 = vadd.f32 %v314_v49, %v4143_v6  ;;  %v243_v56 = vpop.f32.mrf.mxu0 }
 0x10a   :  { %v316_v61 = vpop.f32.mrf.mxu1  ;;  %v4167_v7 = vadd.f32 %v243_v56, %v122_v5 }
 0x10b   :  { %v4170_v8 = vadd.f32 %v316_v61, %v4132_v0  ;;  %v245_v13 = vpop.f32.mrf.mxu0 }
 0x10c   :  { %5248 = vst [vmem:[#allocation17_spill] sm:$0xff] %v4167_v7  ;;  %v318_v21 = vpop.f32.mrf.mxu1  ;;  %v4172_v32 = vadd.f32 %v245_v13, %v126_v9 }
 0x10d   :  { %5249 = vst [vmem:[#allocation18_spill] sm:$0xff] %v4170_v8  ;;  %v4175_v33 = vadd.f32 %v318_v21, %v4143_v6  ;;  %v249_v58 = vpop.f32.mrf.mxu0 }
 0x10e   :  { %5250 = vst [vmem:[#allocation19_spill] sm:$0xff] %v4172_v32  ;;  %v322_v44 = vpop.f32.mrf.mxu1  ;;  %v4177_v60 = vadd.f32 %v249_v58, %v122_v5 }
 0x10f   :  { %5251 = vst [vmem:[#allocation20_spill] sm:$0xff] %v4175_v33  ;;  %v4180_v49 = vadd.f32 %v322_v44, %v4132_v0  ;;  %v251_v2 = vpop.f32.mrf.mxu0 }
 0x110   :  { %5252 = vst [vmem:[#allocation21_spill] sm:$0xff] %v4177_v60  ;;  %v324_v56 = vpop.f32.mrf.mxu1  ;;  %v4182_v59 = vadd.f32 %v251_v2, %v126_v9 }
 0x111   :  { %5253 = vst [vmem:[#allocation22_spill] sm:$0xff] %v4180_v49  ;;  %v4185_v61 = vadd.f32 %v324_v56, %v4143_v6  ;;  %v253_v1 = vpop.f32.mrf.mxu0 }
 0x112   :  { %5254 = vst [vmem:[#allocation23_spill] sm:$0xff] %v4182_v59  ;;  %v326_v13 = vpop.f32.mrf.mxu1  ;;  %v4187_v57 = vadd.f32 %v253_v1, %v122_v5 }
 0x113   :  { %5255 = vst [vmem:[#allocation24_spill] sm:$0xff] %v4185_v61  ;;  %v4190_v21 = vadd.f32 %v326_v13, %v4132_v0  ;;  %v255_v8 = vpop.f32.mrf.mxu0 }
 0x114   :  { %5256 = vst [vmem:[#allocation25_spill] sm:$0xff] %v4187_v57  ;;  %v328_v58 = vpop.f32.mrf.mxu1  ;;  %v4192_v60 = vadd.f32 %v255_v8, %v126_v9 }
 0x115   :  { %5257 = vst [vmem:[#allocation26_spill] sm:$0xff] %v4190_v21  ;;  %v4195_v44 = vadd.f32 %v328_v58, %v4143_v6  ;;  %v259_v49 = vpop.f32.mrf.mxu0 }
 0x116   :  { %5258 = vst [vmem:[#allocation27_spill] sm:$0xff] %v4192_v60  ;;  %v332_v2 = vpop.f32.mrf.mxu1  ;;  %v4197_v59 = vadd.f32 %v259_v49, %v122_v5 }
 0x117   :  { %5259 = vst [vmem:[#allocation28_spill] sm:$0xff] %v4195_v44  ;;  %v4200_v56 = vadd.f32 %v332_v2, %v4132_v0  ;;  %v261_v61 = vpop.f32.mrf.mxu0 }
 0x118   :  { %5260 = vst [vmem:[#allocation29_spill] sm:$0xff] %v4197_v59  ;;  %v334_v1 = vpop.f32.mrf.mxu1  ;;  %v4202_v57 = vadd.f32 %v261_v61, %v126_v9  ;;  %v230_v59 = vadd.f32 %v4126_v62, %v122_v5 }
 0x119   :  { %5261 = vst [vmem:[#allocation30_spill] sm:$0xff] %v4200_v56  ;;  %v4205_v13 = vadd.f32 %v334_v1, %v4143_v6  ;;  %v263_v21 = vpop.f32.mrf.mxu0  ;;  %v232_v1 = vadd.f32 %v4135_v3, %v126_v9 }
 0x11a   :  { %5262 = vst [vmem:[#allocation31_spill] sm:$0xff] %v4202_v57  ;;  %v336_v8 = vpop.f32.mrf.mxu1  ;;  %v4207_v60 = vadd.f32 %v263_v21, %v122_v5  ;;  %v305_v5 = vadd.f32 %v4137_v4, %v4143_v6  ;;  %v406_v4 = vld [vmem:[%s5234_s10] sm:$0xff] }
 0x11b   :  { %5263 = vst [vmem:[#allocation32_spill] sm:$0xff] %v4205_v13  ;;  %v4210_v58 = vadd.f32 %v336_v8, %v4132_v0  ;;  %v265_v44 = vpop.f32.mrf.mxu0 }
 0x11c   :  { %5264 = vst [vmem:[#allocation33_spill] sm:$0xff] %v4207_v60  ;;  %v338_v49 = vpop.f32.mrf.mxu1  ;;  %v4213_v2 = vadd.f32 %v265_v44, %v126_v9 }
 0x11d   :  { %5265 = vst [vmem:[#allocation34_spill] sm:$0xff] %v4210_v58  ;;  %v4216_v56 = vadd.f32 %v338_v49, %v4143_v6  ;;  %v606_v61 = vpop.f32.mrf.mxu0  ;;  %v303_v49 = vadd.f32 %v4128_v63, %v4132_v0 }
 0x11e   :  { %v647_v57 = vpop.f32.mrf.mxu1  ;;  %v654_v13 = vadd.f32 %v606_v61, %v230_v59 }
 0x11f   :  { %v608_v33 = vpop.f32.mrf.mxu0  ;;  %v656_v9 = vadd.f32 %v647_v57, %v303_v49 }
 0x120   :  { %v649_v21 = vpop.f32.mrf.mxu1  ;;  %v3162_v60 = vmul.f32 -1.442695, %v654_v13  ;;  %v655_v32 = vadd.f32 %v608_v33, %v232_v1 }
 0x121   :  { %v610_v8 = vpop.f32.mrf.mxu0  ;;  %v657_v44 = vadd.f32 %v649_v21, %v305_v5 }
 0x122   :  { %v651_v58 = vpop.f32.mrf.mxu1  ;;  %3448 = vpow2.f32 %v3162_v60  ;;  %v3163_v7 = vmul.f32 -1.442695, %v655_v32 }
 0x123   :  { %v611_v43 = vpop.f32.mrf.mxu0  ;;  %v3164_v3 = vmul.f32 -1.442695, %v657_v44 }
 0x124   :  { %v652_v62 = vpop.f32.mrf.mxu1  ;;  %3450 = vpow2.f32 %v3163_v7 }
 0x125   :  { %3452 = vpow2.f32 %v3164_v3  ;;  %v5266_v62 = vmov 0  }
 0x12f   :  { %v3449_v59 = vpop.eup %3448 }
 0x130   :  { %v661_v61 = vadd.f32 1.0, %v3449_v59 }
 0x131   :  { %v3451_v13 = vpop.eup %3450 }
 0x132   :  { %3454 = vrcp.f32 %v661_v61  ;;  %v667_v33 = vadd.f32 1.0, %v3451_v13  ;;  %v3453_v60 = vpop.eup %3452 }
 0x133   :  { %3456 = vtanh.f32 %v656_v9  ;;  %v674_v32 = vadd.f32 1.0, %v3453_v60 }
 0x134   :  { %3458 = vrcp.f32 %v667_v33 }
 0x135   :  { %3460 = vrcp.f32 %v674_v32 }
 0x13f   :  { %v3455_v43 = vpop.eup %3454 }
 0x140   :  { %v3457_v6 = vpop.eup %3456 }
 0x141   :  { %v3459_v7 = vpop.eup %3458  ;;  %v678_v63 = vmul.f32 %v3457_v6, %v3455_v43 }
 0x142   :  { %v677_v0 = vmul.f32 %v3459_v7, %v406_v4  ;;  %v3461_v57 = vpop.eup %3460 }
 0x144   :  { %v4226_v58 = vadd.f32 %v678_v63, %v677_v0 }
 0x146   :  { %3462 = vtanh.f32 %v4226_v58 }
 0x153   :  { %v3463_v1 = vpop.eup %3462 }
 0x154   :  { %v4229_v21 = vmul.f32 %v3463_v1, %v3461_v57 }
 0x156   :  { %v688_v8 = vpack.c.bf16 %v4229_v21, %v4229_v21 }
 0x158   :  { %722 = vmatmul.mubr.bf16.vlgmr.msra.gmra.mxu0 %v688_v8  ;;  %763 = vmatmul.mubr.bf16.vlgmr.msra.gmra.mxu1 %v688_v8 }
 0x159   :  { %808 = vmatpush1.bf16.msra.mxu0 %v3971_v15  ;;  %849 = vmatpush1.bf16.msra.mxu1 %v3973_v16 }
 0x15a   :  { %809 = vmatprep.subr.bf16.mxu0 %v3977_v17  ;;  %850 = vmatprep.subr.bf16.mxu1 %v3979_v18 }
 0x15b   :  { %839 = vmatprep.mubr.bf16.mxu0 %v5266_v62  ;;  %880 = vmatprep.mubr.bf16.mxu1 %v5266_v62 }
 0x15d   :  { %810 = vmatpush1.bf16.msra.mxu0 %v3981_v19  ;;  %851 = vmatpush1.bf16.msra.mxu1 %v3985_v20 }
 0x15e   :  { %811 = vmatprep.subr.bf16.mxu0 %v3991_v23  ;;  %852 = vmatprep.subr.bf16.mxu1 %v3993_v24 }
 0x161   :  { %812 = vmatpush1.bf16.msra.mxu0 %v3999_v26  ;;  %853 = vmatpush1.bf16.msra.mxu1 %v4001_v27 }
 0x162   :  { %813 = vmatprep.subr.bf16.mxu0 %v4005_v28  ;;  %854 = vmatprep.subr.bf16.mxu1 %v4007_v29 }
 0x165   :  { %814 = vmatpush1.bf16.msra.mxu0 %v4009_v30  ;;  %855 = vmatpush1.bf16.msra.mxu1 %v4011_v31 }
 0x166   :  { %815 = vmatprep.subr.bf16.mxu0 %v4017_v34  ;;  %856 = vmatprep.subr.bf16.mxu1 %v4021_v35 }
 0x169   :  { %816 = vmatpush1.bf16.msra.mxu0 %v4025_v37  ;;  %857 = vmatpush1.bf16.msra.mxu1 %v4029_v38 }
 0x16a   :  { %817 = vmatprep.subr.bf16.mxu0 %v4033_v39  ;;  %858 = vmatprep.subr.bf16.mxu1 %v4035_v40 }
 0x16d   :  { %818 = vmatpush1.bf16.msra.mxu0 %v4039_v41  ;;  %859 = vmatpush1.bf16.msra.mxu1 %v4043_v42 }
 0x16e   :  { %819 = vmatprep.subr.bf16.mxu0 %v4047_v45  ;;  %860 = vmatprep.subr.bf16.mxu1 %v4049_v46 }
 0x171   :  { %820 = vmatpush1.bf16.msra.mxu0 %v4053_v47  ;;  %861 = vmatpush1.bf16.msra.mxu1 %v4055_v48 }
 0x172   :  { %821 = vmatprep.subr.bf16.mxu0 %v4057_v50  ;;  %862 = vmatprep.subr.bf16.mxu1 %v4059_v51 }
 0x175   :  { %822 = vmatpush1.bf16.msra.mxu0 %v4065_v52  ;;  %863 = vmatpush1.bf16.msra.mxu1 %v4067_v53 }
 0x176   :  { %925 = vmatprep.subr.bf16.mxu0 %v3967_v10  ;;  %966 = vmatprep.subr.bf16.mxu1 %v3969_v14 }
 0x218   :  { %v723_v5 = vpop.f32.mrf.mxu0  ;;  %v764_v44 = vpop.f32.mrf.mxu1 }
 0x219   :  { %v771_v49 = vadd.f32 %v723_v5, %v4147_v11  ;;  %v773_v7 = vadd.f32 %v764_v44, %v4150_v12 }
 0x21a   :  { %v725_v3 = vpop.f32.mrf.mxu0  ;;  %v766_v59 = vpop.f32.mrf.mxu1 }
 0x21b   :  { %v3165_v9 = vmul.f32 -1.442695, %v771_v49  ;;  %v772_v61 = vadd.f32 %v725_v3, %v4152_v22  ;;  %v774_v6 = vadd.f32 %v766_v59, %v4155_v25 }
 0x21c   :  { %v727_v13 = vpop.f32.mrf.mxu0  ;;  %v768_v33 = vpop.f32.mrf.mxu1 }
 0x21d   :  { %3464 = vpow2.f32 %v3165_v9  ;;  %v3166_v60 = vmul.f32 -1.442695, %v772_v61  ;;  %v3167_v32 = vmul.f32 -1.442695, %v774_v6 }
 0x21e   :  { %v728_v43 = vpop.f32.mrf.mxu0  ;;  %v769_v4 = vpop.f32.mrf.mxu1 }
 0x21f   :  { %3466 = vpow2.f32 %v3166_v60 }
 0x220   :  { %3468 = vtanh.f32 %v773_v7 }
 0x221   :  { %3470 = vpow2.f32 %v3167_v32 }
 0x22a   :  { %v3465_v63 = vpop.eup %3464 }
 0x22b   :  { %v778_v0 = vadd.f32 1.0, %v3465_v63 }
 0x22c   :  { %v3467_v11 = vpop.eup %3466 }
 0x22d   :  { %3472 = vrcp.f32 %v778_v0  ;;  %v784_v57 = vadd.f32 1.0, %v3467_v11  ;;  %v3469_v22 = vpop.eup %3468 }
 0x22e   :  { %v3471_v1 = vpop.eup %3470 }
 0x22f   :  { %3474 = vrcp.f32 %v784_v57  ;;  %v791_v3 = vadd.f32 1.0, %v3471_v1  ;;  %v5267_v57 = vld [vmem:[#allocation16_spill] sm:$0xff] }
 0x231   :  { %3476 = vrcp.f32 %v791_v3 }
 0x23a   :  { %v3473_v8 = vpop.eup %3472 }
 0x23b   :  { %v795_v5 = vmul.f32 %v3473_v8, %v3469_v22 }
 0x23c   :  { %v3475_v49 = vpop.eup %3474 }
 0x23d   :  { %v794_v9 = vmul.f32 %v3475_v49, %v4226_v58 }
 0x23e   :  { %v3477_v12 = vpop.eup %3476 }
 0x23f   :  { %v4272_v25 = vadd.f32 %v795_v5, %v794_v9 }
 0x241   :  { %3478 = vtanh.f32 %v4272_v25 }
 0x24e   :  { %v3479_v44 = vpop.eup %3478 }
 0x24f   :  { %v4275_v59 = vmul.f32 %v3479_v44, %v3477_v12 }
 0x251   :  { %v806_v61 = vpack.c.bf16 %v4275_v59, %v4275_v59 }
 0x253   :  { %840 = vmatmul.mubr.bf16.vlgmr.msra.gmra.mxu0 %v806_v61  ;;  %881 = vmatmul.mubr.bf16.vlgmr.msra.gmra.mxu1 %v806_v61 }
 0x254   :  { %926 = vmatpush1.bf16.msra.mxu0 %v3971_v15  ;;  %967 = vmatpush1.bf16.msra.mxu1 %v3973_v16 }
 0x255   :  { %927 = vmatprep.subr.bf16.mxu0 %v3977_v17  ;;  %968 = vmatprep.subr.bf16.mxu1 %v3979_v18 }
 0x256   :  { %957 = vmatprep.mubr.bf16.mxu0 %v5266_v62  ;;  %998 = vmatprep.mubr.bf16.mxu1 %v5266_v62 }
 0x258   :  { %928 = vmatpush1.bf16.msra.mxu0 %v3981_v19  ;;  %969 = vmatpush1.bf16.msra.mxu1 %v3985_v20 }
 0x259   :  { %929 = vmatprep.subr.bf16.mxu0 %v3991_v23  ;;  %970 = vmatprep.subr.bf16.mxu1 %v3993_v24 }
 0x25c   :  { %930 = vmatpush1.bf16.msra.mxu0 %v3999_v26  ;;  %971 = vmatpush1.bf16.msra.mxu1 %v4001_v27 }
 0x25d   :  { %931 = vmatprep.subr.bf16.mxu0 %v4005_v28  ;;  %972 = vmatprep.subr.bf16.mxu1 %v4007_v29 }
 0x260   :  { %932 = vmatpush1.bf16.msra.mxu0 %v4009_v30  ;;  %973 = vmatpush1.bf16.msra.mxu1 %v4011_v31 }
 0x261   :  { %933 = vmatprep.subr.bf16.mxu0 %v4017_v34  ;;  %974 = vmatprep.subr.bf16.mxu1 %v4021_v35 }
 0x264   :  { %934 = vmatpush1.bf16.msra.mxu0 %v4025_v37  ;;  %975 = vmatpush1.bf16.msra.mxu1 %v4029_v38 }
 0x265   :  { %935 = vmatprep.subr.bf16.mxu0 %v4033_v39  ;;  %976 = vmatprep.subr.bf16.mxu1 %v4035_v40 }
 0x268   :  { %936 = vmatpush1.bf16.msra.mxu0 %v4039_v41  ;;  %977 = vmatpush1.bf16.msra.mxu1 %v4043_v42 }
 0x269   :  { %937 = vmatprep.subr.bf16.mxu0 %v4047_v45  ;;  %978 = vmatprep.subr.bf16.mxu1 %v4049_v46 }
 0x26c   :  { %938 = vmatpush1.bf16.msra.mxu0 %v4053_v47  ;;  %979 = vmatpush1.bf16.msra.mxu1 %v4055_v48 }
 0x26d   :  { %939 = vmatprep.subr.bf16.mxu0 %v4057_v50  ;;  %980 = vmatprep.subr.bf16.mxu1 %v4059_v51 }
 0x270   :  { %940 = vmatpush1.bf16.msra.mxu0 %v4065_v52  ;;  %981 = vmatpush1.bf16.msra.mxu1 %v4067_v53 }
 0x271   :  { %1043 = vmatprep.subr.bf16.mxu0 %v3967_v10  ;;  %1084 = vmatprep.subr.bf16.mxu1 %v3969_v14 }
 0x313   :  { %v841_v58 = vpop.f32.mrf.mxu0  ;;  %v882_v13 = vpop.f32.mrf.mxu1 }
 0x314   :  { %v889_v33 = vadd.f32 %v841_v58, %v4157_v36  ;;  %v891_v14 = vadd.f32 %v882_v13, %v5267_v57 }
 0x315   :  { %v843_v60 = vpop.f32.mrf.mxu0  ;;  %v884_v43 = vpop.f32.mrf.mxu1 }
 0x316   :  { %v3168_v4 = vmul.f32 -1.442695, %v889_v33  ;;  %v890_v6 = vadd.f32 %v843_v60, %v4162_v54  ;;  %v892_v10 = vadd.f32 %v884_v43, %v4165_v55 }
 0x317   :  { %v845_v7 = vpop.f32.mrf.mxu0  ;;  %v886_v32 = vpop.f32.mrf.mxu1 }
 0x318   :  { %3480 = vpow2.f32 %v3168_v4  ;;  %v3169_v63 = vmul.f32 -1.442695, %v890_v6  ;;  %v3170_v22 = vmul.f32 -1.442695, %v892_v10 }
 0x319   :  { %v846_v0 = vpop.f32.mrf.mxu0  ;;  %v887_v11 = vpop.f32.mrf.mxu1 }
 0x31a   :  { %3482 = vpow2.f32 %v3169_v63 }
 0x31b   :  { %3484 = vtanh.f32 %v891_v14 }
 0x31c   :  { %3486 = vpow2.f32 %v3170_v22 }
 0x325   :  { %v3481_v1 = vpop.eup %3480 }
 0x326   :  { %v896_v8 = vadd.f32 1.0, %v3481_v1 }
 0x327   :  { %v3483_v36 = vpop.eup %3482 }
 0x328   :  { %3488 = vrcp.f32 %v896_v8  ;;  %v902_v5 = vadd.f32 1.0, %v3483_v36  ;;  %v3485_v54 = vpop.eup %3484 }
 0x329   :  { %v3487_v49 = vpop.eup %3486 }
 0x32a   :  { %3490 = vrcp.f32 %v902_v5  ;;  %v909_v44 = vadd.f32 1.0, %v3487_v49 }
 0x32c   :  { %3492 = vrcp.f32 %v909_v44  ;;  %v4384_v44 = vld [vmem:[#allocation7 + $0xcc] ss:$16 sps:$4 sm:$0xff]  }
 0x335   :  { %v3489_v3 = vpop.eup %3488 }
 0x336   :  { %v913_v9 = vmul.f32 %v3489_v3, %v3485_v54  ;;  %v4375_v3 = vld [vmem:[#allocation7 + $0xe0] ss:$16 sps:$4 sm:$0xff]  }
 0x337   :  { %v3491_v12 = vpop.eup %3490 }
 0x338   :  { %v912_v61 = vmul.f32 %v3491_v12, %v4272_v25  ;;  %v5271_v25 = vld [vmem:[#allocation18_spill] sm:$0xff]  ;;  %v4381_v12 = vld [vmem:[#allocation7 + $0xc4] ss:$16 sps:$4 sm:$0xff]  }
 0x339   :  { %v3493_v58 = vpop.eup %3492 }
 0x33a   :  { %v4318_v55 = vadd.f32 %v913_v9, %v912_v61  ;;  %v4378_v9 = vld [vmem:[#allocation7 + $0xe8] ss:$16 sps:$4 sm:$0xff]   ;;  %v4389_v61 = vld [vmem:[#allocation7 + $0xc0] ss:$16 sps:$4 sm:$0xff]  }
 0x33c   :  { %3494 = vtanh.f32 %v4318_v55 }
 0x349   :  { %v3495_v13 = vpop.eup %3494 }
 0x34a   :  { %v4321_v33 = vmul.f32 %v3495_v13, %v3493_v58  ;;  %v4395_v58 = vld [vmem:[#allocation7 + $0xa4] ss:$16 sps:$4 sm:$0xff]   ;;  %v4398_v13 = vld [vmem:[#allocation7 + $0xac] ss:$16 sps:$4 sm:$0xff]  }
 0x34c   :  { %v924_v60 = vpack.c.bf16 %v4321_v33, %v4321_v33 }
 0x34e   :  { %958 = vmatmul.mubr.bf16.vlgmr.msra.gmra.mxu0 %v924_v60  ;;  %999 = vmatmul.mubr.bf16.vlgmr.msra.gmra.mxu1 %v924_v60  ;;  %v4401_v60 = vld [vmem:[#allocation7 + $0xa0] ss:$16 sps:$4 sm:$0xff]  }
 0x34f   :  { %1044 = vmatpush1.bf16.msra.mxu0 %v3971_v15  ;;  %1085 = vmatpush1.bf16.msra.mxu1 %v3973_v16  ;;  %v4357_v15 = vld [vmem:[#allocation7 + $0xe4] ss:$16 sps:$4 sm:$0xff]   ;;  %v4360_v16 = vld [vmem:[#allocation7 + $0xec] ss:$16 sps:$4 sm:$0xff]  }
 0x350   :  { %1045 = vmatprep.subr.bf16.mxu0 %v3977_v17  ;;  %1086 = vmatprep.subr.bf16.mxu1 %v3979_v18 }
 0x351   :  { %1075 = vmatprep.mubr.bf16.mxu0 %v5266_v62  ;;  %1116 = vmatprep.mubr.bf16.mxu1 %v5266_v62 }
 0x353   :  { %1046 = vmatpush1.bf16.msra.mxu0 %v3981_v19  ;;  %1087 = vmatpush1.bf16.msra.mxu1 %v3985_v20  ;;  %v5268_v19 = vld [vmem:[#allocation17_spill] sm:$0xff] }
 0x354   :  { %1047 = vmatprep.subr.bf16.mxu0 %v3991_v23  ;;  %1088 = vmatprep.subr.bf16.mxu1 %v3993_v24 }
 0x357   :  { %1048 = vmatpush1.bf16.msra.mxu0 %v3999_v26  ;;  %1089 = vmatpush1.bf16.msra.mxu1 %v4001_v27  ;;  %v5269_v27 = vld [vmem:[#allocation19_spill] sm:$0xff] }
 0x358   :  { %1049 = vmatprep.subr.bf16.mxu0 %v4005_v28  ;;  %1090 = vmatprep.subr.bf16.mxu1 %v4007_v29 }
 0x35b   :  { %1050 = vmatpush1.bf16.msra.mxu0 %v4009_v30  ;;  %1091 = vmatpush1.bf16.msra.mxu1 %v4011_v31 }
 0x35c   :  { %1051 = vmatprep.subr.bf16.mxu0 %v4017_v34  ;;  %1092 = vmatprep.subr.bf16.mxu1 %v4021_v35 }
 0x35f   :  { %1052 = vmatpush1.bf16.msra.mxu0 %v4025_v37  ;;  %1093 = vmatpush1.bf16.msra.mxu1 %v4029_v38  ;;  %v5270_v37 = vld [vmem:[#allocation20_spill] sm:$0xff] }
 0x360   :  { %1053 = vmatprep.subr.bf16.mxu0 %v4033_v39  ;;  %1094 = vmatprep.subr.bf16.mxu1 %v4035_v40 }
 0x363   :  { %1054 = vmatpush1.bf16.msra.mxu0 %v4039_v41  ;;  %1095 = vmatpush1.bf16.msra.mxu1 %v4043_v42 }
 0x364   :  { %1055 = vmatprep.subr.bf16.mxu0 %v4047_v45  ;;  %1096 = vmatprep.subr.bf16.mxu1 %v4049_v46 }
 0x367   :  { %1056 = vmatpush1.bf16.msra.mxu0 %v4053_v47  ;;  %1097 = vmatpush1.bf16.msra.mxu1 %v4055_v48 }
 0x368   :  { %1057 = vmatprep.subr.bf16.mxu0 %v4057_v50  ;;  %1098 = vmatprep.subr.bf16.mxu1 %v4059_v51 }
 0x36b   :  { %1058 = vmatpush1.bf16.msra.mxu0 %v4065_v52  ;;  %1099 = vmatpush1.bf16.msra.mxu1 %v4067_v53 }
 0x36c   :  { %1161 = vmatprep.subr.bf16.mxu0 %v4357_v15  ;;  %1202 = vmatprep.subr.bf16.mxu1 %v4360_v16 }
 0x40e   :  { %v959_v17 = vpop.f32.mrf.mxu0  ;;  %v1000_v18 = vpop.f32.mrf.mxu1 }
 0x40f   :  { %v1007_v20 = vadd.f32 %v959_v17, %v5268_v19  ;;  %v1009_v43 = vadd.f32 %v1000_v18, %v5271_v25  ;;  %v4404_v17 = vld [vmem:[#allocation7 + $0xa8] ss:$16 sps:$4 sm:$0xff]   ;;  %v4407_v18 = vld [vmem:[#allocation7 + $0x84] ss:$16 sps:$4 sm:$0xff]   ;;  %v4410_v19 = vld [vmem:[#allocation7 + $0x8c] ss:$16 sps:$4 sm:$0xff]  }
 0x410   :  { %v961_v23 = vpop.f32.mrf.mxu0  ;;  %v1002_v24 = vpop.f32.mrf.mxu1 }
 0x411   :  { %v3171_v26 = vmul.f32 -1.442695, %v1007_v20  ;;  %v1008_v28 = vadd.f32 %v961_v23, %v5269_v27  ;;  %v1010_v38 = vadd.f32 %v1002_v24, %v5270_v37  ;;  %v4413_v20 = vld [vmem:[#allocation7 + $0x80] ss:$16 sps:$4 sm:$0xff]   ;;  %v4416_v23 = vld [vmem:[#allocation7 + $0x88] ss:$16 sps:$4 sm:$0xff]  }
 0x412   :  { %v963_v29 = vpop.f32.mrf.mxu0  ;;  %v1004_v30 = vpop.f32.mrf.mxu1  ;;  %v4419_v24 = vld [vmem:[#allocation7 + $0x64] ss:$16 sps:$4 sm:$0xff]   ;;  %v4425_v27 = vld [vmem:[#allocation7 + $0x60] ss:$16 sps:$4 sm:$0xff]  }
 0x413   :  { %3496 = vpow2.f32 %v3171_v26  ;;  %v3172_v31 = vmul.f32 -1.442695, %v1008_v28  ;;  %v3173_v4 = vmul.f32 -1.442695, %v1010_v38  ;;  %v4422_v26 = vld [vmem:[#allocation7 + $0x6c] ss:$16 sps:$4 sm:$0xff]  }
 0x414   :  { %v964_v34 = vpop.f32.mrf.mxu0  ;;  %v1005_v35 = vpop.f32.mrf.mxu1  ;;  %v4428_v28 = vld [vmem:[#allocation7 + $0x68] ss:$16 sps:$4 sm:$0xff]  }
 0x415   :  { %3498 = vpow2.f32 %v3172_v31  ;;  %v5275_v35 = vld [vmem:[#allocation22_spill] sm:$0xff] }
 0x416   :  { %3500 = vtanh.f32 %v1009_v43 }
 0x417   :  { %3502 = vpow2.f32 %v3173_v4 }
 0x420   :  { %v3497_v6 = vpop.eup %3496 }
 0x421   :  { %v1014_v7 = vadd.f32 1.0, %v3497_v6 }
 0x422   :  { %v3499_v32 = vpop.eup %3498 }
 0x423   :  { %3504 = vrcp.f32 %v1014_v7  ;;  %v1020_v63 = vadd.f32 1.0, %v3499_v32  ;;  %v3501_v0 = vpop.eup %3500 }
 0x424   :  { %v3503_v11 = vpop.eup %3502 }
 0x425   :  { %3506 = vrcp.f32 %v1020_v63  ;;  %v1027_v22 = vadd.f32 1.0, %v3503_v11 }
 0x427   :  { %3508 = vrcp.f32 %v1027_v22 }
 0x430   :  { %v3505_v10 = vpop.eup %3504 }
 0x431   :  { %v1031_v57 = vmul.f32 %v3505_v10, %v3501_v0 }
 0x432   :  { %v3507_v14 = vpop.eup %3506 }
 0x433   :  { %v1030_v1 = vmul.f32 %v3507_v14, %v4318_v55  ;;  %v4392_v55 = vld [vmem:[#allocation7 + $0xc8] ss:$16 sps:$4 sm:$0xff]  }
 0x434   :  { %v3509_v36 = vpop.eup %3508 }
 0x435   :  { %v4368_v8 = vadd.f32 %v1031_v57, %v1030_v1 }
 0x437   :  { %3510 = vtanh.f32 %v4368_v8 }
 0x444   :  { %v3511_v5 = vpop.eup %3510 }
 0x445   :  { %v4371_v54 = vmul.f32 %v3511_v5, %v3509_v36 }
 0x447   :  { %v1042_v49 = vpack.c.bf16 %v4371_v54, %v4371_v54 }
 0x449   :  { %1076 = vmatmul.mubr.bf16.vlgmr.msra.gmra.mxu0 %v1042_v49  ;;  %1117 = vmatmul.mubr.bf16.vlgmr.msra.gmra.mxu1 %v1042_v49  ;;  %v4480_v49 = vld [vmem:[#allocation7 + $0x4c] ss:$16 sps:$4 sm:$0xff]  }
 0x44a   :  { %1162 = vmatpush1.bf16.msra.mxu0 %v4375_v3  ;;  %1203 = vmatpush1.bf16.msra.mxu1 %v4378_v9 }
 0x44b   :  { %1163 = vmatprep.subr.bf16.mxu0 %v4381_v12  ;;  %1204 = vmatprep.subr.bf16.mxu1 %v4384_v44 }
 0x44c   :  { %1193 = vmatprep.mubr.bf16.mxu0 %v5266_v62  ;;  %1234 = vmatprep.mubr.bf16.mxu1 %v5266_v62 }
 0x44e   :  { %1164 = vmatpush1.bf16.msra.mxu0 %v4389_v61  ;;  %1205 = vmatpush1.bf16.msra.mxu1 %v4392_v55 }
 0x44f   :  { %1165 = vmatprep.subr.bf16.mxu0 %v4395_v58  ;;  %1206 = vmatprep.subr.bf16.mxu1 %v4398_v13 }
 0x452   :  { %1166 = vmatpush1.bf16.msra.mxu0 %v4401_v60  ;;  %1207 = vmatpush1.bf16.msra.mxu1 %v4404_v17 }
 0x453   :  { %1167 = vmatprep.subr.bf16.mxu0 %v4407_v18  ;;  %1208 = vmatprep.subr.bf16.mxu1 %v4410_v19 }
 0x456   :  { %1168 = vmatpush1.bf16.msra.mxu0 %v4413_v20  ;;  %1209 = vmatpush1.bf16.msra.mxu1 %v4416_v23 }
 0x457   :  { %1169 = vmatprep.subr.bf16.mxu0 %v4419_v24  ;;  %1210 = vmatprep.subr.bf16.mxu1 %v4422_v26 }
 0x45a   :  { %1170 = vmatpush1.bf16.msra.mxu0 %v4425_v27  ;;  %1211 = vmatpush1.bf16.msra.mxu1 %v4428_v28 }
 0x45b   :  { %1171 = vmatprep.subr.bf16.mxu0 %v4033_v39  ;;  %1212 = vmatprep.subr.bf16.mxu1 %v4035_v40 }
 0x45e   :  { %1172 = vmatpush1.bf16.msra.mxu0 %v4039_v41  ;;  %1213 = vmatpush1.bf16.msra.mxu1 %v4043_v42  ;;  %v5272_v41 = vld [vmem:[#allocation21_spill] sm:$0xff] }
 0x45f   :  { %1173 = vmatprep.subr.bf16.mxu0 %v4047_v45  ;;  %1214 = vmatprep.subr.bf16.mxu1 %v4049_v46 }
 0x462   :  { %1174 = vmatpush1.bf16.msra.mxu0 %v4053_v47  ;;  %1215 = vmatpush1.bf16.msra.mxu1 %v4055_v48  ;;  %v5273_v48 = vld [vmem:[#allocation23_spill] sm:$0xff] }
 0x463   :  { %1175 = vmatprep.subr.bf16.mxu0 %v4057_v50  ;;  %1216 = vmatprep.subr.bf16.mxu1 %v4059_v51 }
 0x466   :  { %1176 = vmatpush1.bf16.msra.mxu0 %v4065_v52  ;;  %1217 = vmatpush1.bf16.msra.mxu1 %v4067_v53  ;;  %v5274_v53 = vld [vmem:[#allocation24_spill] sm:$0xff] }
 0x467   :  { %1279 = vmatprep.subr.bf16.mxu0 %v4357_v15  ;;  %1320 = vmatprep.subr.bf16.mxu1 %v4360_v16 }
 0x509   :  { %v1077_v39 = vpop.f32.mrf.mxu0  ;;  %v1118_v40 = vpop.f32.mrf.mxu1 }
 0x50a   :  { %v1125_v42 = vadd.f32 %v1077_v39, %v5272_v41  ;;  %v1127_v37 = vadd.f32 %v1118_v40, %v5275_v35  ;;  %v4483_v39 = vld [vmem:[#allocation7 + $0x40] ss:$16 sps:$4 sm:$0xff]   ;;  %v4486_v40 = vld [vmem:[#allocation7 + $0x48] ss:$16 sps:$4 sm:$0xff]   ;;  %v4489_v41 = vld [vmem:[#allocation7 + $0x24] ss:$16 sps:$4 sm:$0xff]  }
 0x50b   :  { %v1079_v45 = vpop.f32.mrf.mxu0  ;;  %v1120_v46 = vpop.f32.mrf.mxu1 }
 0x50c   :  { %v3174_v47 = vmul.f32 -1.442695, %v1125_v42  ;;  %v1126_v29 = vadd.f32 %v1079_v45, %v5273_v48  ;;  %v1128_v34 = vadd.f32 %v1120_v46, %v5274_v53  ;;  %v4492_v42 = vld [vmem:[#allocation7 + $0x2c] ss:$16 sps:$4 sm:$0xff]   ;;  %v4495_v45 = vld [vmem:[#allocation7 + $0x20] ss:$16 sps:$4 sm:$0xff]  }
 0x50d   :  { %v1081_v50 = vpop.f32.mrf.mxu0  ;;  %v1122_v30 = vpop.f32.mrf.mxu1  ;;  %v4498_v46 = vld [vmem:[#allocation7 + $0x28] ss:$16 sps:$4 sm:$0xff]   ;;  %v4504_v48 = vld [vmem:[#allocation7 + $0xc] ss:$16 sps:$4 sm:$0xff]  }
 0x50e   :  { %3512 = vpow2.f32 %v3174_v47  ;;  %v3175_v51 = vmul.f32 -1.442695, %v1126_v29  ;;  %v3176_v38 = vmul.f32 -1.442695, %v1128_v34  ;;  %v4501_v47 = vld [vmem:[#allocation7 + $0x4] ss:$16 sps:$4 sm:$0xff]  }
 0x50f   :  { %v1082_v52 = vpop.f32.mrf.mxu0  ;;  %v1123_v31 = vpop.f32.mrf.mxu1  ;;  %v4507_v29 = vld [vmem:[#allocation7] ss:$16 sps:$4 sm:$0xff]   ;;  %v4510_v50 = vld [vmem:[#allocation7 + $0x8] ss:$16 sps:$4 sm:$0xff]  }
 0x510   :  { %3514 = vpow2.f32 %v3175_v51  ;;  %v5276_v52 = vld [vmem:[#allocation25_spill] sm:$0xff] }
 0x511   :  { %3516 = vtanh.f32 %v1127_v37  ;;  %v5277_v37 = vld [vmem:[#allocation27_spill] sm:$0xff] }
 0x512   :  { %3518 = vpow2.f32 %v3176_v38 }
 0x51b   :  { %v3513_v25 = vpop.eup %3512 }
 0x51c   :  { %v1132_v43 = vadd.f32 1.0, %v3513_v25 }
 0x51d   :  { %v3515_v4 = vpop.eup %3514 }
 0x51e   :  { %3520 = vrcp.f32 %v1132_v43  ;;  %v1138_v6 = vadd.f32 1.0, %v3515_v4  ;;  %v3517_v7 = vpop.eup %3516 }
 0x51f   :  { %v3519_v32 = vpop.eup %3518 }
 0x520   :  { %3522 = vrcp.f32 %v1138_v6  ;;  %v1145_v10 = vadd.f32 1.0, %v3519_v32  ;;  %v5278_v32 = vld [vmem:[#allocation28_spill] sm:$0xff] }
 0x522   :  { %3524 = vrcp.f32 %v1145_v10 }
 0x52b   :  { %v3521_v63 = vpop.eup %3520 }
 0x52c   :  { %v1149_v0 = vmul.f32 %v3521_v63, %v3517_v7  ;;  %v5279_v63 = vld [vmem:[#allocation26_spill] sm:$0xff] }
 0x52d   :  { %v3523_v11 = vpop.eup %3522 }
 0x52e   :  { %v1148_v57 = vmul.f32 %v3523_v11, %v4368_v8  ;;  %v4477_v8 = vld [vmem:[#allocation7 + $0x44] ss:$16 sps:$4 sm:$0xff]  }
 0x52f   :  { %v3525_v22 = vpop.eup %3524 }
 0x530   :  { %v4450_v14 = vadd.f32 %v1149_v0, %v1148_v57 }
 0x532   :  { %3526 = vtanh.f32 %v4450_v14 }
 0x53f   :  { %v3527_v1 = vpop.eup %3526 }
 0x540   :  { %v4453_v36 = vmul.f32 %v3527_v1, %v3525_v22 }
 0x542   :  { %v1160_v5 = vpack.c.bf16 %v4453_v36, %v4453_v36 }
 0x544   :  { %1194 = vmatmul.mubr.bf16.vlgmr.msra.gmra.mxu0 %v1160_v5  ;;  %1235 = vmatmul.mubr.bf16.vlgmr.msra.gmra.mxu1 %v1160_v5 }
 0x545   :  { %1280 = vmatpush1.bf16.msra.mxu0 %v4375_v3  ;;  %1321 = vmatpush1.bf16.msra.mxu1 %v4378_v9 }
 0x546   :  { %1281 = vmatprep.subr.bf16.mxu0 %v4381_v12  ;;  %1322 = vmatprep.subr.bf16.mxu1 %v4384_v44 }
 0x547   :  { %1311 = vmatprep.mubr.bf16.mxu0 %v5266_v62  ;;  %1352 = vmatprep.mubr.bf16.mxu1 %v5266_v62 }
 0x549   :  { %1282 = vmatpush1.bf16.msra.mxu0 %v4389_v61  ;;  %1323 = vmatpush1.bf16.msra.mxu1 %v4392_v55 }
 0x54a   :  { %1283 = vmatprep.subr.bf16.mxu0 %v4395_v58  ;;  %1324 = vmatprep.subr.bf16.mxu1 %v4398_v13 }
 0x54d   :  { %1284 = vmatpush1.bf16.msra.mxu0 %v4401_v60  ;;  %1325 = vmatpush1.bf16.msra.mxu1 %v4404_v17 }
 0x54e   :  { %1285 = vmatprep.subr.bf16.mxu0 %v4407_v18  ;;  %1326 = vmatprep.subr.bf16.mxu1 %v4410_v19 }
 0x551   :  { %1286 = vmatpush1.bf16.msra.mxu0 %v4413_v20  ;;  %1327 = vmatpush1.bf16.msra.mxu1 %v4416_v23 }
 0x552   :  { %1287 = vmatprep.subr.bf16.mxu0 %v4419_v24  ;;  %1328 = vmatprep.subr.bf16.mxu1 %v4422_v26 }
 0x555   :  { %1288 = vmatpush1.bf16.msra.mxu0 %v4425_v27  ;;  %1329 = vmatpush1.bf16.msra.mxu1 %v4428_v28 }
 0x556   :  { %1289 = vmatprep.subr.bf16.mxu0 %v4477_v8  ;;  %1330 = vmatprep.subr.bf16.mxu1 %v4480_v49 }
 0x559   :  { %1290 = vmatpush1.bf16.msra.mxu0 %v4483_v39  ;;  %1331 = vmatpush1.bf16.msra.mxu1 %v4486_v40 }
 0x55a   :  { %1291 = vmatprep.subr.bf16.mxu0 %v4489_v41  ;;  %1332 = vmatprep.subr.bf16.mxu1 %v4492_v42 }
 0x55d   :  { %1292 = vmatpush1.bf16.msra.mxu0 %v4495_v45  ;;  %1333 = vmatpush1.bf16.msra.mxu1 %v4498_v46 }
 0x55e   :  { %1293 = vmatprep.subr.bf16.mxu0 %v4501_v47  ;;  %1334 = vmatprep.subr.bf16.mxu1 %v4504_v48 }
 0x561   :  { %1294 = vmatpush1.bf16.msra.mxu0 %v4507_v29  ;;  %1335 = vmatpush1.bf16.msra.mxu1 %v4510_v50 }
 0x562   :  { %1397 = vmatprep.subr.bf16.mxu0 %v4357_v15  ;;  %1438 = vmatprep.subr.bf16.mxu1 %v4360_v16 }
 0x604   :  { %v1195_v30 = vpop.f32.mrf.mxu0  ;;  %v1236_v51 = vpop.f32.mrf.mxu1 }
 0x605   :  { %v1243_v31 = vadd.f32 %v1195_v30, %v5276_v52  ;;  %v1245_v16 = vadd.f32 %v1236_v51, %v5279_v63  ;;  %v3355_v63 = vld [vmem:[#allocation9 + $0xe8] ss:$16 sps:$4 sm:$0xff]  }
 0x606   :  { %v1197_v53 = vpop.f32.mrf.mxu0  ;;  %v1238_v34 = vpop.f32.mrf.mxu1 }
 0x607   :  { %v3177_v35 = vmul.f32 -1.442695, %v1243_v31  ;;  %v1244_v38 = vadd.f32 %v1197_v53, %v5277_v37  ;;  %v1246_v15 = vadd.f32 %v1238_v34, %v5278_v32 }
 0x608   :  { %v1199_v25 = vpop.f32.mrf.mxu0  ;;  %v1240_v43 = vpop.f32.mrf.mxu1 }
 0x609   :  { %3528 = vpow2.f32 %v3177_v35  ;;  %v3178_v4 = vmul.f32 -1.442695, %v1244_v38  ;;  %v3179_v0 = vmul.f32 -1.442695, %v1246_v15  ;;  %v3352_v15 = vld [vmem:[#allocation9 + $0xe0] ss:$16 sps:$4 sm:$0xff]  }
 0x60a   :  { %v1200_v6 = vpop.f32.mrf.mxu0  ;;  %v1241_v7 = vpop.f32.mrf.mxu1 }
 0x60b   :  { %3530 = vpow2.f32 %v3178_v4 }
 0x60c   :  { %3532 = vtanh.f32 %v1245_v16 }
 0x60d   :  { %3534 = vpow2.f32 %v3179_v0  ;;  %v3360_v0 = vld [vmem:[#allocation9 + $0xc4] ss:$16 sps:$4 sm:$0xff]  }
 0x616   :  { %v3529_v11 = vpop.eup %3528 }
 0x617   :  { %v1250_v10 = vadd.f32 1.0, %v3529_v11  ;;  %v3363_v11 = vld [vmem:[#allocation9 + $0xcc] ss:$16 sps:$4 sm:$0xff]  }
 0x618   :  { %v3531_v57 = vpop.eup %3530 }
 0x619   :  { %3536 = vrcp.f32 %v1250_v10  ;;  %v1256_v22 = vadd.f32 1.0, %v3531_v57  ;;  %v3533_v1 = vpop.eup %3532  ;;  %v3358_v10 = vld [vmem:[#allocation9 + $0xc0] ss:$16 sps:$4 sm:$0xff]   ;;  %v3361_v57 = vld [vmem:[#allocation9 + $0xc8] ss:$16 sps:$4 sm:$0xff]  }
 0x61a   :  { %v3535_v5 = vpop.eup %3534 }
 0x61b   :  { %3538 = vrcp.f32 %v1256_v22  ;;  %v1263_v53 = vadd.f32 1.0, %v3535_v5  ;;  %v3366_v22 = vld [vmem:[#allocation9 + $0xa4] ss:$16 sps:$4 sm:$0xff]   ;;  %v3364_v5 = vld [vmem:[#allocation9 + $0xa0] ss:$16 sps:$4 sm:$0xff]  }
 0x61d   :  { %3540 = vrcp.f32 %v1263_v53  ;;  %v3370_v53 = vld [vmem:[#allocation9 + $0x80] ss:$16 sps:$4 sm:$0xff]  }
 0x626   :  { %v3537_v30 = vpop.eup %3536 }
 0x627   :  { %v1267_v52 = vmul.f32 %v3537_v30, %v3533_v1  ;;  %v3369_v1 = vld [vmem:[#allocation9 + $0xac] ss:$16 sps:$4 sm:$0xff]   ;;  %v3367_v30 = vld [vmem:[#allocation9 + $0xa8] ss:$16 sps:$4 sm:$0xff]  }
 0x628   :  { %v3539_v31 = vpop.eup %3538 }
 0x629   :  { %v1266_v35 = vmul.f32 %v3539_v31, %v4450_v14  ;;  %v5283_v14 = vld [vmem:[#allocation30_spill] sm:$0xff] }
 0x62a   :  { %v3541_v51 = vpop.eup %3540  ;;  %v3375_v31 = vld [vmem:[#allocation9 + $0x8c] ss:$16 sps:$4 sm:$0xff]  }
 0x62b   :  { %v4520_v34 = vadd.f32 %v1267_v52, %v1266_v35  ;;  %v3372_v52 = vld [vmem:[#allocation9 + $0x84] ss:$16 sps:$4 sm:$0xff]   ;;  %v3373_v35 = vld [vmem:[#allocation9 + $0x88] ss:$16 sps:$4 sm:$0xff]  }
 0x62d   :  { %3542 = vtanh.f32 %v4520_v34 }
 0x63a   :  { %v3543_v37 = vpop.eup %3542 }
 0x63b   :  { %v4523_v38 = vmul.f32 %v3543_v37, %v3541_v51  ;;  %v3381_v51 = vld [vmem:[#allocation9 + $0x6c] ss:$16 sps:$4 sm:$0xff]   ;;  %v3376_v37 = vld [vmem:[#allocation9 + $0x60] ss:$16 sps:$4 sm:$0xff]  }
 0x63d   :  { %v1278_v25 = vpack.c.bf16 %v4523_v38, %v4523_v38 }
 0x63f   :  { %1312 = vmatmul.mubr.bf16.vlgmr.msra.gmra.mxu0 %v1278_v25  ;;  %1353 = vmatmul.mubr.bf16.vlgmr.msra.gmra.mxu1 %v1278_v25  ;;  %v3379_v25 = vld [vmem:[#allocation9 + $0x68] ss:$16 sps:$4 sm:$0xff]  }
 0x640   :  { %1398 = vmatpush1.bf16.msra.mxu0 %v4375_v3  ;;  %1439 = vmatpush1.bf16.msra.mxu1 %v4378_v9  ;;  %v3354_v3 = vld [vmem:[#allocation9 + $0xe4] ss:$16 sps:$4 sm:$0xff]   ;;  %v3357_v9 = vld [vmem:[#allocation9 + $0xec] ss:$16 sps:$4 sm:$0xff]  }
 0x641   :  { %1399 = vmatprep.subr.bf16.mxu0 %v4381_v12  ;;  %1440 = vmatprep.subr.bf16.mxu1 %v4384_v44 }
 0x642   :  { %1429 = vmatprep.mubr.bf16.mxu0 %v5266_v62  ;;  %1470 = vmatprep.mubr.bf16.mxu1 %v5266_v62 }
 0x644   :  { %1400 = vmatpush1.bf16.msra.mxu0 %v4389_v61  ;;  %1441 = vmatpush1.bf16.msra.mxu1 %v4392_v55  ;;  %v5280_v61 = vld [vmem:[#allocation29_spill] sm:$0xff] }
 0x645   :  { %1401 = vmatprep.subr.bf16.mxu0 %v4395_v58  ;;  %1442 = vmatprep.subr.bf16.mxu1 %v4398_v13 }
 0x648   :  { %1402 = vmatpush1.bf16.msra.mxu0 %v4401_v60  ;;  %1443 = vmatpush1.bf16.msra.mxu1 %v4404_v17  ;;  %v5281_v17 = vld [vmem:[#allocation31_spill] sm:$0xff] }
 0x649   :  { %1403 = vmatprep.subr.bf16.mxu0 %v4407_v18  ;;  %1444 = vmatprep.subr.bf16.mxu1 %v4410_v19 }
 0x64c   :  { %1404 = vmatpush1.bf16.msra.mxu0 %v4413_v20  ;;  %1445 = vmatpush1.bf16.msra.mxu1 %v4416_v23 }
 0x64d   :  { %1405 = vmatprep.subr.bf16.mxu0 %v4419_v24  ;;  %1446 = vmatprep.subr.bf16.mxu1 %v4422_v26 }
 0x650   :  { %1406 = vmatpush1.bf16.msra.mxu0 %v4425_v27  ;;  %1447 = vmatpush1.bf16.msra.mxu1 %v4428_v28  ;;  %v5282_v27 = vld [vmem:[#allocation32_spill] sm:$0xff] }
 0x651   :  { %1407 = vmatprep.subr.bf16.mxu0 %v4477_v8  ;;  %1448 = vmatprep.subr.bf16.mxu1 %v4480_v49 }
 0x654   :  { %1408 = vmatpush1.bf16.msra.mxu0 %v4483_v39  ;;  %1449 = vmatpush1.bf16.msra.mxu1 %v4486_v40 }
 0x655   :  { %1409 = vmatprep.subr.bf16.mxu0 %v4489_v41  ;;  %1450 = vmatprep.subr.bf16.mxu1 %v4492_v42 }
 0x658   :  { %1410 = vmatpush1.bf16.msra.mxu0 %v4495_v45  ;;  %1451 = vmatpush1.bf16.msra.mxu1 %v4498_v46 }
 0x659   :  { %1411 = vmatprep.subr.bf16.mxu0 %v4501_v47  ;;  %1452 = vmatprep.subr.bf16.mxu1 %v4504_v48 }
 0x65c   :  { %1412 = vmatpush1.bf16.msra.mxu0 %v4507_v29  ;;  %1453 = vmatpush1.bf16.msra.mxu1 %v4510_v50 }
 0x65d   :  { %1737 = vmatprep.subr.bf16.mxu0 %v3354_v3  ;;  %1810 = vmatprep.subr.bf16.mxu1 %v3357_v9  ;;  %v3384_v3 = vld [vmem:[#allocation9 + $0x44] ss:$16 sps:$4 sm:$0xff]   ;;  %v3387_v9 = vld [vmem:[#allocation9 + $0x4c] ss:$16 sps:$4 sm:$0xff]  }
 0x6ff   :  { %v1313_v12 = vpop.f32.mrf.mxu0  ;;  %v1354_v44 = vpop.f32.mrf.mxu1 }
 0x700   :  { %v1361_v55 = vadd.f32 %v1313_v12, %v5280_v61  ;;  %v1363_v8 = vadd.f32 %v1354_v44, %v5283_v14  ;;  %v3382_v12 = vld [vmem:[#allocation9 + $0x40] ss:$16 sps:$4 sm:$0xff]   ;;  %v3385_v44 = vld [vmem:[#allocation9 + $0x48] ss:$16 sps:$4 sm:$0xff]   ;;  %v3390_v61 = vld [vmem:[#allocation9 + $0x24] ss:$16 sps:$4 sm:$0xff]  }
 0x701   :  { %v1315_v58 = vpop.f32.mrf.mxu0  ;;  %v1356_v13 = vpop.f32.mrf.mxu1  ;;  %v4611_v14 = vld [vmem:[#allocation10 + $0xac] ss:$16 sps:$4 sm:$0xff]  }
 0x702   :  { %v3180_v60 = vmul.f32 -1.442695, %v1361_v55  ;;  %v1362_v18 = vadd.f32 %v1315_v58, %v5281_v17  ;;  %v1364_v28 = vadd.f32 %v1356_v13, %v5282_v27  ;;  %v3393_v55 = vld [vmem:[#allocation9 + $0x2c] ss:$16 sps:$4 sm:$0xff]   ;;  %v3388_v58 = vld [vmem:[#allocation9 + $0x20] ss:$16 sps:$4 sm:$0xff]  }
 0x703   :  { %v1317_v19 = vpop.f32.mrf.mxu0  ;;  %v1358_v20 = vpop.f32.mrf.mxu1  ;;  %v3391_v13 = vld [vmem:[#allocation9 + $0x28] ss:$16 sps:$4 sm:$0xff]   ;;  %v3399_v17 = vld [vmem:[#allocation9 + $0xc] ss:$16 sps:$4 sm:$0xff]  }
 0x704   :  { %3544 = vpow2.f32 %v3180_v60  ;;  %v3181_v23 = vmul.f32 -1.442695, %v1362_v18  ;;  %v3182_v49 = vmul.f32 -1.442695, %v1364_v28  ;;  %v3396_v60 = vld [vmem:[#allocation9 + $0x4] ss:$16 sps:$4 sm:$0xff]   ;;  %v1519_v20 = vpack.c.bf16 %v4275_v59, %v4229_v21 }
 0x705   :  { %v1318_v24 = vpop.f32.mrf.mxu0  ;;  %v1359_v26 = vpop.f32.mrf.mxu1  ;;  %v3394_v18 = vld [vmem:[#allocation9] ss:$16 sps:$4 sm:$0xff]   ;;  %v3397_v19 = vld [vmem:[#allocation9 + $0x8] ss:$16 sps:$4 sm:$0xff]   ;;  %v4585_v21 = vld [vmem:[#allocation10 + $0xe4] ss:$16 sps:$4 sm:$0xff]  }
 0x706   :  { %3546 = vpow2.f32 %v3181_v23  ;;  %v1520_v23 = vpack.c.bf16 %v4371_v54, %v4321_v33  ;;  %v1521_v24 = vpack.c.bf16 %v4523_v38, %v4453_v36  ;;  %v4587_v59 = vld [vmem:[#allocation10 + $0xec] ss:$16 sps:$4 sm:$0xff]   ;;  %v4589_v33 = vld [vmem:[#allocation10 + $0xe0] ss:$16 sps:$4 sm:$0xff]   ;;  %v4591_v54 = vld [vmem:[#allocation10 + $0xe8] ss:$16 sps:$4 sm:$0xff]  }
 0x707   :  { %3548 = vtanh.f32 %v1363_v8  ;;  %v4597_v36 = vld [vmem:[#allocation10 + $0xc4] ss:$16 sps:$4 sm:$0xff]   ;;  %v4599_v38 = vld [vmem:[#allocation10 + $0xcc] ss:$16 sps:$4 sm:$0xff]   ;;  %v4601_v26 = vld [vmem:[#allocation10 + $0xc0] ss:$16 sps:$4 sm:$0xff]  }
 0x708   :  { %3550 = vpow2.f32 %v3182_v49  ;;  %v4603_v27 = vld [vmem:[#allocation10 + $0xc8] ss:$16 sps:$4 sm:$0xff]   ;;  %v4609_v28 = vld [vmem:[#allocation10 + $0xa4] ss:$16 sps:$4 sm:$0xff]   ;;  %v4613_v8 = vld [vmem:[#allocation10 + $0xa0] ss:$16 sps:$4 sm:$0xff]  }
 0x709   :  { %v4615_v49 = vld [vmem:[#allocation10 + $0xa8] ss:$16 sps:$4 sm:$0xff]  }
 0x711   :  { %v3545_v39 = vpop.eup %3544 }
 0x712   :  { %v1368_v40 = vadd.f32 1.0, %v3545_v39  ;;  %v4621_v39 = vld [vmem:[#allocation10 + $0x84] ss:$16 sps:$4 sm:$0xff]  }
 0x713   :  { %v3547_v41 = vpop.eup %3546 }
 0x714   :  { %3552 = vrcp.f32 %v1368_v40  ;;  %v1374_v42 = vadd.f32 1.0, %v3547_v41  ;;  %v3549_v45 = vpop.eup %3548  ;;  %v4623_v40 = vld [vmem:[#allocation10 + $0x8c] ss:$16 sps:$4 sm:$0xff]   ;;  %v4625_v41 = vld [vmem:[#allocation10 + $0x80] ss:$16 sps:$4 sm:$0xff]  }
 0x715   :  { %v3551_v46 = vpop.eup %3550 }
 0x716   :  { %3554 = vrcp.f32 %v1374_v42  ;;  %v1381_v50 = vadd.f32 1.0, %v3551_v46  ;;  %v4627_v42 = vld [vmem:[#allocation10 + $0x88] ss:$16 sps:$4 sm:$0xff]   ;;  %v4635_v46 = vld [vmem:[#allocation10 + $0x6c] ss:$16 sps:$4 sm:$0xff]  }
 0x718   :  { %3556 = vrcp.f32 %v1381_v50  ;;  %v4647_v50 = vld [vmem:[#allocation10 + $0x4c] ss:$16 sps:$4 sm:$0xff]  }
 0x721   :  { %v3553_v47 = vpop.eup %3552 }
 0x722   :  { %v1385_v48 = vmul.f32 %v3553_v47, %v3549_v45  ;;  %v4633_v45 = vld [vmem:[#allocation10 + $0x64] ss:$16 sps:$4 sm:$0xff]   ;;  %v4637_v47 = vld [vmem:[#allocation10 + $0x60] ss:$16 sps:$4 sm:$0xff]  }
 0x723   :  { %v3555_v29 = vpop.eup %3554 }
 0x724   :  { %v1384_v43 = vmul.f32 %v3555_v29, %v4520_v34  ;;  %v3378_v34 = vld [vmem:[#allocation9 + $0x64] ss:$16 sps:$4 sm:$0xff]  }
 0x725   :  { %v3557_v6 = vpop.eup %3556  ;;  %v4645_v29 = vld [vmem:[#allocation10 + $0x44] ss:$16 sps:$4 sm:$0xff]  }
 0x726   :  { %v4564_v4 = vadd.f32 %v1385_v48, %v1384_v43  ;;  %v4639_v48 = vld [vmem:[#allocation10 + $0x68] ss:$16 sps:$4 sm:$0xff]   ;;  %v4649_v43 = vld [vmem:[#allocation10 + $0x40] ss:$16 sps:$4 sm:$0xff]  }
 0x728   :  { %3558 = vtanh.f32 %v4564_v4 }
 0x735   :  { %v3559_v7 = vpop.eup %3558 }
 0x736   :  { %v4567_v32 = vmul.f32 %v3559_v7, %v3557_v6  ;;  %v4651_v6 = vld [vmem:[#allocation10 + $0x48] ss:$16 sps:$4 sm:$0xff]   ;;  %v4657_v7 = vld [vmem:[#allocation10 + $0x24] ss:$16 sps:$4 sm:$0xff]  }
 0x738   :  { %v1396_v16 = vpack.c.bf16 %v4567_v32, %v4567_v32 }
 0x73a   :  { %1430 = vmatmul.mubr.bf16.vlgmr.msra.gmra.mxu0 %v1396_v16  ;;  %1471 = vmatmul.mubr.bf16.vlgmr.msra.gmra.mxu1 %v1396_v16  ;;  %v4663_v16 = vld [vmem:[#allocation10 + $0x28] ss:$16 sps:$4 sm:$0xff]  }
 0x73b   :  { %1738 = vmatpush1.bf16.msra.mxu0 %v3352_v15  ;;  %1811 = vmatpush1.bf16.msra.mxu1 %v3355_v63  ;;  %v4659_v15 = vld [vmem:[#allocation10 + $0x2c] ss:$16 sps:$4 sm:$0xff]   ;;  %v4661_v63 = vld [vmem:[#allocation10 + $0x20] ss:$16 sps:$4 sm:$0xff]  }
 0x73c   :  { %1739 = vmatprep.subr.bf16.mxu0 %v3360_v0  ;;  %1812 = vmatprep.subr.bf16.mxu1 %v3363_v11  ;;  %v4665_v0 = vld [vmem:[#allocation10 + $0x4] ss:$16 sps:$4 sm:$0xff]   ;;  %v4669_v11 = vld [vmem:[#allocation10 + $0xc] ss:$16 sps:$4 sm:$0xff]  }
 0x73d   :  { %1769 = vmatprep.mubr.bf16.mxu0 %v5266_v62  ;;  %1842 = vmatprep.mubr.bf16.mxu1 %v5266_v62 }
 0x73f   :  { %1740 = vmatpush1.bf16.msra.mxu0 %v3358_v10  ;;  %1813 = vmatpush1.bf16.msra.mxu1 %v3361_v57  ;;  %v4673_v10 = vld [vmem:[#allocation10] ss:$16 sps:$4 sm:$0xff]   ;;  %v4675_v57 = vld [vmem:[#allocation10 + $0x8] ss:$16 sps:$4 sm:$0xff]  }
 0x740   :  { %1741 = vmatprep.subr.bf16.mxu0 %v3366_v22  ;;  %1814 = vmatprep.subr.bf16.mxu1 %v3369_v1 }
 0x743   :  { %1742 = vmatpush1.bf16.msra.mxu0 %v3364_v5  ;;  %1815 = vmatpush1.bf16.msra.mxu1 %v3367_v30  ;;  %v5284_v5 = vld [vmem:[#allocation33_spill] sm:$0xff] }
 0x744   :  { %1743 = vmatprep.subr.bf16.mxu0 %v3372_v52  ;;  %1816 = vmatprep.subr.bf16.mxu1 %v3375_v31 }
 0x747   :  { %1744 = vmatpush1.bf16.msra.mxu0 %v3370_v53  ;;  %1817 = vmatpush1.bf16.msra.mxu1 %v3373_v35 }
 0x748   :  { %1745 = vmatprep.subr.bf16.mxu0 %v3378_v34  ;;  %1818 = vmatprep.subr.bf16.mxu1 %v3381_v51 }
 0x74b   :  { %1746 = vmatpush1.bf16.msra.mxu0 %v3376_v37  ;;  %1819 = vmatpush1.bf16.msra.mxu1 %v3379_v25 }
 0x74c   :  { %1747 = vmatprep.subr.bf16.mxu0 %v3384_v3  ;;  %1820 = vmatprep.subr.bf16.mxu1 %v3387_v9 }
 0x74f   :  { %1748 = vmatpush1.bf16.msra.mxu0 %v3382_v12  ;;  %1821 = vmatpush1.bf16.msra.mxu1 %v3385_v44  ;;  %v5285_v12 = vld [vmem:[#allocation34_spill] sm:$0xff] }
 0x750   :  { %1749 = vmatprep.subr.bf16.mxu0 %v3390_v61  ;;  %1822 = vmatprep.subr.bf16.mxu1 %v3393_v55 }
 0x753   :  { %1750 = vmatpush1.bf16.msra.mxu0 %v3388_v58  ;;  %1823 = vmatpush1.bf16.msra.mxu1 %v3391_v13 }
 0x754   :  { %1751 = vmatprep.subr.bf16.mxu0 %v3396_v60  ;;  %1824 = vmatprep.subr.bf16.mxu1 %v3399_v17 }
 0x757   :  { %1752 = vmatpush1.bf16.msra.mxu0 %v3394_v18  ;;  %1825 = vmatpush1.bf16.msra.mxu1 %v3397_v19 }
 0x758   :  { %2130 = vmatprep.subr.bf16.mxu0 %v4585_v21  ;;  %2171 = vmatprep.subr.bf16.mxu1 %v4587_v59 }
 0x75a   :  { %1770 = vmatmul.mubr.bf16.vlgmr.msra.gmra.mxu0 %v1519_v20  ;;  %1843 = vmatmul.mubr.bf16.vlgmr.msra.gmra.mxu1 %v1519_v20 }
 0x75b   :  { %1779 = vmatprep.mubr.bf16.mxu0 %v5266_v62  ;;  %1852 = vmatprep.mubr.bf16.mxu1 %v5266_v62 }
 0x75c   :  { %2131 = vmatpush1.bf16.msra.mxu0 %v4589_v33  ;;  %2172 = vmatpush1.bf16.msra.mxu1 %v4591_v54 }
 0x75d   :  { %2132 = vmatprep.subr.bf16.mxu0 %v4597_v36  ;;  %2173 = vmatprep.subr.bf16.mxu1 %v4599_v38 }
 0x760   :  { %2133 = vmatpush1.bf16.msra.mxu0 %v4601_v26  ;;  %2174 = vmatpush1.bf16.msra.mxu1 %v4603_v27 }
 0x761   :  { %2134 = vmatprep.subr.bf16.mxu0 %v4609_v28  ;;  %2175 = vmatprep.subr.bf16.mxu1 %v4611_v14 }
 0x762   :  { %1780 = vmatmul.mubr.bf16.gmra.mxu0 %v1520_v23  ;;  %1853 = vmatmul.mubr.bf16.gmra.mxu1 %v1520_v23 }
 0x763   :  { %1789 = vmatprep.mubr.bf16.mxu0 %v5266_v62  ;;  %1862 = vmatprep.mubr.bf16.mxu1 %v5266_v62 }
 0x764   :  { %2135 = vmatpush1.bf16.msra.mxu0 %v4613_v8  ;;  %2176 = vmatpush1.bf16.msra.mxu1 %v4615_v49 }
 0x765   :  { %2136 = vmatprep.subr.bf16.mxu0 %v4621_v39  ;;  %2177 = vmatprep.subr.bf16.mxu1 %v4623_v40 }
 0x768   :  { %2137 = vmatpush1.bf16.msra.mxu0 %v4625_v41  ;;  %2178 = vmatpush1.bf16.msra.mxu1 %v4627_v42 }
 0x769   :  { %2138 = vmatprep.subr.bf16.mxu0 %v4633_v45  ;;  %2179 = vmatprep.subr.bf16.mxu1 %v4635_v46 }
 0x76a   :  { %1790 = vmatmul.mubr.bf16.gmra.mxu0 %v1521_v24  ;;  %1863 = vmatmul.mubr.bf16.gmra.mxu1 %v1521_v24 }
 0x76b   :  { %1799 = vmatprep.mubr.bf16.mxu0 %v5266_v62  ;;  %1872 = vmatprep.mubr.bf16.mxu1 %v5266_v62 }
 0x76c   :  { %2139 = vmatpush1.bf16.msra.mxu0 %v4637_v47  ;;  %2180 = vmatpush1.bf16.msra.mxu1 %v4639_v48 }
 0x76d   :  { %2140 = vmatprep.subr.bf16.mxu0 %v4645_v29  ;;  %2181 = vmatprep.subr.bf16.mxu1 %v4647_v50 }
 0x770   :  { %2141 = vmatpush1.bf16.msra.mxu0 %v4649_v43  ;;  %2182 = vmatpush1.bf16.msra.mxu1 %v4651_v6 }
 0x771   :  { %2142 = vmatprep.subr.bf16.mxu0 %v4657_v7  ;;  %2183 = vmatprep.subr.bf16.mxu1 %v4659_v15 }
 0x774   :  { %2143 = vmatpush1.bf16.msra.mxu0 %v4661_v63  ;;  %2184 = vmatpush1.bf16.msra.mxu1 %v4663_v16 }
 0x775   :  { %2144 = vmatprep.subr.bf16.mxu0 %v4665_v0  ;;  %2185 = vmatprep.subr.bf16.mxu1 %v4669_v11 }
 0x778   :  { %2145 = vmatpush1.bf16.msra.mxu0 %v4673_v10  ;;  %2186 = vmatpush1.bf16.msra.mxu1 %v4675_v57 }
 0x779   :  { %2251 = vmatprep.subr.bf16.mxu0 %v4585_v21  ;;  %2292 = vmatprep.subr.bf16.mxu1 %v4587_v59 }
 0x7fa   :  { %v1431_v22 = vpop.f32.mrf.mxu0  ;;  %v1472_v1 = vpop.f32.mrf.mxu1 }
 0x7fb   :  { %v1479_v30 = vadd.f32 %v1431_v22, %v5284_v5  ;;  %v1481_v44 = vadd.f32 %v1472_v1, %v5285_v12 }
 0x7fc   :  { %v1433_v52 = vpop.f32.mrf.mxu0  ;;  %v1474_v31 = vpop.f32.mrf.mxu1 }
 0x7fd   :  { %v3183_v53 = vmul.f32 -1.442695, %v1479_v30  ;;  %v1480_v35 = vadd.f32 %v1433_v52, %v4213_v2  ;;  %v1482_v9 = vadd.f32 %v1474_v31, %v4216_v56 }
 0x7fe   :  { %v1435_v34 = vpop.f32.mrf.mxu0  ;;  %v1476_v51 = vpop.f32.mrf.mxu1 }
 0x7ff   :  { %3560 = vpow2.f32 %v3183_v53  ;;  %v3184_v37 = vmul.f32 -1.442695, %v1480_v35  ;;  %v3185_v61 = vmul.f32 -1.442695, %v1482_v9 }
 0x800   :  { %v1436_v25 = vpop.f32.mrf.mxu0  ;;  %v1477_v3 = vpop.f32.mrf.mxu1 }
 0x801   :  { %3562 = vpow2.f32 %v3184_v37 }
 0x802   :  { %3564 = vtanh.f32 %v1481_v44 }
 0x803   :  { %3566 = vpow2.f32 %v3185_v61 }
 0x80c   :  { %v3561_v55 = vpop.eup %3560 }
 0x80d   :  { %v1486_v58 = vadd.f32 1.0, %v3561_v55 }
 0x80e   :  { %v3563_v13 = vpop.eup %3562 }
 0x80f   :  { %3568 = vrcp.f32 %v1486_v58  ;;  %v1492_v60 = vadd.f32 1.0, %v3563_v13  ;;  %v3565_v2 = vpop.eup %3564 }
 0x810   :  { %v3567_v17 = vpop.eup %3566 }
 0x811   :  { %3570 = vrcp.f32 %v1492_v60  ;;  %v1499_v23 = vadd.f32 1.0, %v3567_v17 }
 0x813   :  { %3572 = vrcp.f32 %v1499_v23 }
 0x81a   :  { %v1844_v31 = vpop.f32.mrf.mxu1 }
 0x81c   :  { %v3569_v18 = vpop.eup %3568  ;;  %v1846_v35 = vpop.f32.mrf.mxu1 }
 0x81d   :  { %v1503_v19 = vmul.f32 %v3569_v18, %v3565_v2 }
 0x81e   :  { %v3571_v20 = vpop.eup %3570  ;;  %v4736_v51 = vpop.f32.mrf.mxu1 }
 0x81f   :  { %v1502_v24 = vmul.f32 %v3571_v20, %v4564_v4 }
 0x820   :  { %v3573_v22 = vpop.eup %3572  ;;  %v4740_v25 = vpop.f32.mrf.mxu1 }
 0x821   :  { %v1504_v56 = vadd.f32 %v1503_v19, %v1502_v24 }
 0x822   :  { %v4744_v9 = vpop.f32.mrf.mxu1 }
 0x823   :  { %1510 = vst [vmem:[%s5237_s13] sm:$0xff] %v1504_v56  ;;  %3574 = vtanh.f32 %v1504_v56  ;;  %5286 = vst [vmem:[#allocation16_spill] sm:$0xff] %v4744_v9  ;;  %v1555_v56 = vld [vmem:[%s5230_s6] sm:$0xf] }
 0x824   :  { %v4748_v44 = vpop.f32.mrf.mxu1 }
 0x826   :  { %v4752_v55 = vpop.f32.mrf.mxu1 }
 0x827   :  { %5288 = vst [vmem:[#allocation19_spill] sm:$0xff] %v4752_v55 }
 0x828   :  { %v4756_v13 = vpop.f32.mrf.mxu1 }
 0x829   :  { %5290 = vst [vmem:[#allocation18_spill] sm:$0xff] %v4756_v13 }
 0x82a   :  { %v4760_v2 = vpop.f32.mrf.mxu1 }
 0x82b   :  { %5292 = vst [vmem:[#allocation23_spill] sm:$0xff] %v4760_v2 }
 0x82c   :  { %v4764_v18 = vpop.f32.mrf.mxu1 }
 0x82d   :  { %5294 = vst [vmem:[#allocation22_spill] sm:$0xff] %v4764_v18 }
 0x82e   :  { %v4768_v20 = vpop.f32.mrf.mxu1 }
 0x82f   :  { %5296 = vst [vmem:[#allocation27_spill] sm:$0xff] %v4768_v20 }
 0x830   :  { %v3575_v1 = vpop.eup %3574  ;;  %v4772_v24 = vpop.f32.mrf.mxu1 }
 0x831   :  { %v1506_v5 = vmul.f32 %v3575_v1, %v3573_v22  ;;  %5298 = vst [vmem:[#allocation26_spill] sm:$0xff] %v4772_v24 }
 0x833   :  { %1509 = vst [vmem:[%s5236_s12] sm:$0xff] %v1506_v5  ;;  %v1522_v30 = vpack.c.bf16 %v1506_v5, %v4567_v32  ;;  %v1771_v32 = vpop.f32.mrf.mxu0 }
 0x835   :  { %1800 = vmatmul.mubr.bf16.gmra.mxu0 %v1522_v30  ;;  %1873 = vmatmul.mubr.bf16.gmra.mxu1 %v1522_v30  ;;  %v1773_v53 = vpop.f32.mrf.mxu0 }
 0x836   :  { %2162 = vmatprep.mubr.bf16.mxu0 %v5266_v62  ;;  %2203 = vmatprep.mubr.bf16.mxu1 %v5266_v62 }
 0x837   :  { %v4734_v34 = vpop.f32.mrf.mxu0 }
 0x839   :  { %v4738_v37 = vpop.f32.mrf.mxu0 }
 0x83a   :  { %v3220_v4 = vld [vmem:[%s5233_s9 + $0x8] sm:$0xff] }
 0x83b   :  { %v1969_v52 = vpack.c.bf16 %v3220_v4, %v3220_v4  ;;  %v4742_v3 = vpop.f32.mrf.mxu0  ;;  %v5303_v4 = vld [vmem:[#allocation15_spill] sm:$0xff] }
 0x83c   :  { %v5307_v24 = vsub.s32 1, %v5303_v4 }
 0x83d   :  { %2163 = vmatmul.mubr.bf16.vlgmr.msra.gmra.mxu0 %v1969_v52  ;;  %2204 = vmatmul.mubr.bf16.vlgmr.msra.gmra.mxu1 %v1969_v52  ;;  %v4746_v12 = vpop.f32.mrf.mxu0  ;;  %v5304_v52 = vsub.s32 0, %v5303_v4 }
 0x83e   :  { %2252 = vmatpush1.bf16.msra.mxu0 %v4589_v33  ;;  %2293 = vmatpush1.bf16.msra.mxu1 %v4591_v54  ;;  %v4795_v2 = vrot.slane %v1555_v56, %v5307_v24 }
 0x83f   :  { %2253 = vmatprep.subr.bf16.mxu0 %v4597_v36  ;;  %2294 = vmatprep.subr.bf16.mxu1 %v4599_v38  ;;  %v4750_v61 = vpop.f32.mrf.mxu0 }
 0x840   :  { %2283 = vmatprep.mubr.bf16.mxu0 %v5266_v62  ;;  %2324 = vmatprep.mubr.bf16.mxu1 %v5266_v62  ;;  %5287 = vst [vmem:[#allocation17_spill] sm:$0xff] %v4750_v61  ;;  %v5310_v61 = vsub.s32 3, %v5303_v4 }
 0x841   :  { %v4754_v58 = vpop.f32.mrf.mxu0 }
 0x842   :  { %2254 = vmatpush1.bf16.msra.mxu0 %v4601_v26  ;;  %2295 = vmatpush1.bf16.msra.mxu1 %v4603_v27  ;;  %5289 = vst [vmem:[#allocation20_spill] sm:$0xff] %v4754_v58 }
 0x843   :  { %2255 = vmatprep.subr.bf16.mxu0 %v4609_v28  ;;  %2296 = vmatprep.subr.bf16.mxu1 %v4611_v14  ;;  %v4758_v60 = vpop.f32.mrf.mxu0 }
 0x844   :  { %5291 = vst [vmem:[#allocation21_spill] sm:$0xff] %v4758_v60 }
 0x845   :  { %v4762_v17 = vpop.f32.mrf.mxu0 }
 0x846   :  { %2256 = vmatpush1.bf16.msra.mxu0 %v4613_v8  ;;  %2297 = vmatpush1.bf16.msra.mxu1 %v4615_v49  ;;  %5293 = vst [vmem:[#allocation24_spill] sm:$0xff] %v4762_v17  ;;  %v1774_v17 = vadd.f32 %v1773_v53, %v4795_v2  ;;  %v5311_v53 = vsub.s32 2, %v5303_v4 }
 0x847   :  { %2257 = vmatprep.subr.bf16.mxu0 %v4621_v39  ;;  %2298 = vmatprep.subr.bf16.mxu1 %v4623_v40  ;;  %v4766_v19 = vpop.f32.mrf.mxu0 }
 0x848   :  { %5295 = vst [vmem:[#allocation25_spill] sm:$0xff] %v4766_v19  ;;  %v4787_v19 = vrot.slane %v1555_v56, %v5304_v52 }
 0x849   :  { %v4770_v23 = vpop.f32.mrf.mxu0 }
 0x84a   :  { %2258 = vmatpush1.bf16.msra.mxu0 %v4625_v41  ;;  %2299 = vmatpush1.bf16.msra.mxu1 %v4627_v42  ;;  %5297 = vst [vmem:[#allocation28_spill] sm:$0xff] %v4770_v23 }
 0x84b   :  { %2259 = vmatprep.subr.bf16.mxu0 %v4633_v45  ;;  %2300 = vmatprep.subr.bf16.mxu1 %v4635_v46 }
 0x84e   :  { %2260 = vmatpush1.bf16.msra.mxu0 %v4637_v47  ;;  %2301 = vmatpush1.bf16.msra.mxu1 %v4639_v48 }
 0x84f   :  { %2261 = vmatprep.subr.bf16.mxu0 %v4645_v29  ;;  %2302 = vmatprep.subr.bf16.mxu1 %v4647_v50 }
 0x852   :  { %2262 = vmatpush1.bf16.msra.mxu0 %v4649_v43  ;;  %2303 = vmatpush1.bf16.msra.mxu1 %v4651_v6 }
 0x853   :  { %2263 = vmatprep.subr.bf16.mxu0 %v4657_v7  ;;  %2304 = vmatprep.subr.bf16.mxu1 %v4659_v15 }
 0x856   :  { %2264 = vmatpush1.bf16.msra.mxu0 %v4661_v63  ;;  %2305 = vmatpush1.bf16.msra.mxu1 %v4663_v16 }
 0x857   :  { %2265 = vmatprep.subr.bf16.mxu0 %v4665_v0  ;;  %2306 = vmatprep.subr.bf16.mxu1 %v4669_v11 }
 0x85a   :  { %2266 = vmatpush1.bf16.msra.mxu0 %v4673_v10  ;;  %2307 = vmatpush1.bf16.msra.mxu1 %v4675_v57 }
 0x85b   :  { %2372 = vmatprep.subr.bf16.mxu0 %v4585_v21  ;;  %2413 = vmatprep.subr.bf16.mxu1 %v4587_v59 }
 0x8f5   :  { %v4777_v22 = vpop.f32.mrf.mxu0  ;;  %v4779_v1 = vpop.f32.mrf.mxu1 }
 0x8f6   :  { %5299 = vst [vmem:[#allocation29_spill] sm:$0xff] %v4777_v22  ;;  %5300 = vst [vmem:[#allocation31_spill] sm:$0xff] %v4779_v1  ;;  %v1772_v1 = vadd.f32 %v1771_v32, %v4787_v19 }
 0x8f7   :  { %v4781_v5 = vpop.f32.mrf.mxu0  ;;  %v4783_v30 = vpop.f32.mrf.mxu1 }
 0x8f8   :  { %5301 = vst [vmem:[#allocation32_spill] sm:$0xff] %v4781_v5  ;;  %5302 = vst [vmem:[#allocation30_spill] sm:$0xff] %v4783_v30 }
 0x8f9   :  { %v4789_v20 = vpop.f32.mrf.mxu0  ;;  %v4791_v23 = vpop.f32.mrf.mxu1 }
 0x8fa   :  { %5305 = vst [vmem:[#allocation33_spill] sm:$0xff] %v4789_v20  ;;  %5306 = vst [vmem:[#allocation34_spill] sm:$0xff] %v4791_v23 }
 0x8fb   :  { %v4797_v18 = vpop.f32.mrf.mxu0  ;;  %v4799_v22 = vpop.f32.mrf.mxu1 }
 0x8fc   :  { %5308 = vst [vmem:[#allocation15_spill] sm:$0xff] %v4797_v18  ;;  %5309 = vst [vmem:[#allocation35_spill] sm:$0xff] %v4799_v22  ;;  %v4805_v18 = vrot.slane %v1555_v56, %v5310_v61 }
 0x8fd   :  { %v2164_v5 = vpop.f32.mrf.mxu0  ;;  %v2205_v30 = vpop.f32.mrf.mxu1 }
 0x8fe   :  { %v2212_v52 = vadd.f32 %v2164_v5, %v1772_v1  ;;  %v1847_v32 = vadd.f32 %v1846_v35, %v4805_v18  ;;  %v4810_v1 = vrot.slane %v1555_v56, %v5311_v53  ;;  %v3221_v35 = vld [vmem:[%s5234_s10 + $0x8] sm:$0xff]  ;;  %v4822_v53 = vld [vmem:[%s5231_s7] ss:$0 sm:$0xff] }
 0x8ff   :  { %v2166_v60 = vpop.f32.mrf.mxu0  ;;  %v2207_v55 = vpop.f32.mrf.mxu1 }
 0x900   :  { %v3254_v20 = vmul.f32 -1.442695, %v2212_v52  ;;  %v2213_v13 = vadd.f32 %v2166_v60, %v1774_v17  ;;  %v2215_v5 = vadd.f32 %v2207_v55, %v1847_v32  ;;  %v1845_v60 = vadd.f32 %v1844_v31, %v4810_v1 }
 0x901   :  { %v2168_v23 = vpop.f32.mrf.mxu0  ;;  %v2209_v58 = vpop.f32.mrf.mxu1 }
 0x902   :  { %3576 = vpow2.f32 %v3254_v20  ;;  %v3255_v24 = vmul.f32 -1.442695, %v2213_v13  ;;  %v3256_v17 = vmul.f32 -1.442695, %v2215_v5  ;;  %v2214_v20 = vadd.f32 %v2205_v30, %v1845_v60 }
 0x903   :  { %v2169_v22 = vpop.f32.mrf.mxu0  ;;  %v2210_v9 = vpop.f32.mrf.mxu1 }
 0x904   :  { %3578 = vpow2.f32 %v3255_v24 }
 0x905   :  { %3580 = vpow2.f32 %v3256_v17 }
 0x90f   :  { %v3577_v58 = vpop.eup %3576 }
 0x910   :  { %v2219_v13 = vadd.f32 1.0, %v3577_v58  ;;  %v4859_v58 = vld [vmem:[#allocation4] ss:$0 sm:$0xff] }
 0x911   :  { %v3579_v23 = vpop.eup %3578 }
 0x912   :  { %3582 = vrcp.f32 %v2219_v13  ;;  %v2225_v61 = vadd.f32 1.0, %v3579_v23  ;;  %v3581_v9 = vpop.eup %3580  ;;  %v1776_v23 = vadd.f32 %v4734_v34, %v4787_v19  ;;  %v1851_v34 = vadd.f32 %v4740_v25, %v4805_v18 }
 0x913   :  { %3584 = vtanh.f32 %v2214_v20  ;;  %v2232_v4 = vadd.f32 1.0, %v3581_v9 }
 0x914   :  { %3586 = vrcp.f32 %v2225_v61 }
 0x915   :  { %3588 = vrcp.f32 %v2232_v4 }
 0x91f   :  { %v3583_v22 = vpop.eup %3582 }
 0x920   :  { %v3585_v56 = vpop.eup %3584 }
 0x921   :  { %v3587_v55 = vpop.eup %3586  ;;  %v2236_v31 = vmul.f32 %v3585_v56, %v3583_v22  ;;  %v1778_v22 = vadd.f32 %v4738_v37, %v4795_v2 }
 0x922   :  { %v2235_v52 = vmul.f32 %v3587_v55, %v3221_v35  ;;  %v3589_v30 = vpop.eup %3588 }
 0x924   :  { %v4816_v24 = vadd.f32 %v2236_v31, %v2235_v52 }
 0x926   :  { %3590 = vtanh.f32 %v4816_v24 }
 0x933   :  { %v3591_v32 = vpop.eup %3590 }
 0x934   :  { %v2239_v5 = vmul.f32 %v3591_v32, %v3589_v30 }
 0x936   :  { %v2250_v60 = vpack.c.bf16 %v2239_v5, %v2239_v5  ;;  %v2240_v17 = vmul.f32 %v4822_v53, %v2239_v5 }
 0x938   :  { %2284 = vmatmul.mubr.bf16.vlgmr.msra.gmra.mxu0 %v2250_v60  ;;  %2325 = vmatmul.mubr.bf16.vlgmr.msra.gmra.mxu1 %v2250_v60 }
 0x939   :  { %2241 = vadd.xlane.f32.xlu0 %v2240_v17  ;;  %2373 = vmatpush1.bf16.msra.mxu0 %v4589_v33 }
 0x93a   :  { %2414 = vmatpush1.bf16.msra.mxu1 %v4591_v54  ;;  %2374 = vmatprep.subr.bf16.mxu0 %v4597_v36 }
 0x93b   :  { %2415 = vmatprep.subr.bf16.mxu1 %v4599_v38  ;;  %2404 = vmatprep.mubr.bf16.mxu0 %v5266_v62 }
 0x93c   :  { %2445 = vmatprep.mubr.bf16.mxu1 %v5266_v62 }
 0x93d   :  { %2375 = vmatpush1.bf16.msra.mxu0 %v4601_v26 }
 0x93e   :  { %2416 = vmatpush1.bf16.msra.mxu1 %v4603_v27  ;;  %2376 = vmatprep.subr.bf16.mxu0 %v4609_v28 }
 0x93f   :  { %2417 = vmatprep.subr.bf16.mxu1 %v4611_v14 }
 0x941   :  { %2377 = vmatpush1.bf16.msra.mxu0 %v4613_v8 }
 0x942   :  { %2418 = vmatpush1.bf16.msra.mxu1 %v4615_v49  ;;  %2378 = vmatprep.subr.bf16.mxu0 %v4621_v39 }
 0x943   :  { %2419 = vmatprep.subr.bf16.mxu1 %v4623_v40 }
 0x945   :  { %2379 = vmatpush1.bf16.msra.mxu0 %v4625_v41 }
 0x946   :  { %2420 = vmatpush1.bf16.msra.mxu1 %v4627_v42  ;;  %2380 = vmatprep.subr.bf16.mxu0 %v4633_v45 }
 0x947   :  { %2421 = vmatprep.subr.bf16.mxu1 %v4635_v46 }
 0x949   :  { %2381 = vmatpush1.bf16.msra.mxu0 %v4637_v47 }
 0x94a   :  { %2422 = vmatpush1.bf16.msra.mxu1 %v4639_v48  ;;  %2382 = vmatprep.subr.bf16.mxu0 %v4645_v29 }
 0x94b   :  { %2423 = vmatprep.subr.bf16.mxu1 %v4647_v50 }
 0x94d   :  { %2383 = vmatpush1.bf16.msra.mxu0 %v4649_v43 }
 0x94e   :  { %2424 = vmatpush1.bf16.msra.mxu1 %v4651_v6  ;;  %2384 = vmatprep.subr.bf16.mxu0 %v4657_v7 }
 0x94f   :  { %2425 = vmatprep.subr.bf16.mxu1 %v4659_v15 }
 0x951   :  { %2385 = vmatpush1.bf16.msra.mxu0 %v4661_v63 }
 0x952   :  { %2426 = vmatpush1.bf16.msra.mxu1 %v4663_v16  ;;  %2386 = vmatprep.subr.bf16.mxu0 %v4665_v0 }
 0x953   :  { %2427 = vmatprep.subr.bf16.mxu1 %v4669_v11 }
 0x955   :  { %2387 = vmatpush1.bf16.msra.mxu0 %v4673_v10 }
 0x956   :  { %2428 = vmatpush1.bf16.msra.mxu1 %v4675_v57  ;;  %2493 = vmatprep.subr.bf16.mxu0 %v4585_v21 }
 0x957   :  { %2534 = vmatprep.subr.bf16.mxu1 %v4587_v59 }
 0x9c2   :  { %v2242_v20 = vpop.xlane.xlu0 %2241 }
 0x9c3   :  { %v2243_v13 = vadd.f32 %v4859_v58, %v2242_v20  ;;  %v1849_v20 = vadd.f32 %v4736_v51, %v4810_v1 }
 0x9c5   :  { %2245 = vst.msk [vmem:[%s5235_s11] sm:$0xff] %vm2244_vm2, %v2243_v13 }
 0x9f8   :  { %v2285_v61 = vpop.f32.mrf.mxu0  ;;  %v2326_v9 = vpop.f32.mrf.mxu1 }
 0x9f9   :  { %v2333_v35 = vadd.f32 %v2285_v61, %v1776_v23  ;;  %v2335_v37 = vadd.f32 %v2326_v9, %v1849_v20  ;;  %v1782_v20 = vadd.f32 %v4742_v3, %v4787_v19  ;;  %v1857_v3 = vadd.f32 %v4748_v44, %v4805_v18 }
 0x9fa   :  { %v2287_v56 = vpop.f32.mrf.mxu0  ;;  %v2328_v55 = vpop.f32.mrf.mxu1 }
 0x9fb   :  { %v3257_v4 = vmul.f32 -1.442695, %v2333_v35  ;;  %v2334_v31 = vadd.f32 %v2287_v56, %v1778_v22  ;;  %v2336_v17 = vadd.f32 %v2328_v55, %v1851_v34 }
 0x9fc   :  { %v2289_v52 = vpop.f32.mrf.mxu0  ;;  %v2330_v30 = vpop.f32.mrf.mxu1 }
 0x9fd   :  { %3592 = vpow2.f32 %v3257_v4  ;;  %v3258_v32 = vmul.f32 -1.442695, %v2334_v31  ;;  %v3259_v13 = vmul.f32 -1.442695, %v2336_v17 }
 0x9fe   :  { %v2290_v5 = vpop.f32.mrf.mxu0  ;;  %v2331_v60 = vpop.f32.mrf.mxu1 }
 0x9ff   :  { %3594 = vpow2.f32 %v3258_v32 }
 0xa00   :  { %3596 = vtanh.f32 %v2335_v37 }
 0xa01   :  { %3598 = vpow2.f32 %v3259_v13 }
 0xa0a   :  { %v3593_v23 = vpop.eup %3592 }
 0xa0b   :  { %v2340_v61 = vadd.f32 1.0, %v3593_v23  ;;  %v1784_v23 = vadd.f32 %v4746_v12, %v4795_v2 }
 0xa0c   :  { %v3595_v22 = vpop.eup %3594 }
 0xa0d   :  { %3600 = vrcp.f32 %v2340_v61  ;;  %v2346_v35 = vadd.f32 1.0, %v3595_v22  ;;  %v3597_v56 = vpop.eup %3596 }
 0xa0e   :  { %v3599_v4 = vpop.eup %3598 }
 0xa0f   :  { %3602 = vrcp.f32 %v2346_v35  ;;  %v2353_v25 = vadd.f32 1.0, %v3599_v4 }
 0xa11   :  { %3604 = vrcp.f32 %v2353_v25 }
 0xa1a   :  { %v3601_v31 = vpop.eup %3600 }
 0xa1b   :  { %v2357_v52 = vmul.f32 %v3601_v31, %v3597_v56 }
 0xa1c   :  { %v3603_v30 = vpop.eup %3602 }
 0xa1d   :  { %v2356_v55 = vmul.f32 %v3603_v30, %v4816_v24 }
 0xa1e   :  { %v3605_v51 = vpop.eup %3604 }
 0xa1f   :  { %v4875_v32 = vadd.f32 %v2357_v52, %v2356_v55 }
 0xa21   :  { %3606 = vtanh.f32 %v4875_v32 }
 0xa2e   :  { %v3607_v9 = vpop.eup %3606 }
 0xa2f   :  { %v2360_v5 = vmul.f32 %v3607_v9, %v3605_v51  ;;  %v5312_v9 = vld [vmem:[#allocation16_spill] sm:$0xff] }
 0xa31   :  { %v2371_v60 = vpack.c.bf16 %v2360_v5, %v2360_v5  ;;  %v2361_v34 = vmul.f32 %v4822_v53, %v2360_v5  ;;  %v1855_v5 = vadd.f32 %v5312_v9, %v4810_v1 }
 0xa33   :  { %2405 = vmatmul.mubr.bf16.vlgmr.msra.gmra.mxu0 %v2371_v60  ;;  %2446 = vmatmul.mubr.bf16.vlgmr.msra.gmra.mxu1 %v2371_v60 }
 0xa34   :  { %2362 = vadd.xlane.f32.xlu0 %v2361_v34  ;;  %2494 = vmatpush1.bf16.msra.mxu0 %v4589_v33 }
 0xa35   :  { %2535 = vmatpush1.bf16.msra.mxu1 %v4591_v54  ;;  %2495 = vmatprep.subr.bf16.mxu0 %v4597_v36 }
 0xa36   :  { %2536 = vmatprep.subr.bf16.mxu1 %v4599_v38  ;;  %2525 = vmatprep.mubr.bf16.mxu0 %v5266_v62 }
 0xa37   :  { %2566 = vmatprep.mubr.bf16.mxu1 %v5266_v62 }
 0xa38   :  { %2496 = vmatpush1.bf16.msra.mxu0 %v4601_v26 }
 0xa39   :  { %2537 = vmatpush1.bf16.msra.mxu1 %v4603_v27  ;;  %2497 = vmatprep.subr.bf16.mxu0 %v4609_v28 }
 0xa3a   :  { %2538 = vmatprep.subr.bf16.mxu1 %v4611_v14 }
 0xa3c   :  { %2498 = vmatpush1.bf16.msra.mxu0 %v4613_v8 }
 0xa3d   :  { %2539 = vmatpush1.bf16.msra.mxu1 %v4615_v49  ;;  %2499 = vmatprep.subr.bf16.mxu0 %v4621_v39 }
 0xa3e   :  { %2540 = vmatprep.subr.bf16.mxu1 %v4623_v40 }
 0xa40   :  { %2500 = vmatpush1.bf16.msra.mxu0 %v4625_v41 }
 0xa41   :  { %2541 = vmatpush1.bf16.msra.mxu1 %v4627_v42  ;;  %2501 = vmatprep.subr.bf16.mxu0 %v4633_v45 }
 0xa42   :  { %2542 = vmatprep.subr.bf16.mxu1 %v4635_v46 }
 0xa44   :  { %2502 = vmatpush1.bf16.msra.mxu0 %v4637_v47 }
 0xa45   :  { %2543 = vmatpush1.bf16.msra.mxu1 %v4639_v48  ;;  %2503 = vmatprep.subr.bf16.mxu0 %v4645_v29 }
 0xa46   :  { %2544 = vmatprep.subr.bf16.mxu1 %v4647_v50 }
 0xa48   :  { %2504 = vmatpush1.bf16.msra.mxu0 %v4649_v43 }
 0xa49   :  { %2545 = vmatpush1.bf16.msra.mxu1 %v4651_v6  ;;  %2505 = vmatprep.subr.bf16.mxu0 %v4657_v7 }
 0xa4a   :  { %2546 = vmatprep.subr.bf16.mxu1 %v4659_v15 }
 0xa4c   :  { %2506 = vmatpush1.bf16.msra.mxu0 %v4661_v63 }
 0xa4d   :  { %2547 = vmatpush1.bf16.msra.mxu1 %v4663_v16  ;;  %2507 = vmatprep.subr.bf16.mxu0 %v4665_v0 }
 0xa4e   :  { %2548 = vmatprep.subr.bf16.mxu1 %v4669_v11 }
 0xa50   :  { %2508 = vmatpush1.bf16.msra.mxu0 %v4673_v10 }
 0xa51   :  { %2549 = vmatpush1.bf16.msra.mxu1 %v4675_v57  ;;  %2614 = vmatprep.subr.bf16.mxu0 %v4585_v21 }
 0xa52   :  { %2655 = vmatprep.subr.bf16.mxu1 %v4587_v59 }
 0xabd   :  { %v2363_v24 = vpop.xlane.xlu0 %2362 }
 0xabe   :  { %v2364_v17 = vadd.f32 %v4859_v58, %v2363_v24 }
 0xac0   :  { %3260 = vst.msk [vmem:[%s5235_s11 + $0x8] sm:$0xff] %vm2244_vm2, %v2364_v17 }
 0xaf3   :  { %v2406_v37 = vpop.f32.mrf.mxu0  ;;  %v2447_v13 = vpop.f32.mrf.mxu1 }
 0xaf4   :  { %v2454_v61 = vadd.f32 %v2406_v37, %v1782_v20  ;;  %v2456_v12 = vadd.f32 %v2447_v13, %v1855_v5 }
 0xaf5   :  { %v2408_v22 = vpop.f32.mrf.mxu0  ;;  %v2449_v35 = vpop.f32.mrf.mxu1 }
 0xaf6   :  { %v3261_v56 = vmul.f32 -1.442695, %v2454_v61  ;;  %v2455_v4 = vadd.f32 %v2408_v22, %v1784_v23  ;;  %v2457_v51 = vadd.f32 %v2449_v35, %v1857_v3  ;;  %v5313_v3 = vld [vmem:[#allocation17_spill] sm:$0xff] }
 0xaf7   :  { %v2410_v31 = vpop.f32.mrf.mxu0  ;;  %v2451_v52 = vpop.f32.mrf.mxu1 }
 0xaf8   :  { %3608 = vpow2.f32 %v3261_v56  ;;  %v3262_v30 = vmul.f32 -1.442695, %v2455_v4  ;;  %v3263_v60 = vmul.f32 -1.442695, %v2457_v51  ;;  %v1786_v51 = vadd.f32 %v5313_v3, %v4787_v19 }
 0xaf9   :  { %v2411_v25 = vpop.f32.mrf.mxu0  ;;  %v2452_v55 = vpop.f32.mrf.mxu1 }
 0xafa   :  { %3610 = vpow2.f32 %v3262_v30 }
 0xafb   :  { %3612 = vtanh.f32 %v2456_v12  ;;  %v5314_v12 = vld [vmem:[#allocation20_spill] sm:$0xff] }
 0xafc   :  { %3614 = vpow2.f32 %v3263_v60  ;;  %v1788_v60 = vadd.f32 %v5314_v12, %v4795_v2 }
 0xb05   :  { %v3609_v34 = vpop.eup %3608 }
 0xb06   :  { %v2461_v24 = vadd.f32 1.0, %v3609_v34 }
 0xb07   :  { %v3611_v17 = vpop.eup %3610 }
 0xb08   :  { %3616 = vrcp.f32 %v2461_v24  ;;  %v2467_v20 = vadd.f32 1.0, %v3611_v17  ;;  %v3613_v37 = vpop.eup %3612 }
 0xb09   :  { %v3615_v23 = vpop.eup %3614 }
 0xb0a   :  { %3618 = vrcp.f32 %v2467_v20  ;;  %v2474_v44 = vadd.f32 1.0, %v3615_v23 }
 0xb0c   :  { %3620 = vrcp.f32 %v2474_v44 }
 0xb15   :  { %v3617_v61 = vpop.eup %3616 }
 0xb16   :  { %v2478_v22 = vmul.f32 %v3617_v61, %v3613_v37 }
 0xb17   :  { %v3619_v56 = vpop.eup %3618 }
 0xb18   :  { %v2477_v35 = vmul.f32 %v3619_v56, %v4875_v32  ;;  %v5315_v56 = vld [vmem:[#allocation18_spill] sm:$0xff] }
 0xb19   :  { %v3621_v13 = vpop.eup %3620  ;;  %v1861_v44 = vadd.f32 %v5315_v56, %v4805_v18 }
 0xb1a   :  { %v4927_v4 = vadd.f32 %v2478_v22, %v2477_v35 }
 0xb1c   :  { %3622 = vtanh.f32 %v4927_v4 }
 0xb29   :  { %v3623_v31 = vpop.eup %3622 }
 0xb2a   :  { %v2481_v52 = vmul.f32 %v3623_v31, %v3621_v13  ;;  %v5316_v13 = vld [vmem:[#allocation19_spill] sm:$0xff] }
 0xb2b   :  { %v1859_v31 = vadd.f32 %v5316_v13, %v4810_v1 }
 0xb2c   :  { %v2492_v30 = vpack.c.bf16 %v2481_v52, %v2481_v52  ;;  %v2482_v25 = vmul.f32 %v4822_v53, %v2481_v52 }
 0xb2e   :  { %2526 = vmatmul.mubr.bf16.vlgmr.msra.gmra.mxu0 %v2492_v30  ;;  %2567 = vmatmul.mubr.bf16.vlgmr.msra.gmra.mxu1 %v2492_v30 }
 0xb2f   :  { %2483 = vadd.xlane.f32.xlu1 %v2482_v25  ;;  %2615 = vmatpush1.bf16.msra.mxu0 %v4589_v33 }
 0xb30   :  { %2656 = vmatpush1.bf16.msra.mxu1 %v4591_v54  ;;  %2616 = vmatprep.subr.bf16.mxu0 %v4597_v36 }
 0xb31   :  { %2657 = vmatprep.subr.bf16.mxu1 %v4599_v38  ;;  %2646 = vmatprep.mubr.bf16.mxu0 %v5266_v62 }
 0xb32   :  { %2687 = vmatprep.mubr.bf16.mxu1 %v5266_v62 }
 0xb33   :  { %2617 = vmatpush1.bf16.msra.mxu0 %v4601_v26 }
 0xb34   :  { %2658 = vmatpush1.bf16.msra.mxu1 %v4603_v27  ;;  %2618 = vmatprep.subr.bf16.mxu0 %v4609_v28 }
 0xb35   :  { %2659 = vmatprep.subr.bf16.mxu1 %v4611_v14 }
 0xb37   :  { %2619 = vmatpush1.bf16.msra.mxu0 %v4613_v8 }
 0xb38   :  { %2660 = vmatpush1.bf16.msra.mxu1 %v4615_v49  ;;  %2620 = vmatprep.subr.bf16.mxu0 %v4621_v39 }
 0xb39   :  { %2661 = vmatprep.subr.bf16.mxu1 %v4623_v40 }
 0xb3b   :  { %2621 = vmatpush1.bf16.msra.mxu0 %v4625_v41 }
 0xb3c   :  { %2662 = vmatpush1.bf16.msra.mxu1 %v4627_v42  ;;  %2622 = vmatprep.subr.bf16.mxu0 %v4633_v45 }
 0xb3d   :  { %2663 = vmatprep.subr.bf16.mxu1 %v4635_v46 }
 0xb3f   :  { %2623 = vmatpush1.bf16.msra.mxu0 %v4637_v47 }
 0xb40   :  { %2664 = vmatpush1.bf16.msra.mxu1 %v4639_v48  ;;  %2624 = vmatprep.subr.bf16.mxu0 %v4645_v29 }
 0xb41   :  { %2665 = vmatprep.subr.bf16.mxu1 %v4647_v50 }
 0xb43   :  { %2625 = vmatpush1.bf16.msra.mxu0 %v4649_v43 }
 0xb44   :  { %2666 = vmatpush1.bf16.msra.mxu1 %v4651_v6  ;;  %2626 = vmatprep.subr.bf16.mxu0 %v4657_v7 }
 0xb45   :  { %2667 = vmatprep.subr.bf16.mxu1 %v4659_v15 }
 0xb47   :  { %2627 = vmatpush1.bf16.msra.mxu0 %v4661_v63 }
 0xb48   :  { %2668 = vmatpush1.bf16.msra.mxu1 %v4663_v16  ;;  %2628 = vmatprep.subr.bf16.mxu0 %v4665_v0 }
 0xb49   :  { %2669 = vmatprep.subr.bf16.mxu1 %v4669_v11 }
 0xb4b   :  { %2629 = vmatpush1.bf16.msra.mxu0 %v4673_v10 }
 0xb4c   :  { %2670 = vmatpush1.bf16.msra.mxu1 %v4675_v57  ;;  %2735 = vmatprep.subr.bf16.mxu0 %v4585_v21 }
 0xb4d   :  { %2776 = vmatprep.subr.bf16.mxu1 %v4587_v59 }
 0xbb8   :  { %v2484_v32 = vpop.xlane.xlu1 %2483 }
 0xbb9   :  { %v2485_v55 = vadd.f32 %v4859_v58, %v2484_v32 }
 0xbbb   :  { %3264 = vst.msk [vmem:[%s5235_s11 + $0x10] sm:$0xff] %vm2244_vm2, %v2485_v55 }
 0xbee   :  { %v2527_v9 = vpop.f32.mrf.mxu0  ;;  %v2568_v5 = vpop.f32.mrf.mxu1 }
 0xbef   :  { %v2575_v34 = vadd.f32 %v2527_v9, %v1786_v51  ;;  %v2577_v52 = vadd.f32 %v2568_v5, %v1859_v31 }
 0xbf0   :  { %v2529_v21 = vpop.f32.mrf.mxu0  ;;  %v2570_v24 = vpop.f32.mrf.mxu1 }
 0xbf1   :  { %v3265_v59 = vmul.f32 -1.442695, %v2575_v34  ;;  %v2576_v17 = vadd.f32 %v2529_v21, %v1788_v60  ;;  %v2578_v35 = vadd.f32 %v2570_v24, %v1861_v44 }
 0xbf2   :  { %v2531_v20 = vpop.f32.mrf.mxu0  ;;  %v2572_v37 = vpop.f32.mrf.mxu1 }
 0xbf3   :  { %3624 = vpow2.f32 %v3265_v59  ;;  %v3266_v23 = vmul.f32 -1.442695, %v2576_v17  ;;  %v3267_v30 = vmul.f32 -1.442695, %v2578_v35 }
 0xbf4   :  { %v2532_v61 = vpop.f32.mrf.mxu0  ;;  %v2573_v22 = vpop.f32.mrf.mxu1 }
 0xbf5   :  { %3626 = vpow2.f32 %v3266_v23 }
 0xbf6   :  { %3628 = vtanh.f32 %v2577_v52 }
 0xbf7   :  { %3630 = vpow2.f32 %v3267_v30 }
 0xc00   :  { %v3625_v25 = vpop.eup %3624 }
 0xc01   :  { %v2582_v32 = vadd.f32 1.0, %v3625_v25 }
 0xc02   :  { %v3627_v55 = vpop.eup %3626 }
 0xc03   :  { %3632 = vrcp.f32 %v2582_v32  ;;  %v2588_v3 = vadd.f32 1.0, %v3627_v55  ;;  %v3629_v51 = vpop.eup %3628 }
 0xc04   :  { %v3631_v9 = vpop.eup %3630 }
 0xc05   :  { %3634 = vrcp.f32 %v2588_v3  ;;  %v2595_v21 = vadd.f32 1.0, %v3631_v9  ;;  %v5042_v9 = vld [vmem:[#allocation10 + $0xe8] ss:$16 sps:$4 sm:$0xff]  }
 0xc07   :  { %3636 = vrcp.f32 %v2595_v21  ;;  %v5056_v21 = vld [vmem:[#allocation10 + $0xc8] ss:$16 sps:$4 sm:$0xff]  }
 0xc10   :  { %v3633_v12 = vpop.eup %3632 }
 0xc11   :  { %v2599_v60 = vmul.f32 %v3633_v12, %v3629_v51  ;;  %v5039_v51 = vld [vmem:[#allocation10 + $0xe0] ss:$16 sps:$4 sm:$0xff]   ;;  %v5045_v12 = vld [vmem:[#allocation10 + $0xc4] ss:$16 sps:$4 sm:$0xff]  }
 0xc12   :  { %v3635_v34 = vpop.eup %3634 }
 0xc13   :  { %v2598_v24 = vmul.f32 %v3635_v34, %v4927_v4  ;;  %v5053_v34 = vld [vmem:[#allocation10 + $0xc0] ss:$16 sps:$4 sm:$0xff]  }
 0xc14   :  { %v3637_v5 = vpop.eup %3636 }
 0xc15   :  { %v4979_v59 = vadd.f32 %v2599_v60, %v2598_v24  ;;  %v5048_v60 = vld [vmem:[#allocation10 + $0xcc] ss:$16 sps:$4 sm:$0xff]   ;;  %v5059_v24 = vld [vmem:[#allocation10 + $0xa4] ss:$16 sps:$4 sm:$0xff]  }
 0xc17   :  { %3638 = vtanh.f32 %v4979_v59 }
 0xc24   :  { %v3639_v17 = vpop.eup %3638 }
 0xc25   :  { %v2602_v20 = vmul.f32 %v3639_v17, %v3637_v5  ;;  %v5065_v5 = vld [vmem:[#allocation10 + $0xa0] ss:$16 sps:$4 sm:$0xff]   ;;  %v5068_v17 = vld [vmem:[#allocation10 + $0xa8] ss:$16 sps:$4 sm:$0xff]  }
 0xc27   :  { %v2613_v37 = vpack.c.bf16 %v2602_v20, %v2602_v20  ;;  %v2603_v23 = vmul.f32 %v4822_v53, %v2602_v20  ;;  %v5071_v20 = vld [vmem:[#allocation10 + $0x84] ss:$16 sps:$4 sm:$0xff]  }
 0xc29   :  { %2647 = vmatmul.mubr.bf16.vlgmr.msra.gmra.mxu0 %v2613_v37  ;;  %2688 = vmatmul.mubr.bf16.vlgmr.msra.gmra.mxu1 %v2613_v37  ;;  %v5074_v37 = vld [vmem:[#allocation10 + $0x8c] ss:$16 sps:$4 sm:$0xff]  }
 0xc2a   :  { %2604 = vadd.xlane.f32.xlu1 %v2603_v23  ;;  %2736 = vmatpush1.bf16.msra.mxu0 %v4589_v33  ;;  %v5015_v33 = vld [vmem:[#allocation10 + $0xe4] ss:$16 sps:$4 sm:$0xff]   ;;  %v5077_v23 = vld [vmem:[#allocation10 + $0x80] ss:$16 sps:$4 sm:$0xff]  }
 0xc2b   :  { %2777 = vmatpush1.bf16.msra.mxu1 %v4591_v54  ;;  %2737 = vmatprep.subr.bf16.mxu0 %v4597_v36  ;;  %v5018_v54 = vld [vmem:[#allocation10 + $0xec] ss:$16 sps:$4 sm:$0xff]  }
 0xc2c   :  { %2778 = vmatprep.subr.bf16.mxu1 %v4599_v38  ;;  %2767 = vmatprep.mubr.bf16.mxu0 %v5266_v62 }
 0xc2d   :  { %2808 = vmatprep.mubr.bf16.mxu1 %v5266_v62 }
 0xc2e   :  { %2738 = vmatpush1.bf16.msra.mxu0 %v4601_v26  ;;  %v5317_v26 = vld [vmem:[#allocation21_spill] sm:$0xff] }
 0xc2f   :  { %2779 = vmatpush1.bf16.msra.mxu1 %v4603_v27  ;;  %2739 = vmatprep.subr.bf16.mxu0 %v4609_v28  ;;  %v1792_v27 = vadd.f32 %v5317_v26, %v4787_v19  ;;  %v5086_v26 = vld [vmem:[#allocation10 + $0x6c] ss:$16 sps:$4 sm:$0xff]  }
 0xc30   :  { %2780 = vmatprep.subr.bf16.mxu1 %v4611_v14 }
 0xc32   :  { %2740 = vmatpush1.bf16.msra.mxu0 %v4613_v8  ;;  %v5318_v8 = vld [vmem:[#allocation24_spill] sm:$0xff] }
 0xc33   :  { %2781 = vmatpush1.bf16.msra.mxu1 %v4615_v49  ;;  %2741 = vmatprep.subr.bf16.mxu0 %v4621_v39  ;;  %v1794_v49 = vadd.f32 %v5318_v8, %v4795_v2  ;;  %v5098_v8 = vld [vmem:[#allocation10 + $0x4c] ss:$16 sps:$4 sm:$0xff]  }
 0xc34   :  { %2782 = vmatprep.subr.bf16.mxu1 %v4623_v40 }
 0xc36   :  { %2742 = vmatpush1.bf16.msra.mxu0 %v4625_v41 }
 0xc37   :  { %2783 = vmatpush1.bf16.msra.mxu1 %v4627_v42  ;;  %2743 = vmatprep.subr.bf16.mxu0 %v4633_v45 }
 0xc38   :  { %2784 = vmatprep.subr.bf16.mxu1 %v4635_v46 }
 0xc3a   :  { %2744 = vmatpush1.bf16.msra.mxu0 %v4637_v47 }
 0xc3b   :  { %2785 = vmatpush1.bf16.msra.mxu1 %v4639_v48  ;;  %2745 = vmatprep.subr.bf16.mxu0 %v4645_v29 }
 0xc3c   :  { %2786 = vmatprep.subr.bf16.mxu1 %v4647_v50 }
 0xc3e   :  { %2746 = vmatpush1.bf16.msra.mxu0 %v4649_v43  ;;  %v5319_v43 = vld [vmem:[#allocation22_spill] sm:$0xff] }
 0xc3f   :  { %2787 = vmatpush1.bf16.msra.mxu1 %v4651_v6  ;;  %2747 = vmatprep.subr.bf16.mxu0 %v4657_v7  ;;  %v1867_v6 = vadd.f32 %v5319_v43, %v4805_v18 }
 0xc40   :  { %2788 = vmatprep.subr.bf16.mxu1 %v4659_v15  ;;  %v5320_v15 = vld [vmem:[#allocation23_spill] sm:$0xff] }
 0xc42   :  { %2748 = vmatpush1.bf16.msra.mxu0 %v4661_v63  ;;  %v1865_v63 = vadd.f32 %v5320_v15, %v4810_v1 }
 0xc43   :  { %2789 = vmatpush1.bf16.msra.mxu1 %v4663_v16  ;;  %2749 = vmatprep.subr.bf16.mxu0 %v4665_v0 }
 0xc44   :  { %2790 = vmatprep.subr.bf16.mxu1 %v4669_v11 }
 0xc46   :  { %2750 = vmatpush1.bf16.msra.mxu0 %v4673_v10 }
 0xc47   :  { %2791 = vmatpush1.bf16.msra.mxu1 %v4675_v57  ;;  %2856 = vmatprep.subr.bf16.mxu0 %v5015_v33 }
 0xc48   :  { %2897 = vmatprep.subr.bf16.mxu1 %v5018_v54 }
 0xcb3   :  { %v2605_v36 = vpop.xlane.xlu1 %2604 }
 0xcb4   :  { %v2606_v38 = vadd.f32 %v4859_v58, %v2605_v36  ;;  %v5080_v36 = vld [vmem:[#allocation10 + $0x88] ss:$16 sps:$4 sm:$0xff]  }
 0xcb6   :  { %3268 = vst.msk [vmem:[%s5235_s11 + $0x18] sm:$0xff] %vm2244_vm2, %v2606_v38  ;;  %v5083_v38 = vld [vmem:[#allocation10 + $0x64] ss:$16 sps:$4 sm:$0xff]  }
 0xce9   :  { %v2648_v28 = vpop.f32.mrf.mxu0  ;;  %v2689_v14 = vpop.f32.mrf.mxu1 }
 0xcea   :  { %v2696_v39 = vadd.f32 %v2648_v28, %v1792_v27  ;;  %v2698_v16 = vadd.f32 %v2689_v14, %v1865_v63  ;;  %v5089_v27 = vld [vmem:[#allocation10 + $0x60] ss:$16 sps:$4 sm:$0xff]   ;;  %v5092_v28 = vld [vmem:[#allocation10 + $0x68] ss:$16 sps:$4 sm:$0xff]   ;;  %v5095_v14 = vld [vmem:[#allocation10 + $0x44] ss:$16 sps:$4 sm:$0xff]  }
 0xceb   :  { %v2650_v40 = vpop.f32.mrf.mxu0  ;;  %v2691_v41 = vpop.f32.mrf.mxu1 }
 0xcec   :  { %v3269_v42 = vmul.f32 -1.442695, %v2696_v39  ;;  %v2697_v45 = vadd.f32 %v2650_v40, %v1794_v49  ;;  %v2699_v7 = vadd.f32 %v2691_v41, %v1867_v6  ;;  %v5101_v49 = vld [vmem:[#allocation10 + $0x40] ss:$16 sps:$4 sm:$0xff]   ;;  %v5104_v39 = vld [vmem:[#allocation10 + $0x48] ss:$16 sps:$4 sm:$0xff]  }
 0xced   :  { %v2652_v46 = vpop.f32.mrf.mxu0  ;;  %v2693_v47 = vpop.f32.mrf.mxu1  ;;  %v5107_v40 = vld [vmem:[#allocation10 + $0x24] ss:$16 sps:$4 sm:$0xff]   ;;  %v5110_v41 = vld [vmem:[#allocation10 + $0x2c] ss:$16 sps:$4 sm:$0xff]  }
 0xcee   :  { %3640 = vpow2.f32 %v3269_v42  ;;  %v3270_v48 = vmul.f32 -1.442695, %v2697_v45  ;;  %v3271_v0 = vmul.f32 -1.442695, %v2699_v7  ;;  %v5113_v42 = vld [vmem:[#allocation10 + $0x20] ss:$16 sps:$4 sm:$0xff]  }
 0xcef   :  { %v2653_v29 = vpop.f32.mrf.mxu0  ;;  %v2694_v50 = vpop.f32.mrf.mxu1  ;;  %v5116_v45 = vld [vmem:[#allocation10 + $0x28] ss:$16 sps:$4 sm:$0xff]   ;;  %v5119_v46 = vld [vmem:[#allocation10 + $0x4] ss:$16 sps:$4 sm:$0xff]   ;;  %v5122_v47 = vld [vmem:[#allocation10 + $0xc] ss:$16 sps:$4 sm:$0xff]  }
 0xcf0   :  { %3642 = vpow2.f32 %v3270_v48  ;;  %v5125_v48 = vld [vmem:[#allocation10] ss:$16 sps:$4 sm:$0xff]   ;;  %v5128_v29 = vld [vmem:[#allocation10 + $0x8] ss:$16 sps:$4 sm:$0xff]  }
 0xcf1   :  { %3644 = vtanh.f32 %v2698_v16  ;;  %v5321_v6 = vld [vmem:[#allocation25_spill] sm:$0xff]  ;;  %v5322_v16 = vld [vmem:[#allocation28_spill] sm:$0xff] }
 0xcf2   :  { %3646 = vpow2.f32 %v3271_v0  ;;  %v1796_v7 = vadd.f32 %v5321_v6, %v4787_v19  ;;  %v1798_v0 = vadd.f32 %v5322_v16, %v4795_v2 }
 0xcfb   :  { %v3641_v11 = vpop.eup %3640 }
 0xcfc   :  { %v2703_v10 = vadd.f32 1.0, %v3641_v11 }
 0xcfd   :  { %v3643_v57 = vpop.eup %3642 }
 0xcfe   :  { %3648 = vrcp.f32 %v2703_v10  ;;  %v2709_v4 = vadd.f32 1.0, %v3643_v57  ;;  %v3645_v61 = vpop.eup %3644 }
 0xcff   :  { %v3647_v22 = vpop.eup %3646 }
 0xd00   :  { %3650 = vrcp.f32 %v2709_v4  ;;  %v2716_v13 = vadd.f32 1.0, %v3647_v22 }
 0xd02   :  { %3652 = vrcp.f32 %v2716_v13 }
 0xd0b   :  { %v3649_v56 = vpop.eup %3648 }
 0xd0c   :  { %v2720_v44 = vmul.f32 %v3649_v56, %v3645_v61 }
 0xd0d   :  { %v3651_v35 = vpop.eup %3650 }
 0xd0e   :  { %v2719_v31 = vmul.f32 %v3651_v35, %v4979_v59  ;;  %v5062_v59 = vld [vmem:[#allocation10 + $0xac] ss:$16 sps:$4 sm:$0xff]  }
 0xd0f   :  { %v3653_v30 = vpop.eup %3652  ;;  %v5323_v35 = vld [vmem:[#allocation26_spill] sm:$0xff] }
 0xd10   :  { %v5035_v52 = vadd.f32 %v2720_v44, %v2719_v31  ;;  %v1871_v13 = vadd.f32 %v5323_v35, %v4805_v18 }
 0xd12   :  { %3654 = vtanh.f32 %v5035_v52 }
 0xd1f   :  { %v3655_v25 = vpop.eup %3654 }
 0xd20   :  { %v2723_v32 = vmul.f32 %v3655_v25, %v3653_v30  ;;  %v5324_v30 = vld [vmem:[#allocation27_spill] sm:$0xff] }
 0xd21   :  { %v1869_v25 = vadd.f32 %v5324_v30, %v4810_v1 }
 0xd22   :  { %v2734_v55 = vpack.c.bf16 %v2723_v32, %v2723_v32  ;;  %v2724_v3 = vmul.f32 %v4822_v53, %v2723_v32 }
 0xd24   :  { %2768 = vmatmul.mubr.bf16.vlgmr.msra.gmra.mxu0 %v2734_v55  ;;  %2809 = vmatmul.mubr.bf16.vlgmr.msra.gmra.mxu1 %v2734_v55 }
 0xd25   :  { %2725 = vadd.xlane.f32.xlu0 %v2724_v3  ;;  %2857 = vmatpush1.bf16.msra.mxu0 %v5039_v51 }
 0xd26   :  { %2898 = vmatpush1.bf16.msra.mxu1 %v5042_v9  ;;  %2858 = vmatprep.subr.bf16.mxu0 %v5045_v12 }
 0xd27   :  { %2899 = vmatprep.subr.bf16.mxu1 %v5048_v60  ;;  %2888 = vmatprep.mubr.bf16.mxu0 %v5266_v62 }
 0xd28   :  { %2929 = vmatprep.mubr.bf16.mxu1 %v5266_v62 }
 0xd29   :  { %2859 = vmatpush1.bf16.msra.mxu0 %v5053_v34 }
 0xd2a   :  { %2900 = vmatpush1.bf16.msra.mxu1 %v5056_v21  ;;  %2860 = vmatprep.subr.bf16.mxu0 %v5059_v24 }
 0xd2b   :  { %2901 = vmatprep.subr.bf16.mxu1 %v5062_v59 }
 0xd2d   :  { %2861 = vmatpush1.bf16.msra.mxu0 %v5065_v5 }
 0xd2e   :  { %2902 = vmatpush1.bf16.msra.mxu1 %v5068_v17  ;;  %2862 = vmatprep.subr.bf16.mxu0 %v5071_v20 }
 0xd2f   :  { %2903 = vmatprep.subr.bf16.mxu1 %v5074_v37 }
 0xd31   :  { %2863 = vmatpush1.bf16.msra.mxu0 %v5077_v23 }
 0xd32   :  { %2904 = vmatpush1.bf16.msra.mxu1 %v5080_v36  ;;  %2864 = vmatprep.subr.bf16.mxu0 %v5083_v38 }
 0xd33   :  { %2905 = vmatprep.subr.bf16.mxu1 %v5086_v26 }
 0xd35   :  { %2865 = vmatpush1.bf16.msra.mxu0 %v5089_v27 }
 0xd36   :  { %2906 = vmatpush1.bf16.msra.mxu1 %v5092_v28  ;;  %2866 = vmatprep.subr.bf16.mxu0 %v5095_v14 }
 0xd37   :  { %2907 = vmatprep.subr.bf16.mxu1 %v5098_v8 }
 0xd39   :  { %2867 = vmatpush1.bf16.msra.mxu0 %v5101_v49 }
 0xd3a   :  { %2908 = vmatpush1.bf16.msra.mxu1 %v5104_v39  ;;  %2868 = vmatprep.subr.bf16.mxu0 %v5107_v40 }
 0xd3b   :  { %2909 = vmatprep.subr.bf16.mxu1 %v5110_v41 }
 0xd3d   :  { %2869 = vmatpush1.bf16.msra.mxu0 %v5113_v42 }
 0xd3e   :  { %2910 = vmatpush1.bf16.msra.mxu1 %v5116_v45  ;;  %2870 = vmatprep.subr.bf16.mxu0 %v5119_v46 }
 0xd3f   :  { %2911 = vmatprep.subr.bf16.mxu1 %v5122_v47 }
 0xd41   :  { %2871 = vmatpush1.bf16.msra.mxu0 %v5125_v48 }
 0xd42   :  { %2912 = vmatpush1.bf16.msra.mxu1 %v5128_v29  ;;  %2977 = vmatprep.subr.bf16.mxu0 %v5015_v33 }
 0xd43   :  { %3018 = vmatprep.subr.bf16.mxu1 %v5018_v54 }
 0xdae   :  { %v2726_v50 = vpop.xlane.xlu0 %2725 }
 0xdaf   :  { %v2727_v43 = vadd.f32 %v4859_v58, %v2726_v50 }
 0xdb1   :  { %3272 = vst.msk [vmem:[%s5235_s11 + $0x20] sm:$0xff] %vm2244_vm2, %v2727_v43 }
 0xde4   :  { %v2769_v15 = vpop.f32.mrf.mxu0  ;;  %v2810_v63 = vpop.f32.mrf.mxu1 }
 0xde5   :  { %v2817_v11 = vadd.f32 %v2769_v15, %v1796_v7  ;;  %v2819_v32 = vadd.f32 %v2810_v63, %v1869_v25 }
 0xde6   :  { %v2771_v33 = vpop.f32.mrf.mxu0  ;;  %v2812_v10 = vpop.f32.mrf.mxu1 }
 0xde7   :  { %v3273_v54 = vmul.f32 -1.442695, %v2817_v11  ;;  %v2818_v57 = vadd.f32 %v2771_v33, %v1798_v0  ;;  %v2820_v31 = vadd.f32 %v2812_v10, %v1871_v13 }
 0xde8   :  { %v2773_v4 = vpop.f32.mrf.mxu0  ;;  %v2814_v61 = vpop.f32.mrf.mxu1 }
 0xde9   :  { %3656 = vpow2.f32 %v3273_v54  ;;  %v3274_v22 = vmul.f32 -1.442695, %v2818_v57  ;;  %v3275_v55 = vmul.f32 -1.442695, %v2820_v31 }
 0xdea   :  { %v2774_v56 = vpop.f32.mrf.mxu0  ;;  %v2815_v44 = vpop.f32.mrf.mxu1 }
 0xdeb   :  { %3658 = vpow2.f32 %v3274_v22 }
 0xdec   :  { %3660 = vtanh.f32 %v2819_v32 }
 0xded   :  { %3662 = vpow2.f32 %v3275_v55 }
 0xdf6   :  { %v3657_v3 = vpop.eup %3656 }
 0xdf7   :  { %v2824_v50 = vadd.f32 1.0, %v3657_v3 }
 0xdf8   :  { %v3659_v43 = vpop.eup %3658 }
 0xdf9   :  { %3664 = vrcp.f32 %v2824_v50  ;;  %v2830_v6 = vadd.f32 1.0, %v3659_v43  ;;  %v3661_v7 = vpop.eup %3660 }
 0xdfa   :  { %v3663_v15 = vpop.eup %3662 }
 0xdfb   :  { %3666 = vrcp.f32 %v2830_v6  ;;  %v2837_v33 = vadd.f32 1.0, %v3663_v15  ;;  %v5329_v6 = vld [vmem:[#allocation33_spill] sm:$0xff] }
 0xdfd   :  { %3668 = vrcp.f32 %v2837_v33 }
 0xe06   :  { %v3665_v16 = vpop.eup %3664 }
 0xe07   :  { %v2841_v0 = vmul.f32 %v3665_v16, %v3661_v7  ;;  %v1806_v7 = vadd.f32 %v5329_v6, %v4787_v19 }
 0xe08   :  { %v3667_v11 = vpop.eup %3666 }
 0xe09   :  { %v2840_v10 = vmul.f32 %v3667_v11, %v5035_v52 }
 0xe0a   :  { %v3669_v63 = vpop.eup %3668 }
 0xe0b   :  { %v5147_v54 = vadd.f32 %v2841_v0, %v2840_v10  ;;  %v5330_v0 = vld [vmem:[#allocation15_spill] sm:$0xff] }
 0xe0c   :  { %v1808_v11 = vadd.f32 %v5330_v0, %v4795_v2 }
 0xe0d   :  { %3670 = vtanh.f32 %v5147_v54 }
 0xe1a   :  { %v3671_v57 = vpop.eup %3670 }
 0xe1b   :  { %v2844_v4 = vmul.f32 %v3671_v57, %v3669_v63 }
 0xe1d   :  { %v2855_v61 = vpack.c.bf16 %v2844_v4, %v2844_v4  ;;  %v2845_v22 = vmul.f32 %v4822_v53, %v2844_v4 }
 0xe1f   :  { %2889 = vmatmul.mubr.bf16.vlgmr.msra.gmra.mxu0 %v2855_v61  ;;  %2930 = vmatmul.mubr.bf16.vlgmr.msra.gmra.mxu1 %v2855_v61 }
 0xe20   :  { %2846 = vadd.xlane.f32.xlu1 %v2845_v22  ;;  %2978 = vmatpush1.bf16.msra.mxu0 %v5039_v51  ;;  %v5325_v51 = vld [vmem:[#allocation29_spill] sm:$0xff] }
 0xe21   :  { %3019 = vmatpush1.bf16.msra.mxu1 %v5042_v9  ;;  %2979 = vmatprep.subr.bf16.mxu0 %v5045_v12  ;;  %v1802_v9 = vadd.f32 %v5325_v51, %v4787_v19  ;;  %v5332_v51 = vld [vmem:[#allocation34_spill] sm:$0xff] }
 0xe22   :  { %3020 = vmatprep.subr.bf16.mxu1 %v5048_v60  ;;  %3009 = vmatprep.mubr.bf16.mxu0 %v5266_v62 }
 0xe23   :  { %3050 = vmatprep.mubr.bf16.mxu1 %v5266_v62 }
 0xe24   :  { %2980 = vmatpush1.bf16.msra.mxu0 %v5053_v34  ;;  %v5326_v34 = vld [vmem:[#allocation32_spill] sm:$0xff] }
 0xe25   :  { %3021 = vmatpush1.bf16.msra.mxu1 %v5056_v21  ;;  %2981 = vmatprep.subr.bf16.mxu0 %v5059_v24  ;;  %v1804_v21 = vadd.f32 %v5326_v34, %v4795_v2 }
 0xe26   :  { %3022 = vmatprep.subr.bf16.mxu1 %v5062_v59 }
 0xe28   :  { %2982 = vmatpush1.bf16.msra.mxu0 %v5065_v5 }
 0xe29   :  { %3023 = vmatpush1.bf16.msra.mxu1 %v5068_v17  ;;  %2983 = vmatprep.subr.bf16.mxu0 %v5071_v20 }
 0xe2a   :  { %3024 = vmatprep.subr.bf16.mxu1 %v5074_v37 }
 0xe2c   :  { %2984 = vmatpush1.bf16.msra.mxu0 %v5077_v23 }
 0xe2d   :  { %3025 = vmatpush1.bf16.msra.mxu1 %v5080_v36  ;;  %2985 = vmatprep.subr.bf16.mxu0 %v5083_v38 }
 0xe2e   :  { %3026 = vmatprep.subr.bf16.mxu1 %v5086_v26 }
 0xe30   :  { %2986 = vmatpush1.bf16.msra.mxu0 %v5089_v27  ;;  %v5327_v27 = vld [vmem:[#allocation30_spill] sm:$0xff] }
 0xe31   :  { %3027 = vmatpush1.bf16.msra.mxu1 %v5092_v28  ;;  %2987 = vmatprep.subr.bf16.mxu0 %v5095_v14  ;;  %v1877_v28 = vadd.f32 %v5327_v27, %v4805_v18  ;;  %v3768_v27 = vld [vmem:[%s5231_s7] ss:$0 sm:$0xff] }
 0xe32   :  { %3028 = vmatprep.subr.bf16.mxu1 %v5098_v8  ;;  %v5328_v8 = vld [vmem:[#allocation31_spill] sm:$0xff] }
 0xe34   :  { %2988 = vmatpush1.bf16.msra.mxu0 %v5101_v49  ;;  %v1875_v49 = vadd.f32 %v5328_v8, %v4810_v1  ;;  %v3769_v8 = vld [vmem:[#allocation4] ss:$0 sm:$0xff] }
 0xe35   :  { %3029 = vmatpush1.bf16.msra.mxu1 %v5104_v39  ;;  %2989 = vmatprep.subr.bf16.mxu0 %v5107_v40 }
 0xe36   :  { %3030 = vmatprep.subr.bf16.mxu1 %v5110_v41 }
 0xe38   :  { %2990 = vmatpush1.bf16.msra.mxu0 %v5113_v42 }
 0xe39   :  { %3031 = vmatpush1.bf16.msra.mxu1 %v5116_v45  ;;  %2991 = vmatprep.subr.bf16.mxu0 %v5119_v46 }
 0xe3a   :  { %3032 = vmatprep.subr.bf16.mxu1 %v5122_v47 }
 0xe3c   :  { %2992 = vmatpush1.bf16.msra.mxu0 %v5125_v48 }
 0xe3d   :  { %3033 = vmatpush1.bf16.msra.mxu1 %v5128_v29 }
 0xea9   :  { %v2847_v62 = vpop.xlane.xlu1 %2846 }
 0xeaa   :  { %v2848_v52 = vadd.f32 %v4859_v58, %v2847_v62  ;;  %v5331_v62 = vld [vmem:[#allocation35_spill] sm:$0xff] }
 0xeab   :  { %v1881_v19 = vadd.f32 %v5331_v62, %v4805_v18 }
 0xeac   :  { %3276 = vst.msk [vmem:[%s5235_s11 + $0x28] sm:$0xff] %vm2244_vm2, %v2848_v52 }
 0xedf   :  { %v2890_v12 = vpop.f32.mrf.mxu0  ;;  %v2931_v60 = vpop.f32.mrf.mxu1 }
 0xee0   :  { %v2938_v24 = vadd.f32 %v2890_v12, %v1802_v9  ;;  %v2940_v39 = vadd.f32 %v2931_v60, %v1875_v49  ;;  %v1879_v9 = vadd.f32 %v5332_v51, %v4810_v1 }
 0xee1   :  { %v2892_v59 = vpop.f32.mrf.mxu0  ;;  %v2933_v5 = vpop.f32.mrf.mxu1 }
 0xee2   :  { %v3277_v17 = vmul.f32 -1.442695, %v2938_v24  ;;  %v2939_v20 = vadd.f32 %v2892_v59, %v1804_v21  ;;  %v2941_v14 = vadd.f32 %v2933_v5, %v1877_v28 }
 0xee3   :  { %v2894_v37 = vpop.f32.mrf.mxu0  ;;  %v2935_v23 = vpop.f32.mrf.mxu1 }
 0xee4   :  { %3672 = vpow2.f32 %v3277_v17  ;;  %v3278_v36 = vmul.f32 -1.442695, %v2939_v20  ;;  %v3279_v40 = vmul.f32 -1.442695, %v2941_v14 }
 0xee5   :  { %v2895_v38 = vpop.f32.mrf.mxu0  ;;  %v2936_v26 = vpop.f32.mrf.mxu1 }
 0xee6   :  { %3674 = vpow2.f32 %v3278_v36 }
 0xee7   :  { %3676 = vtanh.f32 %v2940_v39 }
 0xee8   :  { %3678 = vpow2.f32 %v3279_v40 }
 0xef1   :  { %v3673_v41 = vpop.eup %3672 }
 0xef2   :  { %v2945_v42 = vadd.f32 1.0, %v3673_v41 }
 0xef3   :  { %v3675_v45 = vpop.eup %3674 }
 0xef4   :  { %3680 = vrcp.f32 %v2945_v42  ;;  %v2951_v46 = vadd.f32 1.0, %v3675_v45  ;;  %v3677_v47 = vpop.eup %3676 }
 0xef5   :  { %v3679_v48 = vpop.eup %3678 }
 0xef6   :  { %3682 = vrcp.f32 %v2951_v46  ;;  %v2958_v35 = vadd.f32 1.0, %v3679_v48 }
 0xef8   :  { %3684 = vrcp.f32 %v2958_v35 }
 0xf01   :  { %v3681_v29 = vpop.eup %3680 }
 0xf02   :  { %v2962_v56 = vmul.f32 %v3681_v29, %v3677_v47 }
 0xf03   :  { %v3683_v44 = vpop.eup %3682 }
 0xf04   :  { %v2961_v13 = vmul.f32 %v3683_v44, %v5147_v54 }
 0xf05   :  { %v3685_v30 = vpop.eup %3684 }
 0xf06   :  { %v2963_v31 = vadd.f32 %v2962_v56, %v2961_v13 }
 0xf08   :  { %3686 = vtanh.f32 %v2963_v31 }
 0xf15   :  { %v3687_v25 = vpop.eup %3686 }
 0xf16   :  { %v2965_v32 = vmul.f32 %v3687_v25, %v3685_v30 }
 0xf18   :  { %v2976_v55 = vpack.c.bf16 %v2965_v32, %v2965_v32  ;;  %v2966_v3 = vmul.f32 %v4822_v53, %v2965_v32 }
 0xf1a   :  { %3010 = vmatmul.mubr.bf16.vlgmr.msra.gmra.mxu0 %v2976_v55  ;;  %3051 = vmatmul.mubr.bf16.vlgmr.msra.gmra.mxu1 %v2976_v55 }
 0xf1b   :  { %2967 = vadd.xlane.f32.xlu0 %v2966_v3 }
 0xfa4   :  { %v2968_v50 = vpop.xlane.xlu0 %2967 }
 0xfa5   :  { %v2969_v43 = vadd.f32 %v4859_v58, %v2968_v50 }
 0xfa7   :  { %3280 = vst.msk [vmem:[%s5235_s11 + $0x30] sm:$0xff] %vm2244_vm2, %v2969_v43 }
 0xfda   :  { %v3011_v15 = vpop.f32.mrf.mxu0  ;;  %v3052_v16 = vpop.f32.mrf.mxu1 }
 0xfdb   :  { %v3059_v53 = vadd.f32 %v3011_v15, %v1806_v7  ;;  %v3061_v2 = vadd.f32 %v3052_v16, %v1879_v9 }
 0xfdc   :  { %v3013_v33 = vpop.f32.mrf.mxu0  ;;  %v3054_v10 = vpop.f32.mrf.mxu1 }
 0xfdd   :  { %v3281_v54 = vmul.f32 -1.442695, %v3059_v53  ;;  %v3060_v63 = vadd.f32 %v3013_v33, %v1808_v11  ;;  %v3062_v52 = vadd.f32 %v3054_v10, %v1881_v19 }
 0xfde   :  { %v3015_v57 = vpop.f32.mrf.mxu0  ;;  %v3056_v58 = vpop.f32.mrf.mxu1 }
 0xfdf   :  { %3688 = vpow2.f32 %v3281_v54  ;;  %v3282_v4 = vmul.f32 -1.442695, %v3060_v63  ;;  %v3283_v12 = vmul.f32 -1.442695, %v3062_v52 }
 0xfe0   :  { %v3016_v61 = vpop.f32.mrf.mxu0  ;;  %v3057_v22 = vpop.f32.mrf.mxu1 }
 0xfe1   :  { %3690 = vpow2.f32 %v3282_v4 }
 0xfe2   :  { %3692 = vtanh.f32 %v3061_v2 }
 0xfe3   :  { %3694 = vpow2.f32 %v3283_v12 }
 0xfec   :  { %v3689_v60 = vpop.eup %3688 }
 0xfed   :  { %v3066_v34 = vadd.f32 1.0, %v3689_v60 }
 0xfee   :  { %v3691_v21 = vpop.eup %3690 }
 0xfef   :  { %3696 = vrcp.f32 %v3066_v34  ;;  %v3072_v24 = vadd.f32 1.0, %v3691_v21  ;;  %v3693_v59 = vpop.eup %3692 }
 0xff0   :  { %v3695_v5 = vpop.eup %3694 }
 0xff1   :  { %3698 = vrcp.f32 %v3072_v24  ;;  %v3079_v18 = vadd.f32 1.0, %v3695_v5 }
 0xff3   :  { %3700 = vrcp.f32 %v3079_v18 }
 0xffc   :  { %v3697_v17 = vpop.eup %3696 }
 0xffd   :  { %v3083_v20 = vmul.f32 %v3697_v17, %v3693_v59 }
 0xffe   :  { %v3699_v37 = vpop.eup %3698 }
 0xfff   :  { %v3082_v23 = vmul.f32 %v3699_v37, %v2963_v31 }
0x1000   :  { %v3701_v1 = vpop.eup %3700 }
0x1001   :  { %v3084_v36 = vadd.f32 %v3083_v20, %v3082_v23 }
0x1003   :  { %3702 = vtanh.f32 %v3084_v36  ;;  %3286 = vst [vmem:[%s5237_s13 + $0x8] sm:$0xff] %v3084_v36 }
0x1010   :  { %v3703_v38 = vpop.eup %3702 }
0x1011   :  { %v3086_v26 = vmul.f32 %v3703_v38, %v3701_v1 }
0x1013   :  { %v3087_v28 = vmul.f32 %v3768_v27, %v3086_v26  ;;  %3285 = vst [vmem:[%s5236_s12 + $0x8] sm:$0xff] %v3086_v26 }
0x1015   :  { %3088 = vadd.xlane.f32.xlu1 %v3087_v28 }
0x109e   :  { %v3089_v14 = vpop.xlane.xlu1 %3088 }
0x109f   :  { %v3090_v49 = vadd.f32 %v3769_v8, %v3089_v14 }
0x10a1   :  { %3284 = vst.msk [vmem:[%s5235_s11 + $0x38] sm:$0xff] %vm2244_vm2, %v3090_v49 }
0x10a2   :  { %3109 = vsyncpa [#allocation6], 1 }
0x10a3   :  { %3110 = vsyncpa [#allocation8], 1 }
0x10a4   :  { %3111 = vsyncpa [#allocation11], 1 }

</bundles_post_ra>
